<compile_context>
chip_gen: v5e
topology: v5e:2x2
jax: 0.10.0
libtpu: 0.0.40
codegen_flags: <defaults>
</compile_context>

<pallas_src>
import math

import jax
import jax.numpy as jnp
from jax.experimental import pallas as pl
from jax.experimental.pallas import tpu as pltpu

# ----------------------------- hyperparameters ------------------------------
B = 2
SRC_LEN = 8
TRG_LEN = 8
INPUT_DIM = 32     # src vocab
OUTPUT_DIM = 32    # trg vocab
EMB_DIM = 32
HID_DIM = 64
ENC_LAYERS = 2
DEC_LAYERS = 2
KERNEL = 3
MAX_LEN = 16
SCALE = math.sqrt(0.5)

# lane-padded channel dims (full 128-lane vregs / full-width MXU operands)
EPAD = 128
HPAD = 128
OPAD = 128

VMEM = pltpu.MemorySpace.VMEM


# ------------------------------ kernel helpers -------------------------------
def _embed(ids_ref, tok_ref, pos_ref, seq_len, vocab):
    """Token + positional embedding via exact one-hot matmul (in-kernel gather)."""
    ids = ids_ref[...]                                               # [B*L, 1] int32
    iota = jax.lax.broadcasted_iota(jnp.int32, (1, vocab), 1)        # [1, V]
    onehot = (ids == iota).astype(jnp.float32)                       # [B*L, V]
    tok = jnp.dot(onehot, tok_ref[...],
                  preferred_element_type=jnp.float32)                # [B*L, EPAD]
    pos = pos_ref[0:seq_len, :]                                      # [L, EPAD] (aligned slice)
    bsz = ids.shape[0] // seq_len
    return tok.reshape(bsz, seq_len, EPAD) + pos[None]               # [B, L, EPAD] f32


def _conv_taps(x, k, pad_left, pad_right):
    """Build the concatenated shifted conv operand.

    x: [B, L, H] f32 -> [B*L, K*H] bf16, where tap kk occupies channels
    kk*H:(kk+1)*H and row i of tap kk holds x[i + kk - pad_left] (zeros outside).
    This replaces the per-tap matmul loop with a single K*H-deep contraction.
    """
    bsz, seq, h = x.shape
    parts = []
    if pad_left:
        parts.append(jnp.zeros((bsz, pad_left, h), jnp.float32))
    parts.append(x)
    if pad_right:
        parts.append(jnp.zeros((bsz, pad_right, h), jnp.float32))
    xp = jnp.concatenate(parts, axis=1) if len(parts) > 1 else x     # [B, L+pads, H]
    taps = jnp.concatenate([xp[:, kk:kk + seq, :] for kk in range(k)], axis=-1)
    return taps.reshape(bsz * seq, k * h).astype(jnp.bfloat16)       # bf16 only at MXU boundary


# ------------------------------- fused kernel --------------------------------
def _seq2seq_kernel(
        src_ids_ref, trg_ids_ref,
        # encoder params
        e_tok_ref, e_pos_ref, e_e2h_w_ref, e_e2h_b_ref,
        e_conv_w_ref, e_conv_b_ref, e_h2e_w_ref, e_h2e_b_ref,
        # decoder params
        d_tok_ref, d_pos_ref, d_e2h_w_ref, d_e2h_b_ref,
        d_conv_w_ref, d_conv_b_ref,
        d_ah2e_w_ref, d_ah2e_b_ref, d_ae2h_w_ref, d_ae2h_b_ref,
        d_out_w_ref, d_out_b_ref,
        # outputs
        logits_ref, attn_ref):
    bsz, s, t, k, h = B, SRC_LEN, TRG_LEN, KERNEL, HPAD

    # ------------------------------- encoder --------------------------------
    emb_e = _embed(src_ids_ref, e_tok_ref, e_pos_ref, s, INPUT_DIM)   # [B,S,EPAD] f32
    x = jnp.dot(emb_e.reshape(bsz * s, EPAD).astype(jnp.bfloat16), e_e2h_w_ref[...],
                preferred_element_type=jnp.float32) + e_e2h_b_ref[...]
    x = x.reshape(bsz, s, h)                                          # [B,S,H] f32

    pad = (k - 1) // 2
    for layer in range(ENC_LAYERS):                                   # static, NL=2
        taps = _conv_taps(x, k, pad, pad)                             # [B*S, K*H] bf16
        acc = jnp.dot(taps, e_conv_w_ref[layer],
                      preferred_element_type=jnp.float32) + e_conv_b_ref[layer]
        glu = acc[:, :h] * jax.nn.sigmoid(acc[:, h:])                 # GLU (f32)
        x = (glu.reshape(bsz, s, h) + x) * SCALE                      # fused residual

    enc_conved = (jnp.dot(x.reshape(bsz * s, h).astype(jnp.bfloat16), e_h2e_w_ref[...],
                          preferred_element_type=jnp.float32)
                  + e_h2e_b_ref[...]).reshape(bsz, s, EPAD)
    enc_combined = (enc_conved + emb_e) * SCALE
    encc = enc_conved.astype(jnp.bfloat16)                            # attention keys, cast once
    encm = enc_combined.astype(jnp.bfloat16)                          # attention values, cast once

    # ------------------------------- decoder --------------------------------
    emb_d = _embed(trg_ids_ref, d_tok_ref, d_pos_ref, t, OUTPUT_DIM)  # [B,T,EPAD] f32
    x = jnp.dot(emb_d.reshape(bsz * t, EPAD).astype(jnp.bfloat16), d_e2h_w_ref[...],
                preferred_element_type=jnp.float32) + d_e2h_b_ref[...]
    x = x.reshape(bsz, t, h)                                          # [B,T,H] f32

    attn = None
    for layer in range(DEC_LAYERS):                                   # static, NL=2
        taps = _conv_taps(x, k, k - 1, 0)                             # causal (left) padding
        acc = jnp.dot(taps, d_conv_w_ref[layer],
                      preferred_element_type=jnp.float32) + d_conv_b_ref[layer]
        conved = (acc[:, :h] * jax.nn.sigmoid(acc[:, h:])).reshape(bsz, t, h)

        # -------- attention (all in VMEM; only last layer's attn is stored) --------
        ce = jnp.dot(conved.reshape(bsz * t, h).astype(jnp.bfloat16), d_ah2e_w_ref[...],
                     preferred_element_type=jnp.float32) + d_ah2e_b_ref[...]
        combined = (ce.reshape(bsz, t, EPAD) + emb_d) * SCALE         # [B,T,EPAD]
        energy = jnp.einsum('bte,bse->bts', combined.astype(jnp.bfloat16), encc,
                            preferred_element_type=jnp.float32)       # [B,T,S]
        m = jnp.max(energy, axis=-1, keepdims=True)
        p = jnp.exp(energy - m)
        attn = p * pl.reciprocal(jnp.sum(p, axis=-1, keepdims=True), approx=True)
        attended = jnp.einsum('bts,bse->bte', attn.astype(jnp.bfloat16), encm,
                              preferred_element_type=jnp.float32)     # [B,T,EPAD]
        ah = jnp.dot(attended.reshape(bsz * t, EPAD).astype(jnp.bfloat16), d_ae2h_w_ref[...],
                     preferred_element_type=jnp.float32) + d_ae2h_b_ref[...]
        att_comb = (conved + ah.reshape(bsz, t, h)) * SCALE
        x = (att_comb + x) * SCALE                                    # fused residual

    # Pre-fused hid2emb @ fc_out (eval mode: dropout between them is identity).
    logits = jnp.dot(x.reshape(bsz * t, h).astype(jnp.bfloat16), d_out_w_ref[...],
                     preferred_element_type=jnp.float32) + d_out_b_ref[...]
    logits_ref[...] = logits.astype(logits_ref.dtype)                 # [B*T, OPAD] lane-dense
    attn_ref[...] = attn.astype(attn_ref.dtype)                       # last layer's attention


# ------------------------------ model wrapper ---------------------------------
def seq2seq_forward(params, src, trg):
    bsz, s = src.shape
    _, t = trg.shape
    src_ids = src.reshape(bsz * s, 1).astype(jnp.int32)
    trg_ids = trg.reshape(bsz * t, 1).astype(jnp.int32)

    logits_flat, attention = pl.pallas_call(
        _seq2seq_kernel,
        out_shape=(jax.ShapeDtypeStruct((bsz * t, OPAD), jnp.float32),
                   jax.ShapeDtypeStruct((bsz, t, s), jnp.float32)),
        in_specs=[pl.BlockSpec(memory_space=VMEM)] * (2 + len(params)),
        out_specs=(pl.BlockSpec(memory_space=VMEM),
                   pl.BlockSpec(memory_space=VMEM)),
    )(src_ids, trg_ids, *params)

    output = logits_flat.reshape(bsz, t, OPAD)[:, :, :OUTPUT_DIM]
    return output, attention


# --------------------------- parameter construction --------------------------
def _init_raw_params(key, vocab, n_layers):
    """Parameters at the original (unpadded) module dims."""
    ks = jax.random.split(key, 14)
    nrm = lambda k, shape: (0.1 * jax.random.normal(k, shape)).astype(jnp.float32)
    return {
        "tok_emb": nrm(ks[0], (vocab, EMB_DIM)),
        "pos_emb": nrm(ks[1], (MAX_LEN, EMB_DIM)),
        "emb2hid_w": nrm(ks[2], (EMB_DIM, HID_DIM)),
        "emb2hid_b": nrm(ks[3], (HID_DIM,)),
        "hid2emb_w": nrm(ks[4], (HID_DIM, EMB_DIM)),
        "hid2emb_b": nrm(ks[5], (EMB_DIM,)),
        "attn_hid2emb_w": nrm(ks[6], (HID_DIM, EMB_DIM)),
        "attn_hid2emb_b": nrm(ks[7], (EMB_DIM,)),
        "attn_emb2hid_w": nrm(ks[8], (EMB_DIM, HID_DIM)),
        "attn_emb2hid_b": nrm(ks[9], (HID_DIM,)),
        "fc_out_w": nrm(ks[10], (EMB_DIM, OUTPUT_DIM)),
        "fc_out_b": nrm(ks[11], (OUTPUT_DIM,)),
        # conv_w[l, kk, c, o] corresponds to PyTorch Conv1d weight[o, c, kk]
        "conv_w": nrm(ks[12], (n_layers, KERNEL, HID_DIM, 2 * HID_DIM)),
        "conv_b": nrm(ks[13], (n_layers, 2 * HID_DIM)),
    }


def _pad2(w, rows, cols):
    out = jnp.zeros((rows, cols), jnp.float32)
    return out.at[:w.shape[0], :w.shape[1]].set(w)


def _pad_bias(b, cols):
    out = jnp.zeros((1, cols), jnp.float32)
    return out.at[0, :b.shape[0]].set(b)


def _pack_conv(conv_w, conv_b):
    """[NL,K,H,2H] -> lane-padded, tap-concatenated [NL, K*HPAD, 2*HPAD] bf16 (+ bias)."""
    nl, k, h, _ = conv_w.shape
    w = jnp.zeros((nl, k, HPAD, 2 * HPAD), jnp.float32)
    w = w.at[:, :, :h, :h].set(conv_w[..., :h])                        # GLU "A" half
    w = w.at[:, :, :h, HPAD:HPAD + h].set(conv_w[..., h:])             # GLU gate half
    w = w.reshape(nl, k * HPAD, 2 * HPAD).astype(jnp.bfloat16)
    b = jnp.zeros((nl, 1, 2 * HPAD), jnp.float32)
    b = b.at[:, 0, :h].set(conv_b[:, :h])
    b = b.at[:, 0, HPAD:HPAD + h].set(conv_b[:, h:])
    return w, b


def _prep_encoder(p):
    conv_w, conv_b = _pack_conv(p["conv_w"], p["conv_b"])
    bf = lambda x: x.astype(jnp.bfloat16)
    return (
        _pad2(p["tok_emb"], p["tok_emb"].shape[0], EPAD),              # f32 [V, EPAD]
        _pad2(p["pos_emb"], MAX_LEN, EPAD),                            # f32 [MAX_LEN, EPAD]
        bf(_pad2(p["emb2hid_w"], EPAD, HPAD)), _pad_bias(p["emb2hid_b"], HPAD),
        conv_w, conv_b,
        bf(_pad2(p["hid2emb_w"], HPAD, EPAD)), _pad_bias(p["hid2emb_b"], EPAD),
    )


def _prep_decoder(p):
    conv_w, conv_b = _pack_conv(p["conv_w"], p["conv_b"])
    bf = lambda x: x.astype(jnp.bfloat16)
    # Pre-fuse hid2emb + fc_out (no nonlinearity between them in eval mode).
    out_w = p["hid2emb_w"] @ p["fc_out_w"]                             # [H, O]
    out_b = p["hid2emb_b"] @ p["fc_out_w"] + p["fc_out_b"]             # [O]
    return (
        _pad2(p["tok_emb"], p["tok_emb"].shape[0], EPAD),
        _pad2(p["pos_emb"], MAX_LEN, EPAD),
        bf(_pad2(p["emb2hid_w"], EPAD, HPAD)), _pad_bias(p["emb2hid_b"], HPAD),
        conv_w, conv_b,
        bf(_pad2(p["attn_hid2emb_w"], HPAD, EPAD)), _pad_bias(p["attn_hid2emb_b"], EPAD),
        bf(_pad2(p["attn_emb2hid_w"], EPAD, HPAD)), _pad_bias(p["attn_emb2hid_b"], HPAD),
        bf(_pad2(out_w, HPAD, OPAD)), _pad_bias(out_b, OPAD),
    )


if __name__ == "__main__":
    key = jax.random.PRNGKey(0)
    k_enc, k_dec, k_src, k_trg = jax.random.split(key, 4)

    enc_raw = _init_raw_params(k_enc, INPUT_DIM, ENC_LAYERS)
    dec_raw = _init_raw_params(k_dec, OUTPUT_DIM, DEC_LAYERS)
    kernel_params = _prep_encoder(enc_raw) + _prep_decoder(dec_raw)

    src = jax.random.randint(k_src, (B, SRC_LEN), 0, INPUT_DIM, dtype=jnp.int32)
    trg = jax.random.randint(k_trg, (B, TRG_LEN), 0, OUTPUT_DIM, dtype=jnp.int32)

    fwd = jax.jit(seq2seq_forward)
    output, attention = fwd(kernel_params, src, trg)
    jax.block_until_ready((output, attention))

    assert output.shape == (B, TRG_LEN, OUTPUT_DIM)
    assert attention.shape == (B, TRG_LEN, SRC_LEN)
    assert bool(jnp.all(jnp.isfinite(output))) and bool(jnp.all(jnp.isfinite(attention)))
    # softmax rows should sum to ~1 (approx reciprocal => relaxed tolerance)
    assert bool(jnp.all(jnp.abs(attention.sum(-1) - 1.0) < 1e-2))
    print("KERNEL_OK")
</pallas_src>

<mosaic_0001>
module attributes {stable_mosaic.version = 11 : i64} {
  func.func @_seq2seq_kernel(%arg0: memref<16x1xi32, #tpu.memory_space<vmem>>, %arg1: memref<16x1xi32, #tpu.memory_space<vmem>>, %arg2: memref<32x128xf32, #tpu.memory_space<vmem>>, %arg3: memref<16x128xf32, #tpu.memory_space<vmem>>, %arg4: memref<128x128xbf16, #tpu.memory_space<vmem>>, %arg5: memref<1x128xf32, #tpu.memory_space<vmem>>, %arg6: memref<2x384x256xbf16, #tpu.memory_space<vmem>>, %arg7: memref<2x1x256xf32, #tpu.memory_space<vmem>>, %arg8: memref<128x128xbf16, #tpu.memory_space<vmem>>, %arg9: memref<1x128xf32, #tpu.memory_space<vmem>>, %arg10: memref<32x128xf32, #tpu.memory_space<vmem>>, %arg11: memref<16x128xf32, #tpu.memory_space<vmem>>, %arg12: memref<128x128xbf16, #tpu.memory_space<vmem>>, %arg13: memref<1x128xf32, #tpu.memory_space<vmem>>, %arg14: memref<2x384x256xbf16, #tpu.memory_space<vmem>>, %arg15: memref<2x1x256xf32, #tpu.memory_space<vmem>>, %arg16: memref<128x128xbf16, #tpu.memory_space<vmem>>, %arg17: memref<1x128xf32, #tpu.memory_space<vmem>>, %arg18: memref<128x128xbf16, #tpu.memory_space<vmem>>, %arg19: memref<1x128xf32, #tpu.memory_space<vmem>>, %arg20: memref<128x128xbf16, #tpu.memory_space<vmem>>, %arg21: memref<1x128xf32, #tpu.memory_space<vmem>>, %arg22: memref<16x128xf32, #tpu.memory_space<vmem>>, %arg23: memref<2x8x8xf32, #tpu.memory_space<vmem>>) attributes {dimension_semantics = [], scalar_prefetch = 0 : i64, scratch_operands = 0 : i64, tpu.core_type = #tpu.core_type<tc>} {
    %c0 = arith.constant 0 : index
    %c0_0 = arith.constant 0 : index
    %0 = vector.load %arg0[%c0, %c0_0] : memref<16x1xi32, #tpu.memory_space<vmem>>, vector<16x1xi32>
    %1 = tpu.iota {dimensions = array<i32: 1>} : vector<1x32xi32>
    %2 = vector.broadcast %0 : vector<16x1xi32> to vector<16x32xi32>
    %3 = vector.broadcast %1 : vector<1x32xi32> to vector<16x32xi32>
    %4 = arith.cmpi eq, %2, %3 : vector<16x32xi32>
    %5 = arith.extui %4 : vector<16x32xi1> to vector<16x32xi32>
    %6 = arith.sitofp %5 : vector<16x32xi32> to vector<16x32xf32>
    %c0_1 = arith.constant 0 : index
    %c0_2 = arith.constant 0 : index
    %7 = vector.load %arg2[%c0_1, %c0_2] : memref<32x128xf32, #tpu.memory_space<vmem>>, vector<32x128xf32>
    %cst = arith.constant dense<0.000000e+00> : vector<16x128xf32>
    %8 = tpu.matmul %6, %7, %cst {dimension_numbers = #tpu.dot_dimension_numbers<[1], [0], [0], [1], [0, 0, 1, 1], [], []>} : vector<16x32xf32>, vector<32x128xf32>, vector<16x128xf32> -> vector<16x128xf32>
    %c0_3 = arith.constant 0 : index
    %c0_4 = arith.constant 0 : index
    %9 = vector.load %arg3[%c0_3, %c0_4] : memref<16x128xf32, #tpu.memory_space<vmem>>, vector<8x128xf32>
    %10 = vector.shape_cast %8 : vector<16x128xf32> to vector<2x8x128xf32>
    %11 = vector.shape_cast %9 : vector<8x128xf32> to vector<1x8x128xf32>
    %12 = vector.broadcast %11 : vector<1x8x128xf32> to vector<2x8x128xf32>
    %13 = arith.addf %10, %12 : vector<2x8x128xf32>
    %14 = vector.shape_cast %13 : vector<2x8x128xf32> to vector<16x128xf32>
    %15 = arith.truncf %14 : vector<16x128xf32> to vector<16x128xbf16>
    %c0_5 = arith.constant 0 : index
    %c0_6 = arith.constant 0 : index
    %16 = vector.load %arg4[%c0_5, %c0_6] : memref<128x128xbf16, #tpu.memory_space<vmem>>, vector<128x128xbf16>
    %cst_7 = arith.constant dense<0.000000e+00> : vector<16x128xf32>
    %17 = tpu.matmul %15, %16, %cst_7 {dimension_numbers = #tpu.dot_dimension_numbers<[1], [0], [0], [1], [0, 0, 1, 1], [], []>} : vector<16x128xbf16>, vector<128x128xbf16>, vector<16x128xf32> -> vector<16x128xf32>
    %c0_8 = arith.constant 0 : index
    %c0_9 = arith.constant 0 : index
    %18 = vector.load %arg5[%c0_8, %c0_9] : memref<1x128xf32, #tpu.memory_space<vmem>>, vector<1x128xf32>
    %19 = vector.broadcast %18 : vector<1x128xf32> to vector<16x128xf32>
    %20 = arith.addf %17, %19 : vector<16x128xf32>
    %21 = vector.shape_cast %20 : vector<16x128xf32> to vector<2x8x128xf32>
    %cst_10 = arith.constant 0.000000e+00 : f32
    %22 = vector.broadcast %cst_10 : f32 to vector<2x1x128xf32>
    %cst_11 = arith.constant 0.000000e+00 : f32
    %23 = vector.broadcast %cst_11 : f32 to vector<2x1x128xf32>
    %24 = tpu.concatenate %22, %21, %23 in 1 : vector<2x1x128xf32>, vector<2x8x128xf32>, vector<2x1x128xf32> -> vector<2x10x128xf32>
    %25 = vector.extract_strided_slice %24 {offsets = [0, 0, 0], sizes = [2, 8, 128], strides = [1, 1, 1]} : vector<2x10x128xf32> to vector<2x8x128xf32>
    %26 = vector.extract_strided_slice %24 {offsets = [0, 1, 0], sizes = [2, 8, 128], strides = [1, 1, 1]} : vector<2x10x128xf32> to vector<2x8x128xf32>
    %27 = vector.extract_strided_slice %24 {offsets = [0, 2, 0], sizes = [2, 8, 128], strides = [1, 1, 1]} : vector<2x10x128xf32> to vector<2x8x128xf32>
    %28 = tpu.concatenate %25, %26, %27 in 2 : vector<2x8x128xf32>, vector<2x8x128xf32>, vector<2x8x128xf32> -> vector<2x8x384xf32>
    %29 = vector.shape_cast %28 : vector<2x8x384xf32> to vector<16x384xf32>
    %30 = arith.truncf %29 : vector<16x384xf32> to vector<16x384xbf16>
    %c0_12 = arith.constant 0 : index
    %c0_13 = arith.constant 0 : index
    %c0_14 = arith.constant 0 : index
    %31 = vector.load %arg6[%c0_12, %c0_13, %c0_14] : memref<2x384x256xbf16, #tpu.memory_space<vmem>>, vector<1x384x256xbf16>
    %32 = vector.shape_cast %31 : vector<1x384x256xbf16> to vector<384x256xbf16>
    %cst_15 = arith.constant dense<0.000000e+00> : vector<16x256xf32>
    %33 = tpu.matmul %30, %32, %cst_15 {dimension_numbers = #tpu.dot_dimension_numbers<[1], [0], [0], [1], [0, 0, 1, 1], [], []>} : vector<16x384xbf16>, vector<384x256xbf16>, vector<16x256xf32> -> vector<16x256xf32>
    %c0_16 = arith.constant 0 : index
    %c0_17 = arith.constant 0 : index
    %c0_18 = arith.constant 0 : index
    %34 = vector.load %arg7[%c0_16, %c0_17, %c0_18] : memref<2x1x256xf32, #tpu.memory_space<vmem>>, vector<1x1x256xf32>
    %35 = vector.shape_cast %34 : vector<1x1x256xf32> to vector<1x256xf32>
    %36 = vector.broadcast %35 : vector<1x256xf32> to vector<16x256xf32>
    %37 = arith.addf %33, %36 : vector<16x256xf32>
    %38 = vector.extract_strided_slice %37 {offsets = [0, 0], sizes = [16, 128], strides = [1, 1]} : vector<16x256xf32> to vector<16x128xf32>
    %39 = vector.extract_strided_slice %37 {offsets = [0, 128], sizes = [16, 128], strides = [1, 1]} : vector<16x256xf32> to vector<16x128xf32>
    %40 = arith.negf %39 : vector<16x128xf32>
    %41 = math.exp %40 : vector<16x128xf32>
    %cst_19 = arith.constant 1.000000e+00 : f32
    %42 = vector.broadcast %cst_19 : f32 to vector<16x128xf32>
    %43 = arith.addf %42, %41 : vector<16x128xf32>
    %44 = arith.divf %42, %43 : vector<16x128xf32>
    %45 = arith.mulf %38, %44 : vector<16x128xf32>
    %46 = vector.shape_cast %45 : vector<16x128xf32> to vector<2x8x128xf32>
    %47 = arith.addf %46, %21 : vector<2x8x128xf32>
    %cst_20 = arith.constant 0.707106769 : f32
    %48 = vector.broadcast %cst_20 : f32 to vector<2x8x128xf32>
    %49 = arith.mulf %47, %48 : vector<2x8x128xf32>
    %cst_21 = arith.constant 0.000000e+00 : f32
    %50 = vector.broadcast %cst_21 : f32 to vector<2x1x128xf32>
    %cst_22 = arith.constant 0.000000e+00 : f32
    %51 = vector.broadcast %cst_22 : f32 to vector<2x1x128xf32>
    %52 = tpu.concatenate %50, %49, %51 in 1 : vector<2x1x128xf32>, vector<2x8x128xf32>, vector<2x1x128xf32> -> vector<2x10x128xf32>
    %53 = vector.extract_strided_slice %52 {offsets = [0, 0, 0], sizes = [2, 8, 128], strides = [1, 1, 1]} : vector<2x10x128xf32> to vector<2x8x128xf32>
    %54 = vector.extract_strided_slice %52 {offsets = [0, 1, 0], sizes = [2, 8, 128], strides = [1, 1, 1]} : vector<2x10x128xf32> to vector<2x8x128xf32>
    %55 = vector.extract_strided_slice %52 {offsets = [0, 2, 0], sizes = [2, 8, 128], strides = [1, 1, 1]} : vector<2x10x128xf32> to vector<2x8x128xf32>
    %56 = tpu.concatenate %53, %54, %55 in 2 : vector<2x8x128xf32>, vector<2x8x128xf32>, vector<2x8x128xf32> -> vector<2x8x384xf32>
    %57 = vector.shape_cast %56 : vector<2x8x384xf32> to vector<16x384xf32>
    %58 = arith.truncf %57 : vector<16x384xf32> to vector<16x384xbf16>
    %c1 = arith.constant 1 : index
    %c0_23 = arith.constant 0 : index
    %c0_24 = arith.constant 0 : index
    %59 = vector.load %arg6[%c1, %c0_23, %c0_24] : memref<2x384x256xbf16, #tpu.memory_space<vmem>>, vector<1x384x256xbf16>
    %60 = vector.shape_cast %59 : vector<1x384x256xbf16> to vector<384x256xbf16>
    %cst_25 = arith.constant dense<0.000000e+00> : vector<16x256xf32>
    %61 = tpu.matmul %58, %60, %cst_25 {dimension_numbers = #tpu.dot_dimension_numbers<[1], [0], [0], [1], [0, 0, 1, 1], [], []>} : vector<16x384xbf16>, vector<384x256xbf16>, vector<16x256xf32> -> vector<16x256xf32>
    %c1_26 = arith.constant 1 : index
    %c0_27 = arith.constant 0 : index
    %c0_28 = arith.constant 0 : index
    %62 = vector.load %arg7[%c1_26, %c0_27, %c0_28] : memref<2x1x256xf32, #tpu.memory_space<vmem>>, vector<1x1x256xf32>
    %63 = vector.shape_cast %62 : vector<1x1x256xf32> to vector<1x256xf32>
    %64 = vector.broadcast %63 : vector<1x256xf32> to vector<16x256xf32>
    %65 = arith.addf %61, %64 : vector<16x256xf32>
    %66 = vector.extract_strided_slice %65 {offsets = [0, 0], sizes = [16, 128], strides = [1, 1]} : vector<16x256xf32> to vector<16x128xf32>
    %67 = vector.extract_strided_slice %65 {offsets = [0, 128], sizes = [16, 128], strides = [1, 1]} : vector<16x256xf32> to vector<16x128xf32>
    %68 = arith.negf %67 : vector<16x128xf32>
    %69 = math.exp %68 : vector<16x128xf32>
    %cst_29 = arith.constant 1.000000e+00 : f32
    %70 = vector.broadcast %cst_29 : f32 to vector<16x128xf32>
    %71 = arith.addf %70, %69 : vector<16x128xf32>
    %72 = arith.divf %70, %71 : vector<16x128xf32>
    %73 = arith.mulf %66, %72 : vector<16x128xf32>
    %74 = vector.shape_cast %73 : vector<16x128xf32> to vector<2x8x128xf32>
    %75 = arith.addf %74, %49 : vector<2x8x128xf32>
    %cst_30 = arith.constant 0.707106769 : f32
    %76 = vector.broadcast %cst_30 : f32 to vector<2x8x128xf32>
    %77 = arith.mulf %75, %76 : vector<2x8x128xf32>
    %78 = vector.shape_cast %77 : vector<2x8x128xf32> to vector<16x128xf32>
    %79 = arith.truncf %78 : vector<16x128xf32> to vector<16x128xbf16>
    %c0_31 = arith.constant 0 : index
    %c0_32 = arith.constant 0 : index
    %80 = vector.load %arg8[%c0_31, %c0_32] : memref<128x128xbf16, #tpu.memory_space<vmem>>, vector<128x128xbf16>
    %cst_33 = arith.constant dense<0.000000e+00> : vector<16x128xf32>
    %81 = tpu.matmul %79, %80, %cst_33 {dimension_numbers = #tpu.dot_dimension_numbers<[1], [0], [0], [1], [0, 0, 1, 1], [], []>} : vector<16x128xbf16>, vector<128x128xbf16>, vector<16x128xf32> -> vector<16x128xf32>
    %c0_34 = arith.constant 0 : index
    %c0_35 = arith.constant 0 : index
    %82 = vector.load %arg9[%c0_34, %c0_35] : memref<1x128xf32, #tpu.memory_space<vmem>>, vector<1x128xf32>
    %83 = vector.broadcast %82 : vector<1x128xf32> to vector<16x128xf32>
    %84 = arith.addf %81, %83 : vector<16x128xf32>
    %85 = vector.shape_cast %84 : vector<16x128xf32> to vector<2x8x128xf32>
    %86 = arith.addf %85, %13 : vector<2x8x128xf32>
    %cst_36 = arith.constant 0.707106769 : f32
    %87 = vector.broadcast %cst_36 : f32 to vector<2x8x128xf32>
    %88 = arith.mulf %86, %87 : vector<2x8x128xf32>
    %89 = arith.truncf %85 : vector<2x8x128xf32> to vector<2x8x128xbf16>
    %90 = arith.truncf %88 : vector<2x8x128xf32> to vector<2x8x128xbf16>
    %c0_37 = arith.constant 0 : index
    %c0_38 = arith.constant 0 : index
    %91 = vector.load %arg1[%c0_37, %c0_38] : memref<16x1xi32, #tpu.memory_space<vmem>>, vector<16x1xi32>
    %92 = tpu.iota {dimensions = array<i32: 1>} : vector<1x32xi32>
    %93 = vector.broadcast %91 : vector<16x1xi32> to vector<16x32xi32>
    %94 = vector.broadcast %92 : vector<1x32xi32> to vector<16x32xi32>
    %95 = arith.cmpi eq, %93, %94 : vector<16x32xi32>
    %96 = arith.extui %95 : vector<16x32xi1> to vector<16x32xi32>
    %97 = arith.sitofp %96 : vector<16x32xi32> to vector<16x32xf32>
    %c0_39 = arith.constant 0 : index
    %c0_40 = arith.constant 0 : index
    %98 = vector.load %arg10[%c0_39, %c0_40] : memref<32x128xf32, #tpu.memory_space<vmem>>, vector<32x128xf32>
    %cst_41 = arith.constant dense<0.000000e+00> : vector<16x128xf32>
    %99 = tpu.matmul %97, %98, %cst_41 {dimension_numbers = #tpu.dot_dimension_numbers<[1], [0], [0], [1], [0, 0, 1, 1], [], []>} : vector<16x32xf32>, vector<32x128xf32>, vector<16x128xf32> -> vector<16x128xf32>
    %c0_42 = arith.constant 0 : index
    %c0_43 = arith.constant 0 : index
    %100 = vector.load %arg11[%c0_42, %c0_43] : memref<16x128xf32, #tpu.memory_space<vmem>>, vector<8x128xf32>
    %101 = vector.shape_cast %99 : vector<16x128xf32> to vector<2x8x128xf32>
    %102 = vector.shape_cast %100 : vector<8x128xf32> to vector<1x8x128xf32>
    %103 = vector.broadcast %102 : vector<1x8x128xf32> to vector<2x8x128xf32>
    %104 = arith.addf %101, %103 : vector<2x8x128xf32>
    %105 = vector.shape_cast %104 : vector<2x8x128xf32> to vector<16x128xf32>
    %106 = arith.truncf %105 : vector<16x128xf32> to vector<16x128xbf16>
    %c0_44 = arith.constant 0 : index
    %c0_45 = arith.constant 0 : index
    %107 = vector.load %arg12[%c0_44, %c0_45] : memref<128x128xbf16, #tpu.memory_space<vmem>>, vector<128x128xbf16>
    %cst_46 = arith.constant dense<0.000000e+00> : vector<16x128xf32>
    %108 = tpu.matmul %106, %107, %cst_46 {dimension_numbers = #tpu.dot_dimension_numbers<[1], [0], [0], [1], [0, 0, 1, 1], [], []>} : vector<16x128xbf16>, vector<128x128xbf16>, vector<16x128xf32> -> vector<16x128xf32>
    %c0_47 = arith.constant 0 : index
    %c0_48 = arith.constant 0 : index
    %109 = vector.load %arg13[%c0_47, %c0_48] : memref<1x128xf32, #tpu.memory_space<vmem>>, vector<1x128xf32>
    %110 = vector.broadcast %109 : vector<1x128xf32> to vector<16x128xf32>
    %111 = arith.addf %108, %110 : vector<16x128xf32>
    %112 = vector.shape_cast %111 : vector<16x128xf32> to vector<2x8x128xf32>
    %cst_49 = arith.constant 0.000000e+00 : f32
    %113 = vector.broadcast %cst_49 : f32 to vector<2x2x128xf32>
    %114 = tpu.concatenate %113, %112 in 1 : vector<2x2x128xf32>, vector<2x8x128xf32> -> vector<2x10x128xf32>
    %115 = vector.extract_strided_slice %114 {offsets = [0, 0, 0], sizes = [2, 8, 128], strides = [1, 1, 1]} : vector<2x10x128xf32> to vector<2x8x128xf32>
    %116 = vector.extract_strided_slice %114 {offsets = [0, 1, 0], sizes = [2, 8, 128], strides = [1, 1, 1]} : vector<2x10x128xf32> to vector<2x8x128xf32>
    %117 = vector.extract_strided_slice %114 {offsets = [0, 2, 0], sizes = [2, 8, 128], strides = [1, 1, 1]} : vector<2x10x128xf32> to vector<2x8x128xf32>
    %118 = tpu.concatenate %115, %116, %117 in 2 : vector<2x8x128xf32>, vector<2x8x128xf32>, vector<2x8x128xf32> -> vector<2x8x384xf32>
    %119 = vector.shape_cast %118 : vector<2x8x384xf32> to vector<16x384xf32>
    %120 = arith.truncf %119 : vector<16x384xf32> to vector<16x384xbf16>
    %c0_50 = arith.constant 0 : index
    %c0_51 = arith.constant 0 : index
    %c0_52 = arith.constant 0 : index
    %121 = vector.load %arg14[%c0_50, %c0_51, %c0_52] : memref<2x384x256xbf16, #tpu.memory_space<vmem>>, vector<1x384x256xbf16>
    %122 = vector.shape_cast %121 : vector<1x384x256xbf16> to vector<384x256xbf16>
    %cst_53 = arith.constant dense<0.000000e+00> : vector<16x256xf32>
    %123 = tpu.matmul %120, %122, %cst_53 {dimension_numbers = #tpu.dot_dimension_numbers<[1], [0], [0], [1], [0, 0, 1, 1], [], []>} : vector<16x384xbf16>, vector<384x256xbf16>, vector<16x256xf32> -> vector<16x256xf32>
    %c0_54 = arith.constant 0 : index
    %c0_55 = arith.constant 0 : index
    %c0_56 = arith.constant 0 : index
    %124 = vector.load %arg15[%c0_54, %c0_55, %c0_56] : memref<2x1x256xf32, #tpu.memory_space<vmem>>, vector<1x1x256xf32>
    %125 = vector.shape_cast %124 : vector<1x1x256xf32> to vector<1x256xf32>
    %126 = vector.broadcast %125 : vector<1x256xf32> to vector<16x256xf32>
    %127 = arith.addf %123, %126 : vector<16x256xf32>
    %128 = vector.extract_strided_slice %127 {offsets = [0, 0], sizes = [16, 128], strides = [1, 1]} : vector<16x256xf32> to vector<16x128xf32>
    %129 = vector.extract_strided_slice %127 {offsets = [0, 128], sizes = [16, 128], strides = [1, 1]} : vector<16x256xf32> to vector<16x128xf32>
    %130 = arith.negf %129 : vector<16x128xf32>
    %131 = math.exp %130 : vector<16x128xf32>
    %cst_57 = arith.constant 1.000000e+00 : f32
    %132 = vector.broadcast %cst_57 : f32 to vector<16x128xf32>
    %133 = arith.addf %132, %131 : vector<16x128xf32>
    %134 = arith.divf %132, %133 : vector<16x128xf32>
    %135 = arith.mulf %128, %134 : vector<16x128xf32>
    %136 = vector.shape_cast %135 : vector<16x128xf32> to vector<2x8x128xf32>
    %137 = vector.shape_cast %136 : vector<2x8x128xf32> to vector<16x128xf32>
    %138 = arith.truncf %137 : vector<16x128xf32> to vector<16x128xbf16>
    %c0_58 = arith.constant 0 : index
    %c0_59 = arith.constant 0 : index
    %139 = vector.load %arg16[%c0_58, %c0_59] : memref<128x128xbf16, #tpu.memory_space<vmem>>, vector<128x128xbf16>
    %cst_60 = arith.constant dense<0.000000e+00> : vector<16x128xf32>
    %140 = tpu.matmul %138, %139, %cst_60 {dimension_numbers = #tpu.dot_dimension_numbers<[1], [0], [0], [1], [0, 0, 1, 1], [], []>} : vector<16x128xbf16>, vector<128x128xbf16>, vector<16x128xf32> -> vector<16x128xf32>
    %c0_61 = arith.constant 0 : index
    %c0_62 = arith.constant 0 : index
    %141 = vector.load %arg17[%c0_61, %c0_62] : memref<1x128xf32, #tpu.memory_space<vmem>>, vector<1x128xf32>
    %142 = vector.broadcast %141 : vector<1x128xf32> to vector<16x128xf32>
    %143 = arith.addf %140, %142 : vector<16x128xf32>
    %144 = vector.shape_cast %143 : vector<16x128xf32> to vector<2x8x128xf32>
    %145 = arith.addf %144, %104 : vector<2x8x128xf32>
    %cst_63 = arith.constant 0.707106769 : f32
    %146 = vector.broadcast %cst_63 : f32 to vector<2x8x128xf32>
    %147 = arith.mulf %145, %146 : vector<2x8x128xf32>
    %148 = arith.truncf %147 : vector<2x8x128xf32> to vector<2x8x128xbf16>
    "tpu.trace_start"() <{level = 10 : i32, message = "bte,bse->bts"}> : () -> ()
    %cst_64 = arith.constant dense<0.000000e+00> : vector<2x8x8xf32>
    %149 = tpu.matmul %148, %89, %cst_64 {dimension_numbers = #tpu.dot_dimension_numbers<[2], [2], [1], [1], [0, 0, 0, 1, 1, 1], [0], [0]>} : vector<2x8x128xbf16>, vector<2x8x128xbf16>, vector<2x8x8xf32> -> vector<2x8x8xf32>
    "tpu.trace_stop"() : () -> ()
    %cst_65 = arith.constant dense<0xFF800000> : vector<2x8xf32>
    %150 = vector.multi_reduction <maximumf>, %149, %cst_65 [2] : vector<2x8x8xf32> to vector<2x8xf32>
    %151 = vector.shape_cast %150 : vector<2x8xf32> to vector<2x8x1xf32>
    %152 = vector.broadcast %151 : vector<2x8x1xf32> to vector<2x8x8xf32>
    %153 = arith.subf %149, %152 : vector<2x8x8xf32>
    %154 = math.exp %153 : vector<2x8x8xf32>
    %cst_66 = arith.constant dense<0.000000e+00> : vector<2x8xf32>
    %155 = vector.multi_reduction <add>, %154, %cst_66 [2] : vector<2x8x8xf32> to vector<2x8xf32>
    %156 = vector.shape_cast %155 : vector<2x8xf32> to vector<2x8x1xf32>
    %157 = tpu.reciprocal %156 {approx = true} : vector<2x8x1xf32> -> vector<2x8x1xf32>
    %158 = vector.broadcast %157 : vector<2x8x1xf32> to vector<2x8x8xf32>
    %159 = arith.mulf %154, %158 : vector<2x8x8xf32>
    %160 = arith.truncf %159 : vector<2x8x8xf32> to vector<2x8x8xbf16>
    "tpu.trace_start"() <{level = 10 : i32, message = "bts,bse->bte"}> : () -> ()
    %cst_67 = arith.constant dense<0.000000e+00> : vector<2x8x128xf32>
    %161 = tpu.matmul %160, %90, %cst_67 {dimension_numbers = #tpu.dot_dimension_numbers<[2], [1], [1], [2], [0, 0, 0, 1, 1, 2], [0], [0]>} : vector<2x8x8xbf16>, vector<2x8x128xbf16>, vector<2x8x128xf32> -> vector<2x8x128xf32>
    "tpu.trace_stop"() : () -> ()
    %162 = vector.shape_cast %161 : vector<2x8x128xf32> to vector<16x128xf32>
    %163 = arith.truncf %162 : vector<16x128xf32> to vector<16x128xbf16>
    %c0_68 = arith.constant 0 : index
    %c0_69 = arith.constant 0 : index
    %164 = vector.load %arg18[%c0_68, %c0_69] : memref<128x128xbf16, #tpu.memory_space<vmem>>, vector<128x128xbf16>
    %cst_70 = arith.constant dense<0.000000e+00> : vector<16x128xf32>
    %165 = tpu.matmul %163, %164, %cst_70 {dimension_numbers = #tpu.dot_dimension_numbers<[1], [0], [0], [1], [0, 0, 1, 1], [], []>} : vector<16x128xbf16>, vector<128x128xbf16>, vector<16x128xf32> -> vector<16x128xf32>
    %c0_71 = arith.constant 0 : index
    %c0_72 = arith.constant 0 : index
    %166 = vector.load %arg19[%c0_71, %c0_72] : memref<1x128xf32, #tpu.memory_space<vmem>>, vector<1x128xf32>
    %167 = vector.broadcast %166 : vector<1x128xf32> to vector<16x128xf32>
    %168 = arith.addf %165, %167 : vector<16x128xf32>
    %169 = vector.shape_cast %168 : vector<16x128xf32> to vector<2x8x128xf32>
    %170 = arith.addf %136, %169 : vector<2x8x128xf32>
    %cst_73 = arith.constant 0.707106769 : f32
    %171 = vector.broadcast %cst_73 : f32 to vector<2x8x128xf32>
    %172 = arith.mulf %170, %171 : vector<2x8x128xf32>
    %173 = arith.addf %172, %112 : vector<2x8x128xf32>
    %cst_74 = arith.constant 0.707106769 : f32
    %174 = vector.broadcast %cst_74 : f32 to vector<2x8x128xf32>
    %175 = arith.mulf %173, %174 : vector<2x8x128xf32>
    %cst_75 = arith.constant 0.000000e+00 : f32
    %176 = vector.broadcast %cst_75 : f32 to vector<2x2x128xf32>
    %177 = tpu.concatenate %176, %175 in 1 : vector<2x2x128xf32>, vector<2x8x128xf32> -> vector<2x10x128xf32>
    %178 = vector.extract_strided_slice %177 {offsets = [0, 0, 0], sizes = [2, 8, 128], strides = [1, 1, 1]} : vector<2x10x128xf32> to vector<2x8x128xf32>
    %179 = vector.extract_strided_slice %177 {offsets = [0, 1, 0], sizes = [2, 8, 128], strides = [1, 1, 1]} : vector<2x10x128xf32> to vector<2x8x128xf32>
    %180 = vector.extract_strided_slice %177 {offsets = [0, 2, 0], sizes = [2, 8, 128], strides = [1, 1, 1]} : vector<2x10x128xf32> to vector<2x8x128xf32>
    %181 = tpu.concatenate %178, %179, %180 in 2 : vector<2x8x128xf32>, vector<2x8x128xf32>, vector<2x8x128xf32> -> vector<2x8x384xf32>
    %182 = vector.shape_cast %181 : vector<2x8x384xf32> to vector<16x384xf32>
    %183 = arith.truncf %182 : vector<16x384xf32> to vector<16x384xbf16>
    %c1_76 = arith.constant 1 : index
    %c0_77 = arith.constant 0 : index
    %c0_78 = arith.constant 0 : index
    %184 = vector.load %arg14[%c1_76, %c0_77, %c0_78] : memref<2x384x256xbf16, #tpu.memory_space<vmem>>, vector<1x384x256xbf16>
    %185 = vector.shape_cast %184 : vector<1x384x256xbf16> to vector<384x256xbf16>
    %cst_79 = arith.constant dense<0.000000e+00> : vector<16x256xf32>
    %186 = tpu.matmul %183, %185, %cst_79 {dimension_numbers = #tpu.dot_dimension_numbers<[1], [0], [0], [1], [0, 0, 1, 1], [], []>} : vector<16x384xbf16>, vector<384x256xbf16>, vector<16x256xf32> -> vector<16x256xf32>
    %c1_80 = arith.constant 1 : index
    %c0_81 = arith.constant 0 : index
    %c0_82 = arith.constant 0 : index
    %187 = vector.load %arg15[%c1_80, %c0_81, %c0_82] : memref<2x1x256xf32, #tpu.memory_space<vmem>>, vector<1x1x256xf32>
    %188 = vector.shape_cast %187 : vector<1x1x256xf32> to vector<1x256xf32>
    %189 = vector.broadcast %188 : vector<1x256xf32> to vector<16x256xf32>
    %190 = arith.addf %186, %189 : vector<16x256xf32>
    %191 = vector.extract_strided_slice %190 {offsets = [0, 0], sizes = [16, 128], strides = [1, 1]} : vector<16x256xf32> to vector<16x128xf32>
    %192 = vector.extract_strided_slice %190 {offsets = [0, 128], sizes = [16, 128], strides = [1, 1]} : vector<16x256xf32> to vector<16x128xf32>
    %193 = arith.negf %192 : vector<16x128xf32>
    %194 = math.exp %193 : vector<16x128xf32>
    %cst_83 = arith.constant 1.000000e+00 : f32
    %195 = vector.broadcast %cst_83 : f32 to vector<16x128xf32>
    %196 = arith.addf %195, %194 : vector<16x128xf32>
    %197 = arith.divf %195, %196 : vector<16x128xf32>
    %198 = arith.mulf %191, %197 : vector<16x128xf32>
    %199 = vector.shape_cast %198 : vector<16x128xf32> to vector<2x8x128xf32>
    %200 = vector.shape_cast %199 : vector<2x8x128xf32> to vector<16x128xf32>
    %201 = arith.truncf %200 : vector<16x128xf32> to vector<16x128xbf16>
    %c0_84 = arith.constant 0 : index
    %c0_85 = arith.constant 0 : index
    %202 = vector.load %arg16[%c0_84, %c0_85] : memref<128x128xbf16, #tpu.memory_space<vmem>>, vector<128x128xbf16>
    %cst_86 = arith.constant dense<0.000000e+00> : vector<16x128xf32>
    %203 = tpu.matmul %201, %202, %cst_86 {dimension_numbers = #tpu.dot_dimension_numbers<[1], [0], [0], [1], [0, 0, 1, 1], [], []>} : vector<16x128xbf16>, vector<128x128xbf16>, vector<16x128xf32> -> vector<16x128xf32>
    %c0_87 = arith.constant 0 : index
    %c0_88 = arith.constant 0 : index
    %204 = vector.load %arg17[%c0_87, %c0_88] : memref<1x128xf32, #tpu.memory_space<vmem>>, vector<1x128xf32>
    %205 = vector.broadcast %204 : vector<1x128xf32> to vector<16x128xf32>
    %206 = arith.addf %203, %205 : vector<16x128xf32>
    %207 = vector.shape_cast %206 : vector<16x128xf32> to vector<2x8x128xf32>
    %208 = arith.addf %207, %104 : vector<2x8x128xf32>
    %cst_89 = arith.constant 0.707106769 : f32
    %209 = vector.broadcast %cst_89 : f32 to vector<2x8x128xf32>
    %210 = arith.mulf %208, %209 : vector<2x8x128xf32>
    %211 = arith.truncf %210 : vector<2x8x128xf32> to vector<2x8x128xbf16>
    "tpu.trace_start"() <{level = 10 : i32, message = "bte,bse->bts"}> : () -> ()
    %cst_90 = arith.constant dense<0.000000e+00> : vector<2x8x8xf32>
    %212 = tpu.matmul %211, %89, %cst_90 {dimension_numbers = #tpu.dot_dimension_numbers<[2], [2], [1], [1], [0, 0, 0, 1, 1, 1], [0], [0]>} : vector<2x8x128xbf16>, vector<2x8x128xbf16>, vector<2x8x8xf32> -> vector<2x8x8xf32>
    "tpu.trace_stop"() : () -> ()
    %cst_91 = arith.constant dense<0xFF800000> : vector<2x8xf32>
    %213 = vector.multi_reduction <maximumf>, %212, %cst_91 [2] : vector<2x8x8xf32> to vector<2x8xf32>
    %214 = vector.shape_cast %213 : vector<2x8xf32> to vector<2x8x1xf32>
    %215 = vector.broadcast %214 : vector<2x8x1xf32> to vector<2x8x8xf32>
    %216 = arith.subf %212, %215 : vector<2x8x8xf32>
    %217 = math.exp %216 : vector<2x8x8xf32>
    %cst_92 = arith.constant dense<0.000000e+00> : vector<2x8xf32>
    %218 = vector.multi_reduction <add>, %217, %cst_92 [2] : vector<2x8x8xf32> to vector<2x8xf32>
    %219 = vector.shape_cast %218 : vector<2x8xf32> to vector<2x8x1xf32>
    %220 = tpu.reciprocal %219 {approx = true} : vector<2x8x1xf32> -> vector<2x8x1xf32>
    %221 = vector.broadcast %220 : vector<2x8x1xf32> to vector<2x8x8xf32>
    %222 = arith.mulf %217, %221 : vector<2x8x8xf32>
    %223 = arith.truncf %222 : vector<2x8x8xf32> to vector<2x8x8xbf16>
    "tpu.trace_start"() <{level = 10 : i32, message = "bts,bse->bte"}> : () -> ()
    %cst_93 = arith.constant dense<0.000000e+00> : vector<2x8x128xf32>
    %224 = tpu.matmul %223, %90, %cst_93 {dimension_numbers = #tpu.dot_dimension_numbers<[2], [1], [1], [2], [0, 0, 0, 1, 1, 2], [0], [0]>} : vector<2x8x8xbf16>, vector<2x8x128xbf16>, vector<2x8x128xf32> -> vector<2x8x128xf32>
    "tpu.trace_stop"() : () -> ()
    %225 = vector.shape_cast %224 : vector<2x8x128xf32> to vector<16x128xf32>
    %226 = arith.truncf %225 : vector<16x128xf32> to vector<16x128xbf16>
    %c0_94 = arith.constant 0 : index
    %c0_95 = arith.constant 0 : index
    %227 = vector.load %arg18[%c0_94, %c0_95] : memref<128x128xbf16, #tpu.memory_space<vmem>>, vector<128x128xbf16>
    %cst_96 = arith.constant dense<0.000000e+00> : vector<16x128xf32>
    %228 = tpu.matmul %226, %227, %cst_96 {dimension_numbers = #tpu.dot_dimension_numbers<[1], [0], [0], [1], [0, 0, 1, 1], [], []>} : vector<16x128xbf16>, vector<128x128xbf16>, vector<16x128xf32> -> vector<16x128xf32>
    %c0_97 = arith.constant 0 : index
    %c0_98 = arith.constant 0 : index
    %229 = vector.load %arg19[%c0_97, %c0_98] : memref<1x128xf32, #tpu.memory_space<vmem>>, vector<1x128xf32>
    %230 = vector.broadcast %229 : vector<1x128xf32> to vector<16x128xf32>
    %231 = arith.addf %228, %230 : vector<16x128xf32>
    %232 = vector.shape_cast %231 : vector<16x128xf32> to vector<2x8x128xf32>
    %233 = arith.addf %199, %232 : vector<2x8x128xf32>
    %cst_99 = arith.constant 0.707106769 : f32
    %234 = vector.broadcast %cst_99 : f32 to vector<2x8x128xf32>
    %235 = arith.mulf %233, %234 : vector<2x8x128xf32>
    %236 = arith.addf %235, %175 : vector<2x8x128xf32>
    %cst_100 = arith.constant 0.707106769 : f32
    %237 = vector.broadcast %cst_100 : f32 to vector<2x8x128xf32>
    %238 = arith.mulf %236, %237 : vector<2x8x128xf32>
    %239 = vector.shape_cast %238 : vector<2x8x128xf32> to vector<16x128xf32>
    %240 = arith.truncf %239 : vector<16x128xf32> to vector<16x128xbf16>
    %c0_101 = arith.constant 0 : index
    %c0_102 = arith.constant 0 : index
    %241 = vector.load %arg20[%c0_101, %c0_102] : memref<128x128xbf16, #tpu.memory_space<vmem>>, vector<128x128xbf16>
    %cst_103 = arith.constant dense<0.000000e+00> : vector<16x128xf32>
    %242 = tpu.matmul %240, %241, %cst_103 {dimension_numbers = #tpu.dot_dimension_numbers<[1], [0], [0], [1], [0, 0, 1, 1], [], []>} : vector<16x128xbf16>, vector<128x128xbf16>, vector<16x128xf32> -> vector<16x128xf32>
    %c0_104 = arith.constant 0 : index
    %c0_105 = arith.constant 0 : index
    %243 = vector.load %arg21[%c0_104, %c0_105] : memref<1x128xf32, #tpu.memory_space<vmem>>, vector<1x128xf32>
    %244 = vector.broadcast %243 : vector<1x128xf32> to vector<16x128xf32>
    %245 = arith.addf %242, %244 : vector<16x128xf32>
    %c0_106 = arith.constant 0 : index
    %c0_107 = arith.constant 0 : index
    %246 = vector.load %arg22[%c0_106, %c0_107] : memref<16x128xf32, #tpu.memory_space<vmem>>, vector<16x128xf32>
    tpu.vector_store %arg22[%c0_106, %c0_107], %245 {strides = array<i32>} : memref<16x128xf32, #tpu.memory_space<vmem>>, vector<16x128xf32>,
    %c0_108 = arith.constant 0 : index
    %c0_109 = arith.constant 0 : index
    %c0_110 = arith.constant 0 : index
    %247 = vector.load %arg23[%c0_108, %c0_109, %c0_110] : memref<2x8x8xf32, #tpu.memory_space<vmem>>, vector<2x8x8xf32>
    tpu.vector_store %arg23[%c0_108, %c0_109, %c0_110], %222 {strides = array<i32>} : memref<2x8x8xf32, #tpu.memory_space<vmem>>, vector<2x8x8xf32>,
    return
  }
}

</mosaic_0001>

<bundles_post_ra>
// kernel: seq2seq_forward.1
= control target key start
LH: loop header
LB: loop body
LE: loop exit
PB: predicated region body
PF: predicated region fallthrough
CT: control target
= control target key end

     0   :  { %s5392_s0 = inlined_call_operand.vmem [shape: s32[16,1], index: 0, kind: input, shape index: {}]   ;;  %s5393_s1 = inlined_call_operand.vmem [shape: s32[16,1], index: 1, kind: input, shape index: {}]   ;;  %s5394_s2 = inlined_call_operand.vmem [shape: f32[32,128], index: 2, kind: input, shape index: {}]   ;;  %s5395_s3 = inlined_call_operand.hbm [shape: f32[16,128], index: 3, kind: input, shape index: {}]   ;;  %s5396_s4 = inlined_call_operand.hbm [shape: bf16[128,128], index: 4, kind: input, shape index: {}]   ;;  %s5397_s5 = inlined_call_operand.vmem [shape: f32[1,128], index: 5, kind: input, shape index: {}]   ;;  %s5398_s6 = inlined_call_operand.hbm [shape: bf16[2,384,256], index: 6, kind: input, shape index: {}]   ;;  %s5399_s7 = inlined_call_operand.hbm [shape: f32[2,1,256], index: 7, kind: input, shape index: {}]   ;;  %s5400_s8 = inlined_call_operand.hbm [shape: bf16[128,128], index: 8, kind: input, shape index: {}]   ;;  %s5401_s9 = inlined_call_operand.vmem [shape: f32[1,128], index: 9, kind: input, shape index: {}]   ;;  %s5402_s10 = inlined_call_operand.hbm [shape: f32[32,128], index: 10, kind: input, shape index: {}]   ;;  %s5403_s11 = inlined_call_operand.hbm [shape: f32[16,128], index: 11, kind: input, shape index: {}]   ;;  %s5404_s12 = inlined_call_operand.hbm [shape: bf16[128,128], index: 12, kind: input, shape index: {}]   ;;  %s5405_s13 = inlined_call_operand.vmem [shape: f32[1,128], index: 13, kind: input, shape index: {}]   ;;  %s5406_s14 = inlined_call_operand.hbm [shape: bf16[2,384,256], index: 14, kind: input, shape index: {}]   ;;  %s5407_s15 = inlined_call_operand.vmem [shape: f32[2,1,256], index: 15, kind: input, shape index: {}]   ;;  %s5408_s16 = inlined_call_operand.hbm [shape: bf16[128,128], index: 16, kind: input, shape index: {}]   ;;  %s5409_s17 = inlined_call_operand.vmem [shape: f32[1,128], index: 17, kind: input, shape index: {}]   ;;  %s5410_s18 = inlined_call_operand.hbm [shape: bf16[128,128], index: 18, kind: input, shape index: {}]   ;;  %s5411_s19 = inlined_call_operand.vmem [shape: f32[1,128], index: 19, kind: input, shape index: {}]   ;;  %s5412_s20 = inlined_call_operand.hbm [shape: bf16[128,128], index: 20, kind: input, shape index: {}]   ;;  %s5413_s21 = inlined_call_operand.vmem [shape: f32[1,128], index: 21, kind: input, shape index: {}]   ;;  %s5414_s22 = inlined_call_operand.hbm [shape: f32[16,128], index: 22, kind: output, shape index: {0}]   ;;  %s5415_s23 = inlined_call_operand.hbm [shape: f32[2,8,8], index: 23, kind: output, shape index: {1}]  }
   0x1   :  { %5419 = sst [smem:[#allocation34_spill]] %s5392_s0 }
   0x2   :  { %5420 = sst [smem:[#allocation35_spill]] %s5393_s1 }
   0x3   :  { %5421 = sst [smem:[#allocation36_spill]] %s5394_s2 }
   0x4   :  { %5422 = sst [smem:[#allocation37_spill]] %s5395_s3 }
   0x5   :  { %5423 = sst [smem:[#allocation38_spill]] %s5396_s4 }
   0x6   :  { %5424 = sst [smem:[#allocation39_spill]] %s5397_s5 }
   0x7   :  { %5425 = sst [smem:[#allocation40_spill]] %s5398_s6 }
   0x8   :  { %5426 = sst [smem:[#allocation41_spill]] %s5399_s7 }
   0x9   :  { %5427 = sst [smem:[#allocation42_spill]] %s5413_s21 }
   0xa   :  { %5428 = sst [smem:[#allocation43_spill]] %s5414_s22 }
   0xb   :  { %29 = vsyncpa [#allocation3], 0 }
   0xc   :  { %30 = vsyncpa [#allocation6], 0 }
   0xd   :  { %31 = vsyncpa [#allocation9], 0 }
   0xe   :  { %32 = vsyncpa [#allocation12], 0 }
   0xf   :  { %33 = vsyncpa [#allocation15], 0 }
  0x10   :  { %34 = vsyncpa [#allocation18], 0 }
  0x11   :  { %35 = vsyncpa [#allocation21], 0 }
  0x12   :  { %36 = vsyncpa [#allocation4], 0  ;;  %s5429_s24 = sld [smem:[#allocation38_spill]] }
  0x18   :  { %s61_s25 = sshll.u32 %s5429_s24, 4  ;;  %s62_s25 = int_to_ptr.hbm [resolvable:$true] %s61_s25 }
  0x19   :  { %37 = vsyncpa [#allocation24], 0  ;;  %s4872_s5 = smov [#allocation5]   ;;  %s5430_s6 = sld [smem:[#allocation41_spill]] }
  0x1a   :  { %s63_s1 = sshll.u32 %s4872_s5, 4  ;;  %s4873_s7 = smov 64   ;;  %s64_s1 = int_to_ptr.vmem [resolvable:$true] %s63_s1 }
  0x1b   :  { %s4874_s28 = smov 4   ;;  %s4875_s29 = smov [#allocation8]  }
  0x1c   :  { %69 = dma.hbm_to_vmem [thread:$0]  %s62_s25, 1024, %s64_s1, [#allocation6], %s4873_s7, %s4873_s7, %s4874_s28  }
  0x1d   :  { %s91_s3 = sshll.u32 %s4875_s29, 4  ;;  %s4876_s0 = smov 32   ;;  %s92_s3 = int_to_ptr.vmem [resolvable:$true] %s91_s3 }
  0x1e   :  { %s4877_s4 = smov 2   ;;  %s117_s5 = sshll.u32 %s5402_s10, 4  ;;  %s118_s5 = int_to_ptr.hbm [resolvable:$true] %s117_s5 }
  0x1f   :  { %s89_s27 = sshll.u32 %s5430_s6, 4  ;;  %s4878_s26 = smov [#allocation11]   ;;  %s90_s27 = int_to_ptr.hbm [resolvable:$true] %s89_s27 }
  0x20   :  { %97 = dma.hbm_to_vmem [thread:$0]  %s90_s27, 64, %s92_s3, [#allocation9], %s4876_s0, %s4876_s0, %s4877_s4  }
  0x21   :  { %s119_s2 = sshll.u32 %s4878_s26, 4  ;;  %s143_s21 = sshll.u32 %s5404_s12, 4  ;;  %s120_s2 = int_to_ptr.vmem [resolvable:$true] %s119_s2  ;;  %s144_s21 = int_to_ptr.hbm [resolvable:$true] %s143_s21 }
  0x22   :  { %s4879_s25 = smov 128   ;;  %s4880_s1 = smov 8  }
  0x23   :  { %125 = dma.hbm_to_vmem [thread:$0]  %s118_s5, 512, %s120_s2, [#allocation12], %s4879_s25, %s4879_s25, %s4880_s1  }
  0x24   :  { %s4881_s27 = smov [#allocation14]   ;;  %s173_s10 = sshll.u32 %s5408_s16, 4  ;;  %s174_s10 = int_to_ptr.hbm [resolvable:$true] %s173_s10 }
  0x25   :  { %s145_s29 = sshll.u32 %s4881_s27, 4  ;;  %s5431_s4 = sld [smem:[#allocation37_spill]]  ;;  %s146_s29 = int_to_ptr.vmem [resolvable:$true] %s145_s29 }
  0x26   :  { %151 = dma.hbm_to_vmem [thread:$0]  %s144_s21, 1024, %s146_s29, [#allocation15], %s4873_s7, %s4873_s7, %s4874_s28  }
  0x27   :  { %s4882_s24 = smov [#allocation17]   ;;  %s4883_s5 = smov [#allocation2]  }
  0x28   :  { %s175_s26 = sshll.u32 %s4882_s24, 4  ;;  %s50_s16 = sshll.u32 %s4883_s5, 4  ;;  %s176_s26 = int_to_ptr.vmem [resolvable:$true] %s175_s26  ;;  %s51_s16 = int_to_ptr.vmem [resolvable:$true] %s50_s16 }
  0x29   :  { %181 = dma.hbm_to_vmem [thread:$0]  %s174_s10, 1024, %s176_s26, [#allocation18], %s4873_s7, %s4873_s7, %s4874_s28  }
  0x2a   :  { %s5432_s27 = sld [smem:[#allocation40_spill]]  ;;  %s102_s0 = sshll.u32 %s5400_s8, 4  ;;  %s103_s0 = int_to_ptr.hbm [resolvable:$true] %s102_s0 }
  0x2b   :  { %s48_s30 = sshll.u32 %s5431_s4, 4  ;;  %s4884_s12 = smov [#allocation7]   ;;  %s49_s30 = int_to_ptr.hbm [resolvable:$true] %s48_s30 }
  0x2c   :  { %56 = dma.hbm_to_vmem [thread:$0]  %s49_s30, 256, %s51_s16, [#allocation3], %s4879_s25, %s4879_s25, %s4880_s1  }
  0x2d   :  { %s78_s22 = sshll.u32 %s4884_s12, 4  ;;  %s4885_s10 = smov [#allocation10]   ;;  %s79_s22 = int_to_ptr.vmem [resolvable:$true] %s78_s22 }
  0x2e   :  { %s104_s4 = sshll.u32 %s4885_s10, 4  ;;  %s130_s5 = sshll.u32 %s5403_s11, 4  ;;  %s105_s4 = int_to_ptr.vmem [resolvable:$true] %s104_s4  ;;  %s131_s5 = int_to_ptr.hbm [resolvable:$true] %s130_s5 }
  0x2f   :  { %110 = dma.hbm_to_vmem [thread:$0]  %s103_s0, 1024, %s105_s4, [#allocation9], %s4873_s7, %s4873_s7, %s4874_s28  }
  0x30   :  { %s76_s3 = sshll.u32 %s5432_s27, 4  ;;  %s158_s16 = sshll.u32 %s5406_s14, 4  ;;  %s77_s3 = int_to_ptr.hbm [resolvable:$true] %s76_s3  ;;  %s159_s16 = int_to_ptr.hbm [resolvable:$true] %s158_s16 }
  0x31   :  { %84 = dma.hbm_to_vmem [thread:$0]  %s77_s3, 12288, %s79_s22, [#allocation6], %s4879_s25, %s4879_s25, %s4880_s1  }
  0x32   :  { %s4886_s2 = smov [#allocation13]   ;;  %s4887_s27 = smov [#allocation16]  }
  0x33   :  { %s132_s6 = sshll.u32 %s4886_s2, 4  ;;  %s160_s11 = sshll.u32 %s4887_s27, 4  ;;  %s133_s6 = int_to_ptr.vmem [resolvable:$true] %s132_s6  ;;  %s161_s11 = int_to_ptr.vmem [resolvable:$true] %s160_s11 }
  0x34   :  { %138 = dma.hbm_to_vmem [thread:$0]  %s131_s5, 256, %s133_s6, [#allocation12], %s4879_s25, %s4879_s25, %s4880_s1  }
  0x35   :  { %s188_s29 = sshll.u32 %s5410_s18, 4  ;;  %s203_s12 = sshll.u32 %s5412_s20, 4  ;;  %s189_s29 = int_to_ptr.hbm [resolvable:$true] %s188_s29  ;;  %s204_s12 = int_to_ptr.hbm [resolvable:$true] %s203_s12 }
  0x36   :  { %166 = dma.hbm_to_vmem [thread:$0]  %s159_s16, 12288, %s161_s11, [#allocation15], %s4879_s25, %s4879_s25, %s4880_s1  }
  0x37   :  { %s4888_s22 = smov [#allocation19]   ;;  %s4889_s4 = smov [#allocation20]  }
  0x38   :  { %s190_s10 = sshll.u32 %s4888_s22, 4  ;;  %s205_s18 = sshll.u32 %s4889_s4, 4  ;;  %s191_s10 = int_to_ptr.vmem [resolvable:$true] %s190_s10  ;;  %s206_s18 = int_to_ptr.vmem [resolvable:$true] %s205_s18 }
  0x39   :  { %196 = dma.hbm_to_vmem [thread:$0]  %s189_s29, 1024, %s191_s10, [#allocation18], %s4873_s7, %s4873_s7, %s4874_s28  }
  0x3a   :  { %211 = dma.hbm_to_vmem [thread:$0]  %s204_s12, 1024, %s206_s18, [#allocation21], %s4873_s7, %s4873_s7, %s4874_s28  }
  0x3b   :  { %4854 = dma.done.wait [#allocation3], 256  }
  0x3c   :  { %4855 = vsyncadd [#allocation3], 4294967040 }
  0x3d   :  { %4856 = dma.done.wait [#allocation6], 13312  }
  0x3e   :  { %4857 = vsyncadd [#allocation6], 4294953984 }
  0x3f   :  { %4858 = dma.done.wait [#allocation9], 1088  }
  0x40   :  { %4859 = vsyncadd [#allocation9], 4294966208 }
  0x41   :  { %4860 = dma.done.wait [#allocation12], 768  }
  0x42   :  { %4861 = vsyncadd [#allocation12], 4294966528 }
  0x43   :  { %4862 = dma.done.wait [#allocation15], 13312  }
  0x44   :  { %4863 = vsyncadd [#allocation15], 4294953984 }
  0x45   :  { %4864 = dma.done.wait [#allocation18], 2048  }
  0x46   :  { %4865 = vsyncadd [#allocation18], 4294965248 }
  0x47   :  { %4866 = dma.done.wait [#allocation21], 1024  }
  0x48   :  { %4867 = vsyncadd [#allocation21], 4294966272  ;;  %v4890_v0 = vmov 0   ;;  %s5433_s7 = sld [smem:[#allocation34_spill]]  ;;  %v4189_v7 = vld [vmem:[#allocation5 + $0x38] sm:$0xff]  ;;  %v4188_v8 = vld [vmem:[#allocation5 + $0x30] sm:$0xff]  ;;  %v265_v11 = vlaneseq }
  0x49   :  { %4460 = vset.pattern.permute.xlu0 %v4890_v0  ;;  %4461 = vset.pattern.permute.xlu1 %v4890_v0  ;;  %s5434_s5 = sld [smem:[#allocation36_spill]]  ;;  %v4187_v9 = vld [vmem:[#allocation5 + $0x28] sm:$0xff]  ;;  %v4186_v10 = vld [vmem:[#allocation5 + $0x20] sm:$0xff]  ;;  %v4185_v12 = vld [vmem:[#allocation5 + $0x18] sm:$0xff]  ;;  %vm283_vm0 = vcmask 261120   ;;  %v4891_v15 = vmov 0.0  }
  0x4a   :  { %385 = vmatpush.bf16.msra.mxu1 %v4189_v7  ;;  %v5101_v13 = vand.u32 127, %v265_v11  ;;  %v4184_v19 = vld [vmem:[#allocation5 + $0x10] sm:$0xff]  ;;  %v4183_v20 = vld [vmem:[#allocation5 + $0x8] sm:$0xff]  ;;  %v4182_v21 = vld [vmem:[#allocation5] sm:$0xff]  ;;  %s5435_s14 = sld [smem:[#allocation39_spill]]  ;;  %vm405_vm3 = vcmask 1040384  }
  0x4b   :  { %v3191_v22 = vld [vmem:[#allocation7 + $0x70] sm:$0xf]  ;;  %v4205_v23 = vld [vmem:[#allocation7 + $0x74] sm:$0xf0]  ;;  %v3183_v24 = vld [vmem:[#allocation7 + $0x60] sm:$0xf] }
  0x4c   :  { %v3192_v25 = vor.u32 %v4205_v23, %v3191_v22  ;;  %v4203_v26 = vld [vmem:[#allocation7 + $0x64] sm:$0xf0]  ;;  %v3255_v27 = vld [vmem:[#allocation7 + $0xf0] sm:$0xf]  ;;  %v4221_v28 = vld [vmem:[#allocation7 + $0xf4] sm:$0xf0] }
  0x4d   :  { %v3256_v29 = vor.u32 %v4221_v28, %v3255_v27  ;;  %v3247_v30 = vld [vmem:[#allocation7 + $0xe0] sm:$0xf]  ;;  %v3184_v31 = vor.u32 %v4203_v26, %v3183_v24  ;;  %v4219_v32 = vld [vmem:[#allocation7 + $0xe4] sm:$0xf0]  ;;  %v3175_v33 = vld [vmem:[#allocation7 + $0x50] sm:$0xf] }
  0x4e   :  { %v263_v1 = vld [vmem:[%s5433_s7] sm:$0xff]  ;;  %v264_v5 = vld [vmem:[%s5433_s7 + $0x8] sm:$0xff]  ;;  %386 = vmatpush.bf16.msra.mxu1 %v4188_v8  ;;  %729 = vmatpush.bf16.msra.mxu2 %v3192_v25  ;;  %v3248_v35 = vor.u32 %v4219_v32, %v3247_v30  ;;  %v4202_v44 = vld [vmem:[#allocation7 + $0x64] sm:$0xf]  ;;  %s5436_s22 = sld [smem:[#allocation35_spill]]  ;;  %vm414_vm5 = vcmask 1046528  }
  0x4f   :  { %v282_v2 = vld [vmem:[%s5434_s5 + $0x18] sm:$0xff]  ;;  %268 = vperm.xlu0 %4460, %v263_v1   ;;  %v281_v3 = vld [vmem:[%s5434_s5 + $0x10] sm:$0xff]  ;;  %v280_v4 = vld [vmem:[%s5434_s5 + $0x8] sm:$0xff]  ;;  %743 = vmatpush.bf16.msra.mxu3 %v3256_v29  ;;  %vm423_vm7 = vcmask 1045504   ;;  %s4892_s27 = smov [#allocation23]   ;;  %s3073_s21 = sshll.u32 %s5415_s23, 4  ;;  %s3074_s21 = int_to_ptr.hbm [resolvable:$true] %s3073_s21 }
  0x50   :  { %302 = vmatpush.msra.mxu0 %v282_v2  ;;  %v279_v6 = vld [vmem:[%s5434_s5] sm:$0xff]  ;;  %v4201_v34 = vld [vmem:[#allocation7 + $0x54] sm:$0xf0]  ;;  %v3193_v39 = vld [vmem:[#allocation7 + $0x78] sm:$0xf0]  ;;  %s5443_s0 = sld [smem:[#allocation42_spill]] }
  0x51   :  { %v4204_v36 = vld [vmem:[#allocation7 + $0x74] sm:$0xf]  ;;  %v3239_v37 = vld [vmem:[#allocation7 + $0xd0] sm:$0xf]  ;;  %v4217_v38 = vld [vmem:[#allocation7 + $0xd4] sm:$0xf0]  ;;  %v3176_v42 = vor.u32 %v4201_v34, %v3175_v33 }
  0x52   :  { %303 = vmatpush.msra.mxu0 %v281_v3  ;;  %387 = vmatpush.bf16.msra.mxu1 %v4187_v9  ;;  %v3196_v40 = vor.u32 %v4204_v36, %v3193_v39  ;;  %v3319_v41 = vld [vmem:[#allocation7 + $0x170] sm:$0xf]  ;;  %v4237_v43 = vld [vmem:[#allocation7 + $0x174] sm:$0xf0]  ;;  %v3185_v45 = vld [vmem:[#allocation7 + $0x68] sm:$0xf0]  ;;  %v3240_v48 = vor.u32 %v4217_v38, %v3239_v37 }
  0x53   :  { %730 = vmatpush.bf16.msra.mxu2 %v3184_v31  ;;  %744 = vmatpush.bf16.msra.mxu3 %v3248_v35  ;;  %v3167_v46 = vld [vmem:[#allocation7 + $0x40] sm:$0xf]  ;;  %v4199_v47 = vld [vmem:[#allocation7 + $0x44] sm:$0xf0]  ;;  %v3320_v50 = vor.u32 %v4237_v43, %v3319_v41  ;;  %v3188_v51 = vor.u32 %v4202_v44, %v3185_v45  ;;  %v4200_v56 = vld [vmem:[#allocation7 + $0x54] sm:$0xf] }
  0x54   :  { %304 = vmatpush.msra.mxu0 %v280_v4  ;;  %v3231_v49 = vld [vmem:[#allocation7 + $0xc0] sm:$0xf]  ;;  %v4215_v52 = vld [vmem:[#allocation7 + $0xc4] sm:$0xf0]  ;;  %v3177_v57 = vld [vmem:[#allocation7 + $0x58] sm:$0xf0]  ;;  %v3168_v58 = vor.u32 %v4199_v47, %v3167_v46 }
  0x55   :  { %v3311_v53 = vld [vmem:[#allocation7 + $0x160] sm:$0xf]  ;;  %v4235_v54 = vld [vmem:[#allocation7 + $0x164] sm:$0xf0]  ;;  %v3159_v59 = vld [vmem:[#allocation7 + $0x30] sm:$0xf]  ;;  %v3232_v61 = vor.u32 %v4215_v52, %v3231_v49  ;;  %v3180_v63 = vor.u32 %v4200_v56, %v3177_v57 }
  0x56   :  { %305 = vmatpush.msra.mxu0 %v279_v6  ;;  %388 = vmatpush.bf16.msra.mxu1 %v4186_v10  ;;  %v3312_v55 = vor.u32 %v4235_v54, %v3311_v53  ;;  %v4197_v60 = vld [vmem:[#allocation7 + $0x34] sm:$0xf0]  ;;  %v3223_v62 = vld [vmem:[#allocation7 + $0xb0] sm:$0xf]  ;;  %v4198_v3 = vld [vmem:[#allocation7 + $0x44] sm:$0xf] }
  0x57   :  { %271 = vperm.xlu0 %4460, %v264_v5   ;;  %731 = vmatpush.bf16.msra.mxu2 %v3176_v42  ;;  %v3303_v0 = vld [vmem:[#allocation7 + $0x150] sm:$0xf]  ;;  %v4233_v1 = vld [vmem:[#allocation7 + $0x154] sm:$0xf0]  ;;  %v3169_v4 = vld [vmem:[#allocation7 + $0x48] sm:$0xf0]  ;;  %v3160_v6 = vor.u32 %v4197_v60, %v3159_v59 }
  0x58   :  { %757 = vmatpush.bf16.msrb.mxu0 %v3320_v50  ;;  %745 = vmatpush.bf16.msra.mxu3 %v3240_v48  ;;  %v4213_v2 = vld [vmem:[#allocation7 + $0xb4] sm:$0xf0]  ;;  %v3304_v5 = vor.u32 %v4233_v1, %v3303_v0  ;;  %v3151_v7 = vld [vmem:[#allocation7 + $0x20] sm:$0xf]  ;;  %v4195_v8 = vld [vmem:[#allocation7 + $0x24] sm:$0xf0]  ;;  %v3172_v10 = vor.u32 %v4198_v3, %v3169_v4 }
  0x59   :  { %v3224_v9 = vor.u32 %v4213_v2, %v3223_v62  ;;  %v3215_v11 = vld [vmem:[#allocation7 + $0xa0] sm:$0xf]  ;;  %v4191_v24 = vld [vmem:[#allocation7 + $0x4] sm:$0xf0]  ;;  %v313_v26 = vld [vmem:[#allocation2] sm:$0xff]  ;;  %s4893_s12 = smov [#allocation22]  }
  0x5a   :  { %389 = vmatpush.bf16.msra.mxu1 %v4185_v12  ;;  %v4211_v12 = vld [vmem:[#allocation7 + $0xa4] sm:$0xf0]  ;;  %v3135_v23 = vld [vmem:[#allocation7] sm:$0xf]  ;;  %v4196_v34 = vld [vmem:[#allocation7 + $0x34] sm:$0xf] }
  0x5b   :  { %732 = vmatpush.bf16.msra.mxu2 %v3168_v58  ;;  %v3136_v28 = vor.u32 %v4191_v24, %v3135_v23  ;;  %v3295_v32 = vld [vmem:[#allocation7 + $0x140] sm:$0xf]  ;;  %v4231_v33 = vld [vmem:[#allocation7 + $0x144] sm:$0xf0]  ;;  %v3161_v36 = vld [vmem:[#allocation7 + $0x38] sm:$0xf0] }
  0x5c   :  { %758 = vmatpush.bf16.msrb.mxu0 %v3312_v55  ;;  %746 = vmatpush.bf16.msra.mxu3 %v3232_v61  ;;  %v3296_v35 = vor.u32 %v4231_v33, %v3295_v32  ;;  %v4220_v37 = vld [vmem:[#allocation7 + $0xf4] sm:$0xf]  ;;  %v3257_v38 = vld [vmem:[#allocation7 + $0xf8] sm:$0xf0]  ;;  %v3164_v39 = vor.u32 %v4196_v34, %v3161_v36  ;;  %v3199_v41 = vld [vmem:[#allocation7 + $0x80] sm:$0xf] }
  0x5d   :  { %v4207_v42 = vld [vmem:[#allocation7 + $0x84] sm:$0xf0]  ;;  %v3287_v44 = vld [vmem:[#allocation7 + $0x130] sm:$0xf]  ;;  %v4229_v45 = vld [vmem:[#allocation7 + $0x134] sm:$0xf0] }
  0x5e   :  { %390 = vmatpush.bf16.msra.mxu1 %v4184_v19  ;;  %v3216_v19 = vor.u32 %v4211_v12, %v3215_v11  ;;  %v3200_v43 = vor.u32 %v4207_v42, %v3199_v41  ;;  %v4194_v46 = vld [vmem:[#allocation7 + $0x24] sm:$0xf]  ;;  %v3288_v47 = vor.u32 %v4229_v45, %v3287_v44  ;;  %v3153_v48 = vld [vmem:[#allocation7 + $0x28] sm:$0xf0]  ;;  %v4236_v53 = vld [vmem:[#allocation7 + $0x174] sm:$0xf] }
  0x5f   :  { %733 = vmatpush.bf16.msra.mxu2 %v3160_v6  ;;  %v4218_v49 = vld [vmem:[#allocation7 + $0xe4] sm:$0xf]  ;;  %v3249_v50 = vld [vmem:[#allocation7 + $0xe8] sm:$0xf0]  ;;  %v3321_v54 = vld [vmem:[#allocation7 + $0x178] sm:$0xf0] }
  0x60   :  { %759 = vmatpush.bf16.msrb.mxu0 %v3304_v5  ;;  %747 = vmatpush.bf16.msra.mxu3 %v3224_v9  ;;  %v3252_v52 = vor.u32 %v4218_v49, %v3249_v50  ;;  %v3324_v55 = vor.u32 %v4236_v53, %v3321_v54  ;;  %v3279_v56 = vld [vmem:[#allocation7 + $0x120] sm:$0xf]  ;;  %v4227_v57 = vld [vmem:[#allocation7 + $0x124] sm:$0xf0]  ;;  %v4192_v58 = vld [vmem:[#allocation7 + $0x14] sm:$0xf] }
  0x61   :  { %v3280_v59 = vor.u32 %v4227_v57, %v3279_v56  ;;  %v3145_v60 = vld [vmem:[#allocation7 + $0x18] sm:$0xf0]  ;;  %v4216_v61 = vld [vmem:[#allocation7 + $0xd4] sm:$0xf]  ;;  %v4234_v1 = vld [vmem:[#allocation7 + $0x164] sm:$0xf] }
  0x62   :  { %391 = vmatpush.bf16.msra.mxu1 %v4183_v20  ;;  %v3207_v20 = vld [vmem:[#allocation7 + $0x90] sm:$0xf]  ;;  %v3241_v62 = vld [vmem:[#allocation7 + $0xd8] sm:$0xf0]  ;;  %v3313_v2 = vld [vmem:[#allocation7 + $0x168] sm:$0xf0] }
  0x63   :  { %v3244_v0 = vor.u32 %v4216_v61, %v3241_v62  ;;  %v3316_v3 = vor.u32 %v4234_v1, %v3313_v2  ;;  %v3271_v4 = vld [vmem:[#allocation7 + $0x110] sm:$0xf]  ;;  %v4225_v5 = vld [vmem:[#allocation7 + $0x114] sm:$0xf0]  ;;  %v4190_v6 = vld [vmem:[#allocation7 + $0x4] sm:$0xf] }
  0x64   :  { %748 = vmatpush.bf16.msra.mxu3 %v3216_v19  ;;  %760 = vmatpush.bf16.msrb.mxu0 %v3296_v35  ;;  %v4214_v9 = vld [vmem:[#allocation7 + $0xc4] sm:$0xf]  ;;  %v4223_v19 = vld [vmem:[#allocation7 + $0x104] sm:$0xf0]  ;;  %v3289_v33 = vld [vmem:[#allocation7 + $0x138] sm:$0xf0] }
  0x65   :  { %v4230_v24 = vld [vmem:[#allocation7 + $0x144] sm:$0xf]  ;;  %v4208_v35 = vld [vmem:[#allocation7 + $0x94] sm:$0xf]  ;;  %v3209_v36 = vld [vmem:[#allocation7 + $0x98] sm:$0xf0] }
  0x66   :  { %392 = vmatpush.bf16.msra.mxu1 %v4182_v21  ;;  %v4209_v21 = vld [vmem:[#allocation7 + $0x94] sm:$0xf0]  ;;  %v4206_v41 = vld [vmem:[#allocation7 + $0x84] sm:$0xf]  ;;  %v3201_v42 = vld [vmem:[#allocation7 + $0x88] sm:$0xf0] }
  0x67   :  { %v3208_v25 = vor.u32 %v4209_v21, %v3207_v20  ;;  %v4212_v21 = vld [vmem:[#allocation7 + $0xb4] sm:$0xf]  ;;  %v3273_v44 = vld [vmem:[#allocation7 + $0x118] sm:$0xf0]  ;;  %v3204_v45 = vor.u32 %v4206_v41, %v3201_v42  ;;  %v3265_v49 = vld [vmem:[#allocation7 + $0x108] sm:$0xf0] }
  0x68   :  { %761 = vmatpush.bf16.msrb.mxu0 %v3288_v47  ;;  %v4462_v47 = vld [vmem:[%s5435_s14] ss:$0 sm:$0xff]  ;;  %vm3325_vm4 = vmneg %vm405_vm3  ;;  %v3397_v41 = vld [vmem:[#allocation7 + $0x1f8] sm:$0xf0]  ;;  %s5444_s18 = sld [smem:[#allocation43_spill]] }
  0x69   :  { %749 = vmatpush.bf16.msra.mxu3 %v3208_v25  ;;  %v3297_v25 = vld [vmem:[#allocation7 + $0x148] sm:$0xf0]  ;;  %v1405_v53 = vld [vmem:[%s5436_s22] sm:$0xff]  ;;  %vm5133_vm6 = vmpackc.low %vm3325_vm4, %vm3325_vm4 }
  0x6a   :  { %771 = vmatpush.bf16.msrb.mxu1 %v3196_v40  ;;  %v3260_v40 = vor.u32 %v4220_v37, %v3257_v38  ;;  %v4226_v37 = vld [vmem:[#allocation7 + $0x124] sm:$0xf]  ;;  %v3281_v38 = vld [vmem:[#allocation7 + $0x128] sm:$0xf0]  ;;  %1408 = vperm.xlu1 %4461, %v1405_v53  }
  0x6c   :  { %762 = vmatpush.bf16.msrb.mxu0 %v3280_v59  ;;  %v1406_v59 = vld [vmem:[%s5436_s22 + $0x8] sm:$0xff]  ;;  %s3058_s22 = sshll.u32 %s4893_s12, 4  ;;  %s3059_s22 = int_to_ptr.vmem [resolvable:$true] %s3058_s22 }
  0x6d   :  { %750 = vmatpush.bf16.msra.mxu3 %v3200_v43  ;;  %v4224_v43 = vld [vmem:[#allocation7 + $0x114] sm:$0xf] }
  0x6e   :  { %772 = vmatpush.bf16.msrb.mxu1 %v3188_v51  ;;  %v3156_v51 = vor.u32 %v4194_v46, %v3153_v48  ;;  %v3276_v46 = vor.u32 %v4224_v43, %v3273_v44  ;;  %v4222_v48 = vld [vmem:[#allocation7 + $0x104] sm:$0xf]  ;;  %s3060_s20 = sshll.u32 %s5444_s18, 4  ;;  %s3061_s20 = int_to_ptr.hbm [resolvable:$true] %s3060_s20 }
  0x6f   :  { %v3268_v50 = vor.u32 %v4222_v48, %v3265_v49  ;;  %v4263_v49 = vld [vmem:[#allocation7 + $0x244] sm:$0xf0] }
  0x71   :  { %799 = vmatpush.bf16.msrb.mxu3 %v3324_v55 }
  0x72   :  { %773 = vmatpush.bf16.msrb.mxu1 %v3180_v63  ;;  %v3148_v63 = vor.u32 %v4192_v58, %v3145_v60  ;;  %1411 = vperm.xlu1 %4461, %v1406_v59   ;;  %v5153_v59 = vld [vmem:[#allocation8] sm:$0x3] }
  0x75   :  { %800 = vmatpush.bf16.msrb.mxu3 %v3316_v3 }
  0x76   :  { %774 = vmatpush.bf16.msrb.mxu1 %v3172_v10  ;;  %v3233_v10 = vld [vmem:[#allocation7 + $0xc8] sm:$0xf0] }
  0x77   :  { %v3236_v12 = vor.u32 %v4214_v9, %v3233_v10 }
  0x7a   :  { %775 = vmatpush.bf16.msrb.mxu1 %v3164_v39  ;;  %v3212_v39 = vor.u32 %v4208_v35, %v3209_v36  ;;  %v3371_v35 = vld [vmem:[#allocation7 + $0x1c0] sm:$0xf]  ;;  %v4247_v36 = vld [vmem:[#allocation7 + $0x1c4] sm:$0xf0] }
  0x7e   :  { %776 = vmatpush.bf16.msrb.mxu1 %v3156_v51 }
  0x82   :  { %777 = vmatpush.bf16.msrb.mxu1 %v3148_v63 }
  0xc1   :  { %v269_v14 = vpop.permute.xlu0 %268 }
  0xc2   :  { %vm273_vm1 = vcmp.eq.s32.totalorder %v269_v14, %v5101_v13 }
  0xc3   :  { %v3097_v16 = vsel %vm273_vm1, 1.0, %v4891_v15 }
  0xc4   :  { %3099 = vmatmul.msk.f32.vlgmr.msra.gmra.mxu0 %vm283_vm0, %v3097_v16  ;;  %v3152_v16 = vor.u32 %v4195_v8, %v3151_v7  ;;  %v3272_v7 = vor.u32 %v4225_v5, %v3271_v4  ;;  %v3137_v8 = vld [vmem:[#allocation7 + $0x8] sm:$0xf0] }
  0xc5   :  { %v3140_v11 = vor.u32 %v4190_v6, %v3137_v8 }
  0xc6   :  { %734 = vmatpush.bf16.msra.mxu2 %v3152_v16  ;;  %v3305_v16 = vld [vmem:[#allocation7 + $0x158] sm:$0xf0]  ;;  %763 = vmatpush.bf16.msrb.mxu0 %v3272_v7 }
  0xc7   :  { %778 = vmatpush.bf16.msrb.mxu1 %v3140_v11 }
  0xc9   :  { %v272_v17 = vpop.permute.xlu0 %271 }
  0xca   :  { %vm274_vm2 = vcmp.eq.s32.totalorder %v272_v17, %v5101_v13  ;;  %v3143_v17 = vld [vmem:[#allocation7 + $0x10] sm:$0xf] }
  0xcb   :  { %v3098_v18 = vsel %vm274_vm2, 1.0, %v4891_v15 }
  0xcc   :  { %3100 = vmatmul.msk.f32.gmra.mxu0 %vm283_vm0, %v3098_v18  ;;  %v4193_v18 = vld [vmem:[#allocation7 + $0x14] sm:$0xf0] }
  0xcd   :  { %v3144_v22 = vor.u32 %v4193_v18, %v3143_v17  ;;  %v3263_v18 = vld [vmem:[#allocation7 + $0x100] sm:$0xf] }
  0xce   :  { %v3264_v20 = vor.u32 %v4223_v19, %v3263_v18  ;;  %v4253_v18 = vld [vmem:[#allocation7 + $0x1f4] sm:$0xf0] }
  0xcf   :  { %735 = vmatpush.bf16.msra.mxu2 %v3144_v22  ;;  %v3225_v22 = vld [vmem:[#allocation7 + $0xb8] sm:$0xf0] }
  0xd0   :  { %v3228_v23 = vor.u32 %v4212_v21, %v3225_v22  ;;  %764 = vmatpush.bf16.msrb.mxu0 %v3264_v20  ;;  %v3387_v20 = vld [vmem:[#allocation7 + $0x1e0] sm:$0xf]  ;;  %v4251_v21 = vld [vmem:[#allocation7 + $0x1e4] sm:$0xf0]  ;;  %v3459_v22 = vld [vmem:[#allocation7 + $0x270] sm:$0xf] }
  0xd3   :  { %736 = vmatpush.bf16.msra.mxu2 %v3136_v28  ;;  %v3217_v28 = vld [vmem:[#allocation7 + $0xa8] sm:$0xf0] }
  0xd7   :  { %785 = vmatpush.bf16.msrb.mxu2 %v3260_v40  ;;  %v3284_v40 = vor.u32 %v4226_v37, %v3281_v38  ;;  %v3443_v37 = vld [vmem:[#allocation7 + $0x250] sm:$0xf]  ;;  %v3372_v38 = vor.u32 %v4247_v36, %v3371_v35 }
  0xdb   :  { %786 = vmatpush.bf16.msrb.mxu2 %v3252_v52 }
  0xdf   :  { %787 = vmatpush.bf16.msrb.mxu2 %v3244_v0 }
  0xe3   :  { %788 = vmatpush.bf16.msrb.mxu2 %v3236_v12 }
  0xe7   :  { %789 = vmatpush.bf16.msrb.mxu2 %v3228_v23  ;;  %v3388_v23 = vor.u32 %v4251_v21, %v3387_v20  ;;  %v3507_v20 = vld [vmem:[#allocation7 + $0x2d0] sm:$0xf]  ;;  %v4281_v21 = vld [vmem:[#allocation7 + $0x2d4] sm:$0xf0] }
 0x141   :  { %v307_v14 = vpop.f32.mrf.mxu0 }
 0x142   :  { %v5109_v29 = vadd.f32 %v313_v26, %v307_v14  ;;  %v4232_v14 = vld [vmem:[#allocation7 + $0x154] sm:$0xf] }
 0x143   :  { %v3308_v17 = vor.u32 %v4232_v14, %v3305_v16 }
 0x145   :  { %801 = vmatpush.bf16.msrb.mxu3 %v3308_v17  ;;  %v3395_v17 = vld [vmem:[#allocation7 + $0x1f0] sm:$0xf] }
 0x146   :  { %v3396_v19 = vor.u32 %v4253_v18, %v3395_v17  ;;  %v3419_v17 = vld [vmem:[#allocation7 + $0x220] sm:$0xf] }
 0x148   :  { %1186 = vmatpush.bf16.msra.mxu0 %v3396_v19  ;;  %v4259_v19 = vld [vmem:[#allocation7 + $0x224] sm:$0xf0] }
 0x149   :  { %v310_v27 = vpop.f32.mrf.mxu0 }
 0x14a   :  { %v5111_v30 = vadd.f32 %v313_v26, %v310_v27  ;;  %v3300_v26 = vor.u32 %v4230_v24, %v3297_v25  ;;  %v4210_v27 = vld [vmem:[#allocation7 + $0xa4] sm:$0xf]  ;;  %v4269_v24 = vld [vmem:[#allocation7 + $0x274] sm:$0xf0] }
 0x14b   :  { %v3220_v32 = vor.u32 %v4210_v27, %v3217_v28  ;;  %v3460_v25 = vor.u32 %v4269_v24, %v3459_v22  ;;  %v4249_v27 = vld [vmem:[#allocation7 + $0x1d4] sm:$0xf0]  ;;  %v3451_v28 = vld [vmem:[#allocation7 + $0x260] sm:$0xf]  ;;  %v3508_v24 = vor.u32 %v4281_v21, %v3507_v20  ;;  %v3349_v21 = vld [vmem:[#allocation7 + $0x198] sm:$0xf0] }
 0x14c   :  { %v316_v31 = vpack.c.bf16 %v5111_v30, %v5109_v29  ;;  %802 = vmatpush.bf16.msrb.mxu3 %v3300_v26  ;;  %1187 = vmatpush.bf16.msra.mxu0 %v3388_v23  ;;  %v3379_v26 = vld [vmem:[#allocation7 + $0x1d0] sm:$0xf]  ;;  %v3420_v23 = vor.u32 %v4259_v19, %v3419_v17  ;;  %v4275_v17 = vld [vmem:[#allocation7 + $0x2a4] sm:$0xf0] }
 0x14d   :  { %790 = vmatpush.bf16.msrb.mxu2 %v3220_v32  ;;  %v4267_v32 = vld [vmem:[#allocation7 + $0x264] sm:$0xf0] }
 0x14e   :  { %393 = vmatmul.bf16.vlgmr.msra.gmra.mxu1 %v316_v31  ;;  %v4228_v31 = vld [vmem:[#allocation7 + $0x134] sm:$0xf] }
 0x14f   :  { %v3292_v34 = vor.u32 %v4228_v31, %v3289_v33  ;;  %1200 = vmatpush.bf16.msra.mxu1 %v3460_v25  ;;  %v3380_v31 = vor.u32 %v4249_v27, %v3379_v26  ;;  %v4246_v25 = vld [vmem:[#allocation7 + $0x1c4] sm:$0xf]  ;;  %v3373_v26 = vld [vmem:[#allocation7 + $0x1c8] sm:$0xf0] }
 0x151   :  { %803 = vmatpush.bf16.msrb.mxu3 %v3292_v34  ;;  %791 = vmatpush.bf16.msrb.mxu2 %v3212_v39  ;;  %v3452_v34 = vor.u32 %v4267_v32, %v3451_v28  ;;  %v4265_v39 = vld [vmem:[#allocation7 + $0x254] sm:$0xf0]  ;;  %v3376_v28 = vor.u32 %v4246_v25, %v3373_v26  ;;  %v4239_v32 = vld [vmem:[#allocation7 + $0x184] sm:$0xf0]  ;;  %v4282_v26 = vld [vmem:[#allocation7 + $0x2e4] sm:$0xf] }
 0x152   :  { %1188 = vmatpush.bf16.msra.mxu0 %v3380_v31  ;;  %v3444_v43 = vor.u32 %v4265_v39, %v3443_v37  ;;  %v3339_v31 = vld [vmem:[#allocation7 + $0x180] sm:$0xf]  ;;  %v4257_v37 = vld [vmem:[#allocation7 + $0x214] sm:$0xf0]  ;;  %v4279_v39 = vld [vmem:[#allocation7 + $0x2c4] sm:$0xf0] }
 0x153   :  { %1201 = vmatpush.bf16.msra.mxu1 %v3452_v34  ;;  %v3411_v34 = vld [vmem:[#allocation7 + $0x210] sm:$0xf]  ;;  %v3340_v36 = vor.u32 %v4239_v32, %v3339_v31  ;;  %v4273_v32 = vld [vmem:[#allocation7 + $0x294] sm:$0xf0] }
 0x155   :  { %804 = vmatpush.bf16.msrb.mxu3 %v3284_v40  ;;  %792 = vmatpush.bf16.msrb.mxu2 %v3204_v45  ;;  %v4252_v40 = vld [vmem:[#allocation7 + $0x1f4] sm:$0xf]  ;;  %v3363_v45 = vld [vmem:[#allocation7 + $0x1b0] sm:$0xf] }
 0x156   :  { %v3400_v44 = vor.u32 %v4252_v40, %v3397_v41  ;;  %1189 = vmatpush.bf16.msra.mxu0 %v3372_v38  ;;  %v3499_v38 = vld [vmem:[#allocation7 + $0x2c0] sm:$0xf]  ;;  %v3412_v41 = vor.u32 %v4257_v37, %v3411_v34  ;;  %v4238_v34 = vld [vmem:[#allocation7 + $0x184] sm:$0xf] }
 0x157   :  { %1202 = vmatpush.bf16.msra.mxu1 %v3444_v43  ;;  %v3500_v43 = vor.u32 %v4279_v39, %v3499_v38 }
 0x159   :  { %805 = vmatpush.bf16.msrb.mxu3 %v3276_v46  ;;  %v4245_v46 = vld [vmem:[#allocation7 + $0x1b4] sm:$0xf0] }
 0x15a   :  { %v3364_v48 = vor.u32 %v4245_v46, %v3363_v45  ;;  %v3365_v45 = vld [vmem:[#allocation7 + $0x1b8] sm:$0xf0]  ;;  %v4268_v46 = vld [vmem:[#allocation7 + $0x274] sm:$0xf] }
 0x15c   :  { %1190 = vmatpush.bf16.msra.mxu0 %v3364_v48 }
 0x15d   :  { %806 = vmatpush.bf16.msrb.mxu3 %v3268_v50  ;;  %v3523_v50 = vld [vmem:[#allocation7 + $0x2f0] sm:$0xf] }
 0x1cb   :  { %v394_v51 = vpop.f32.mrf.mxu1 }
 0x1cc   :  { %v5118_v52 = vadd.f32 %v4462_v47, %v394_v51  ;;  %v4285_v51 = vld [vmem:[#allocation7 + $0x2f4] sm:$0xf0] }
 0x1ce   :  { %v401_v54 = vrot.slane %v5118_v52, 7 }
 0x1d0   :  { %v406_v56 = vsel %vm405_vm3, 0.0, %v401_v54  ;;  %v408_v57 = vsel %vm405_vm3, %v401_v54, 0.0 }
 0x1d1   :  { %v424_v61 = vrot.slane %v406_v56, 2  ;;  %v425_v62 = vrot.slane %v408_v57, 2  ;;  %v415_v0 = vrot.slane %v406_v56, 1  ;;  %v416_v1 = vrot.slane %v408_v57, 1  ;;  %v4250_v56 = vld [vmem:[#allocation7 + $0x1e4] sm:$0xf] }
 0x1d2   :  { %v3389_v57 = vld [vmem:[#allocation7 + $0x1e8] sm:$0xf0] }
 0x1d3   :  { %v396_v55 = vpop.f32.mrf.mxu1  ;;  %v417_v9 = vsel %vm414_vm5, %v415_v0, %v416_v1  ;;  %v426_v11 = vsel %vm423_vm7, %v424_v61, %v425_v62  ;;  %v3355_v61 = vld [vmem:[#allocation7 + $0x1a0] sm:$0xf]  ;;  %v4243_v62 = vld [vmem:[#allocation7 + $0x1a4] sm:$0xf0]  ;;  %v3427_v0 = vld [vmem:[#allocation7 + $0x230] sm:$0xf] }
 0x1d4   :  { %v5126_v58 = vadd.f32 %v4462_v47, %v396_v55  ;;  %v3435_v47 = vld [vmem:[#allocation7 + $0x240] sm:$0xf]  ;;  %v3524_v55 = vor.u32 %v4285_v51, %v3523_v50  ;;  %v3356_v1 = vor.u32 %v4243_v62, %v3355_v61  ;;  %v4277_v61 = vld [vmem:[#allocation7 + $0x2b4] sm:$0xf0] }
 0x1d6   :  { %v402_v60 = vrot.slane %v5126_v58, 7  ;;  %1191 = vmatpush.bf16.msra.mxu0 %v3356_v1  ;;  %v4242_v1 = vld [vmem:[#allocation7 + $0x1a4] sm:$0xf] }
 0x1d8   :  { %v407_v2 = vsel %vm405_vm3, 0.0, %v402_v60  ;;  %v409_v3 = vsel %vm405_vm3, %v402_v60, 0.0  ;;  %v3328_v4 = vpack.c.bf16 %v402_v60, %v401_v54  ;;  %v3436_v54 = vor.u32 %v4263_v49, %v3435_v47  ;;  %v3461_v49 = vld [vmem:[#allocation7 + $0x278] sm:$0xf0] }
 0x1d9   :  { %v427_v5 = vrot.slane %v407_v2, 2  ;;  %v428_v6 = vrot.slane %v409_v3, 2  ;;  %v418_v7 = vrot.slane %v407_v2, 1  ;;  %v419_v8 = vrot.slane %v409_v3, 1  ;;  %v4261_v2 = vld [vmem:[#allocation7 + $0x234] sm:$0xf0] }
 0x1da   :  { %3329 = vmatmul.msk.bf16.vlgmr.msra.gmra.mxu2 %vm5133_vm6, %v3328_v4  ;;  %3334 = vmatmul.msk.bf16.vlgmr.msrb.gmra.mxu1 %vm5133_vm6, %v3328_v4  ;;  %v3392_v60 = vor.u32 %v4250_v56, %v3389_v57  ;;  %v3515_v3 = vld [vmem:[#allocation7 + $0x2e0] sm:$0xf]  ;;  %v4283_v4 = vld [vmem:[#allocation7 + $0x2e4] sm:$0xf0]  ;;  %v3464_v51 = vor.u32 %v4268_v46, %v3461_v49  ;;  %v3509_v46 = vld [vmem:[#allocation7 + $0x2d8] sm:$0xf0] }
 0x1db   :  { %v420_v10 = vsel %vm414_vm5, %v418_v7, %v419_v8  ;;  %v429_v12 = vsel %vm423_vm7, %v427_v5, %v428_v6  ;;  %1203 = vmatpush.bf16.msra.mxu1 %v3436_v54  ;;  %1214 = vmatpush.bf16.msra.mxu2 %v3524_v55  ;;  %v3428_v7 = vor.u32 %v4261_v2, %v3427_v0  ;;  %v3403_v54 = vld [vmem:[#allocation7 + $0x200] sm:$0xf]  ;;  %v4255_v55 = vld [vmem:[#allocation7 + $0x204] sm:$0xf0]  ;;  %v3357_v2 = vld [vmem:[#allocation7 + $0x1a8] sm:$0xf0] }
 0x1dc   :  { %v433_v14 = vpack.c.bf16 %v420_v10, %v417_v9  ;;  %v434_v16 = vpack.c.bf16 %v429_v12, %v426_v11  ;;  %v3516_v8 = vor.u32 %v4283_v4, %v3515_v3  ;;  %v4248_v9 = vld [vmem:[#allocation7 + $0x1d4] sm:$0xf]  ;;  %v3381_v10 = vld [vmem:[#allocation7 + $0x1d8] sm:$0xf0]  ;;  %v486_v11 = vperm.slane %v5153_v59, 1 }
 0x1dd   :  { %v3384_v12 = vor.u32 %v4248_v9, %v3381_v10  ;;  %v3404_v57 = vor.u32 %v4255_v55, %v3403_v54  ;;  %v4266_v3 = vld [vmem:[#allocation7 + $0x264] sm:$0xf]  ;;  %v3525_v9 = vld [vmem:[#allocation7 + $0x2f8] sm:$0xf0]  ;;  %v4271_v49 = vld [vmem:[#allocation7 + $0x284] sm:$0xf0] }
 0x1de   :  { %751 = vmatmul.bf16.vlgmr.msra.gmra.mxu3 %v433_v14  ;;  %765 = vmatmul.bf16.vlgmr.msrb.gmra.mxu0 %v434_v16  ;;  %v3429_v54 = vld [vmem:[#allocation7 + $0x238] sm:$0xf0]  ;;  %v4278_v55 = vld [vmem:[#allocation7 + $0x2c4] sm:$0xf] }
 0x1df   :  { %1228 = vmatpush.bf16.msra.mxu3 %v3400_v44  ;;  %1204 = vmatpush.bf16.msra.mxu1 %v3428_v7  ;;  %v4244_v44 = vld [vmem:[#allocation7 + $0x1b4] sm:$0xf]  ;;  %v3453_v7 = vld [vmem:[#allocation7 + $0x268] sm:$0xf0] }
 0x1e0   :  { %1215 = vmatpush.bf16.msra.mxu2 %v3516_v8  ;;  %v3368_v48 = vor.u32 %v4244_v44, %v3365_v45  ;;  %v4284_v8 = vld [vmem:[#allocation7 + $0x2f4] sm:$0xf]  ;;  %v3456_v10 = vor.u32 %v4266_v3, %v3453_v7 }
 0x1e1   :  { %v4280_v45 = vld [vmem:[#allocation7 + $0x2d4] sm:$0xf] }
 0x1e2   :  { %v4276_v3 = vld [vmem:[#allocation7 + $0x2b4] sm:$0xf] }
 0x1e3   :  { %1229 = vmatpush.bf16.msra.mxu3 %v3392_v60  ;;  %1205 = vmatpush.bf16.msra.mxu1 %v3420_v23  ;;  %v3491_v60 = vld [vmem:[#allocation7 + $0x2b0] sm:$0xf] }
 0x1e4   :  { %1216 = vmatpush.bf16.msra.mxu2 %v3508_v24  ;;  %v3492_v0 = vor.u32 %v4277_v61, %v3491_v60  ;;  %v3501_v60 = vld [vmem:[#allocation7 + $0x2c8] sm:$0xf0]  ;;  %v485_v61 = vperm.slane %v5153_v59, 0 }
 0x1e5   :  { %v1420_v59 = vld [vmem:[#allocation11 + $0x8] sm:$0xff] }
 0x1e7   :  { %1230 = vmatpush.bf16.msra.mxu3 %v3384_v12  ;;  %1206 = vmatpush.bf16.msra.mxu1 %v3412_v41  ;;  %v3528_v12 = vor.u32 %v4284_v8, %v3525_v9  ;;  %v3437_v41 = vld [vmem:[#allocation7 + $0x248] sm:$0xf0]  ;;  %v3493_v8 = vld [vmem:[#allocation7 + $0x2b8] sm:$0xf0] }
 0x1e8   :  { %1217 = vmatpush.bf16.msra.mxu2 %v3500_v43 }
 0x1ea   :  { %793 = vmatmul.bf16.vlgmr.msrb.gmra.mxu2 %v433_v14  ;;  %v3347_v14 = vld [vmem:[#allocation7 + $0x190] sm:$0xf] }
 0x1eb   :  { %1231 = vmatpush.bf16.msra.mxu3 %v3376_v28  ;;  %1207 = vmatpush.bf16.msra.mxu1 %v3404_v57  ;;  %v3475_v28 = vld [vmem:[#allocation7 + $0x290] sm:$0xf] }
 0x1ec   :  { %1218 = vmatpush.bf16.msra.mxu2 %v3492_v0  ;;  %v3476_v38 = vor.u32 %v4273_v32, %v3475_v28  ;;  %v3405_v28 = vld [vmem:[#allocation7 + $0x208] sm:$0xf0] }
 0x1ee   :  { %807 = vmatmul.bf16.vlgmr.msrb.gmra.mxu3 %v434_v16  ;;  %v4241_v16 = vld [vmem:[#allocation7 + $0x194] sm:$0xf0] }
 0x1ef   :  { %v3348_v18 = vor.u32 %v4241_v16, %v3347_v14  ;;  %1232 = vmatpush.bf16.msra.mxu3 %v3368_v48  ;;  %v3483_v16 = vld [vmem:[#allocation7 + $0x2a0] sm:$0xf]  ;;  %1256 = vmatpush.bf16.msrb.mxu1 %v3528_v12  ;;  %v3496_v12 = vor.u32 %v4276_v3, %v3493_v8 }
 0x1f0   :  { %v3484_v20 = vor.u32 %v4275_v17, %v3483_v16  ;;  %v3467_v48 = vld [vmem:[#allocation7 + $0x280] sm:$0xf]  ;;  %v3413_v16 = vld [vmem:[#allocation7 + $0x218] sm:$0xf0] }
 0x1f1   :  { %1192 = vmatpush.bf16.msra.mxu0 %v3348_v18  ;;  %v4240_v18 = vld [vmem:[#allocation7 + $0x194] sm:$0xf] }
 0x1f2   :  { %v3352_v24 = vor.u32 %v4240_v18, %v3349_v21  ;;  %1219 = vmatpush.bf16.msra.mxu2 %v3484_v20  ;;  %v3485_v20 = vld [vmem:[#allocation7 + $0x2a8] sm:$0xf0] }
 0x1f5   :  { %1193 = vmatpush.bf16.msra.mxu0 %v3340_v36 }
 0x1f6   :  { %1220 = vmatpush.bf16.msra.mxu2 %v3476_v38 }
 0x1f9   :  { %1242 = vmatpush.bf16.msrb.mxu0 %v3464_v51  ;;  %v3468_v51 = vor.u32 %v4271_v49, %v3467_v48 }
 0x1fb   :  { %1221 = vmatpush.bf16.msra.mxu2 %v3468_v51 }
 0x1fd   :  { %1243 = vmatpush.bf16.msrb.mxu0 %v3456_v10  ;;  %v1421_v10 = vld [vmem:[#allocation11 + $0x10] sm:$0xff] }
 0x257   :  { %v780_v5 = vpop.f32.mrf.mxu1 }
 0x258   :  { %v781_v27 = vadd.f32 %v780_v5, %v486_v11  ;;  %v3360_v5 = vor.u32 %v4242_v1, %v3357_v2  ;;  %v4258_v1 = vld [vmem:[#allocation7 + $0x224] sm:$0xf]  ;;  %v3421_v2 = vld [vmem:[#allocation7 + $0x228] sm:$0xf0] }
 0x259   :  { %v3424_v7 = vor.u32 %v4258_v1, %v3421_v2 }
 0x25a   :  { %1233 = vmatpush.bf16.msra.mxu3 %v3360_v5 }
 0x25b   :  { %v766_v32 = vpop.f32.mrf.mxu0 }
 0x25d   :  { %v5147_v33 = vpop.f32.mrf.mxu2 }
 0x25e   :  { %1234 = vmatpush.bf16.msra.mxu3 %v3352_v24  ;;  %v739_v17 = vadd.f32 %v5147_v33, %v485_v61  ;;  %v1419_v24 = vld [vmem:[#allocation11] sm:$0xff]  ;;  %v4272_v33 = vld [vmem:[#allocation7 + $0x294] sm:$0xf] }
 0x25f   :  { %v782_v50 = vpop.f32.mrf.mxu1 }
 0x260   :  { %v783_v4 = vadd.f32 %v782_v50, %v486_v11  ;;  %v4264_v11 = vld [vmem:[#allocation7 + $0x254] sm:$0xf] }
 0x261   :  { %v5149_v42 = vpop.f32.mrf.mxu3  ;;  %v4260_v50 = vld [vmem:[#allocation7 + $0x234] sm:$0xf] }
 0x262   :  { %v3432_v57 = vor.u32 %v4260_v50, %v3429_v54 }
 0x265   :  { %v5151_v53 = vpop.f32.mrf.mxu2 }
 0x269   :  { %v5155_v6 = vpop.f32.mrf.mxu3 }
 0x26d   :  { %v794_v22 = vpop.f32.mrf.mxu2 }
 0x26e   :  { %v795_v35 = vadd.f32 %v794_v22, %v781_v27  ;;  %v3445_v22 = vld [vmem:[#allocation7 + $0x258] sm:$0xf0]  ;;  %v3517_v27 = vld [vmem:[#allocation7 + $0x2e8] sm:$0xf0] }
 0x26f   :  { %v3448_v25 = vor.u32 %v4264_v11, %v3445_v22  ;;  %v3520_v31 = vor.u32 %v4282_v26, %v3517_v27  ;;  %v753_v26 = vadd.f32 %v5149_v42, %v739_v17 }
 0x271   :  { %v808_v40 = vpop.f32.mrf.mxu3  ;;  %1244 = vmatpush.bf16.msrb.mxu0 %v3448_v25  ;;  %1257 = vmatpush.bf16.msrb.mxu1 %v3520_v31  ;;  %v4254_v25 = vld [vmem:[#allocation7 + $0x204] sm:$0xf]  ;;  %v3477_v31 = vld [vmem:[#allocation7 + $0x298] sm:$0xf0] }
 0x272   :  { %v809_v47 = vadd.f32 %v808_v40, %v795_v35  ;;  %v3341_v35 = vld [vmem:[#allocation7 + $0x188] sm:$0xf0]  ;;  %v4262_v40 = vld [vmem:[#allocation7 + $0x244] sm:$0xf]  ;;  %v3480_v38 = vor.u32 %v4272_v33, %v3477_v31  ;;  %v4299_v33 = vld [vmem:[#allocation14 + $0x28] sm:$0xff] }
 0x273   :  { %v3344_v39 = vor.u32 %v4238_v34, %v3341_v35  ;;  %v3440_v44 = vor.u32 %v4262_v40, %v3437_v41  ;;  %v741_v41 = vadd.f32 %v5151_v53, %v485_v61  ;;  %v4298_v31 = vld [vmem:[#allocation14 + $0x20] sm:$0xff] }
 0x274   :  { %v3335_v56 = vmul.f32 -1.442695, %v809_v47  ;;  %v3512_v47 = vor.u32 %v4280_v45, %v3509_v46 }
 0x275   :  { %v796_v62 = vpop.f32.mrf.mxu2  ;;  %1235 = vmatpush.bf16.msra.mxu3 %v3344_v39  ;;  %1245 = vmatpush.bf16.msrb.mxu0 %v3440_v44  ;;  %v767_v39 = vadd.f32 %v766_v32, %v753_v26  ;;  %v755_v48 = vadd.f32 %v5155_v6, %v741_v41  ;;  %v4297_v32 = vld [vmem:[#allocation14 + $0x18] sm:$0xff]  ;;  %v5209_v41 = vld [vmem:[#allocation8 + $0x2] sm:$0x3] }
 0x276   :  { %4470 = vpow2.f32 %v3335_v56  ;;  %v797_v14 = vadd.f32 %v796_v62, %v783_v4  ;;  %1258 = vmatpush.bf16.msrb.mxu1 %v3512_v47  ;;  %v1422_v56 = vld [vmem:[#allocation11 + $0x18] sm:$0xff]  ;;  %v3504_v62 = vor.u32 %v4278_v55, %v3501_v60  ;;  %v4270_v47 = vld [vmem:[#allocation7 + $0x284] sm:$0xf] }
 0x279   :  { %v810_v19 = vpop.f32.mrf.mxu3  ;;  %1441 = vmatpush.msrb.mxu3 %v1422_v56  ;;  %1246 = vmatpush.bf16.msrb.mxu0 %v3432_v57  ;;  %v768_v57 = vpop.f32.mrf.mxu0 }
 0x27a   :  { %v811_v23 = vadd.f32 %v810_v19, %v797_v14  ;;  %1259 = vmatpush.bf16.msrb.mxu1 %v3504_v62  ;;  %v4256_v14 = vld [vmem:[#allocation7 + $0x214] sm:$0xf]  ;;  %v4274_v19 = vld [vmem:[#allocation7 + $0x2a4] sm:$0xf]  ;;  %v769_v6 = vadd.f32 %v768_v57, %v755_v48 }
 0x27b   :  { %1442 = vmatpush.msrb.mxu3 %v1421_v10  ;;  %v3416_v22 = vor.u32 %v4256_v14, %v3413_v16 }
 0x27c   :  { %v4471_v36 = vpop.eup %4470  ;;  %v3336_v37 = vmul.f32 -1.442695, %v811_v23  ;;  %v3488_v23 = vor.u32 %v4274_v19, %v3485_v20 }
 0x27d   :  { %v5158_v43 = vadd.f32 1.0, %v4471_v36  ;;  %1247 = vmatpush.bf16.msrb.mxu0 %v3424_v7  ;;  %1443 = vmatpush.msrb.mxu3 %v1420_v59 }
 0x27e   :  { %4472 = vpow2.f32 %v3336_v37  ;;  %1260 = vmatpush.bf16.msrb.mxu1 %v3496_v12  ;;  %v3408_v37 = vor.u32 %v4254_v25, %v3405_v28  ;;  %v4300_v28 = vld [vmem:[#allocation14 + $0x30] sm:$0xff] }
 0x27f   :  { %4474 = vrcp.f32 %v5158_v43  ;;  %v830_v21 = vand.u32 2147483647, %v5158_v43  ;;  %v832_v11 = vand.u32 2147483648, %v5158_v43  ;;  %vm826_vm9 = vweird.f32 %v5158_v43  ;;  %1444 = vmatpush.msrb.mxu3 %v1419_v24  ;;  %v1409_v24 = vpop.permute.xlu1 %1408 }
 0x280   :  { %vm1413_vm1 = vcmp.eq.s32.totalorder %v1409_v24, %v5101_v13  ;;  %v3651_v24 = vld [vmem:[#allocation16 + $0x50] sm:$0xf] }
 0x281   :  { %v833_v36 = vor.u32 1.1754944e-38, %v832_v11  ;;  %1248 = vmatpush.bf16.msrb.mxu0 %v3416_v22  ;;  %vm831_vm11 = vcmp.eq.f32.partialorder %v830_v21, 8.507059e+37  ;;  %v3573_v25 = vsel %vm1413_vm1, 1.0, %v4891_v15 }
 0x282   :  { %1261 = vmatpush.bf16.msrb.mxu1 %v3488_v23 }
 0x284   :  { %v4473_v0 = vpop.eup %4472 }
 0x285   :  { %v4475_v4 = vpop.eup %4474  ;;  %v5162_v5 = vadd.f32 1.0, %v4473_v0  ;;  %1249 = vmatpush.bf16.msrb.mxu0 %v3408_v37 }
 0x286   :  { %v822_v9 = vmul.f32 %v4475_v4, %v5158_v43  ;;  %vm827_vm8 = vweird.f32 %v4475_v4  ;;  %v3469_v43 = vld [vmem:[#allocation7 + $0x288] sm:$0xf0]  ;;  %1262 = vmatpush.bf16.msrb.mxu1 %v3480_v38 }
 0x287   :  { %4476 = vrcp.f32 %v5162_v5  ;;  %vm828_vm10 = vmor %vm826_vm9, %vm827_vm8  ;;  %v847_v49 = vand.u32 2147483648, %v5162_v5  ;;  %v3472_v50 = vor.u32 %v4270_v47, %v3469_v43  ;;  %v845_v54 = vand.u32 2147483647, %v5162_v5  ;;  %v1412_v63 = vpop.permute.xlu1 %1411  ;;  %v4290_v47 = vld [vmem:[#allocation10 + $0x20] sm:$0xff] }
 0x288   :  { %v823_v18 = vsub.f32 1.0, %v822_v9  ;;  %vm841_vm13 = vweird.f32 %v5162_v5  ;;  %vm1414_vm2 = vcmp.eq.s32.totalorder %v1412_v63, %v5101_v13  ;;  %v4294_v13 = vld [vmem:[#allocation14] sm:$0xff] }
 0x289   :  { %v848_v60 = vor.u32 1.1754944e-38, %v847_v49  ;;  %vm846_vm15 = vcmp.eq.f32.partialorder %v845_v54, 8.507059e+37  ;;  %v3574_v26 = vsel %vm1414_vm2, 1.0, %v4891_v15  ;;  %v4293_v15 = vld [vmem:[#allocation10 + $0x38] sm:$0xff] }
 0x28a   :  { %v824_v27 = vmul.f32 %v4475_v4, %v823_v18  ;;  %1263 = vmatpush.bf16.msrb.mxu1 %v3472_v50  ;;  %1383 = vmatpush.bf16.msrb.mxu2 %v4293_v15  ;;  %v4289_v49 = vld [vmem:[#allocation10 + $0x18] sm:$0xff]  ;;  %v3643_v15 = vld [vmem:[#allocation16 + $0x40] sm:$0xf] }
 0x28c   :  { %v825_v34 = vadd.f32 %v4475_v4, %v824_v27  ;;  %v4301_v27 = vld [vmem:[#allocation14 + $0x38] sm:$0xff] }
 0x28d   :  { %v4477_v35 = vpop.eup %4476 }
 0x28e   :  { %v829_v42 = vsel %vm828_vm10, %v4475_v4, %v825_v34  ;;  %v837_v40 = vmul.f32 %v4477_v35, %v5162_v5  ;;  %vm842_vm12 = vweird.f32 %v4477_v35  ;;  %v4296_v34 = vld [vmem:[#allocation14 + $0x10] sm:$0xff] }
 0x28f   :  { %v834_v44 = vsel %vm831_vm11, %v833_v36, %v829_v42  ;;  %vm843_vm14 = vmor %vm841_vm13, %vm842_vm12  ;;  %vm1544_vm12 = vcmask 1041408  }
 0x290   :  { %v851_v45 = vmul.f32 %v834_v44, %v767_v39  ;;  %v838_v46 = vsub.f32 1.0, %v837_v40  ;;  %v4292_v39 = vld [vmem:[#allocation10 + $0x30] sm:$0xff]  ;;  %v4291_v40 = vld [vmem:[#allocation10 + $0x28] sm:$0xff]  ;;  %vm3801_vm13 = vmneg %vm1544_vm12 }
 0x291   :  { %1384 = vmatpush.bf16.msrb.mxu2 %v4292_v39 }
 0x292   :  { %v839_v51 = vmul.f32 %v4477_v35, %v838_v46  ;;  %v853_v55 = vadd.f32 %v851_v45, %v5118_v52  ;;  %v943_v45 = vperm.slane %v5209_v41, 1 }
 0x294   :  { %v840_v56 = vadd.f32 %v4477_v35, %v839_v51  ;;  %v5178_v53 = vmul.f32 0.70710677, %v853_v55  ;;  %v4288_v55 = vld [vmem:[#allocation10 + $0x10] sm:$0xff] }
 0x295   :  { %1385 = vmatpush.bf16.msrb.mxu2 %v4291_v40  ;;  %v3795_v40 = vld [vmem:[#allocation16 + $0x170] sm:$0xf] }
 0x296   :  { %v844_v61 = vsel %vm843_vm14, %v4477_v35, %v840_v56  ;;  %v859_v1 = vrot.slane %v5178_v53, 7  ;;  %v4295_v35 = vld [vmem:[#allocation14 + $0x8] sm:$0xff]  ;;  %vm5268_vm14 = vmpackc.low %vm3801_vm13, %vm3801_vm13 }
 0x297   :  { %v849_v62 = vsel %vm846_vm15, %v848_v60, %v844_v61  ;;  %vm2129_vm15 = vcmask 1043456  }
 0x298   :  { %v852_v0 = vmul.f32 %v849_v62, %v769_v6  ;;  %v863_v52 = vsel %vm405_vm3, 0.0, %v859_v1  ;;  %v865_v4 = vsel %vm405_vm3, %v859_v1, 0.0  ;;  %v4287_v6 = vld [vmem:[#allocation10 + $0x8] sm:$0xff] }
 0x299   :  { %v871_v7 = vrot.slane %v863_v52, 1  ;;  %v872_v8 = vrot.slane %v865_v4, 1  ;;  %v879_v9 = vrot.slane %v863_v52, 2  ;;  %v880_v10 = vrot.slane %v865_v4, 2  ;;  %1386 = vmatpush.bf16.msrb.mxu2 %v4290_v47 }
 0x29a   :  { %v854_v2 = vadd.f32 %v852_v0, %v5126_v58  ;;  %v1452_v0 = vld [vmem:[#allocation13] sm:$0xff] }
 0x29b   :  { %v873_v19 = vsel %vm414_vm5, %v871_v7, %v872_v8  ;;  %v881_v21 = vsel %vm423_vm7, %v879_v9, %v880_v10 }
 0x29c   :  { %v5182_v3 = vmul.f32 0.70710677, %v854_v2  ;;  %v4286_v2 = vld [vmem:[#allocation10] sm:$0xff] }
 0x29d   :  { %1387 = vmatpush.bf16.msrb.mxu2 %v4289_v49 }
 0x29e   :  { %v860_v5 = vrot.slane %v5182_v3, 7 }
 0x2a0   :  { %v3532_v12 = vpack.c.bf16 %v860_v5, %v859_v1  ;;  %v864_v14 = vsel %vm405_vm3, 0.0, %v860_v5  ;;  %v866_v59 = vsel %vm405_vm3, %v860_v5, 0.0 }
 0x2a1   :  { %v874_v16 = vrot.slane %v864_v14, 1  ;;  %v875_v17 = vrot.slane %v866_v59, 1  ;;  %v882_v58 = vrot.slane %v864_v14, 2  ;;  %v883_v18 = vrot.slane %v866_v59, 2  ;;  %1388 = vmatpush.bf16.msrb.mxu2 %v4288_v55  ;;  %v3667_v14 = vld [vmem:[#allocation16 + $0x70] sm:$0xf] }
 0x2a2   :  { %3533 = vmatmul.msk.bf16.vlgmr.msra.gmra.mxu0 %vm5133_vm6, %v3532_v12  ;;  %3538 = vmatmul.msk.bf16.vlgmr.msra.gmra.mxu3 %vm5133_vm6, %v3532_v12  ;;  %v4317_v59 = vld [vmem:[#allocation16 + $0x74] sm:$0xf0] }
 0x2a3   :  { %v876_v20 = vsel %vm414_vm5, %v874_v16, %v875_v17  ;;  %v884_v11 = vsel %vm423_vm7, %v882_v58, %v883_v18  ;;  %1524 = vmatpush.bf16.msra.mxu0 %v4301_v27  ;;  %v3659_v16 = vld [vmem:[#allocation16 + $0x60] sm:$0xf]  ;;  %v3668_v17 = vor.u32 %v4317_v59, %v3667_v14  ;;  %v4315_v58 = vld [vmem:[#allocation16 + $0x64] sm:$0xf0]  ;;  %v3731_v18 = vld [vmem:[#allocation16 + $0xf0] sm:$0xf] }
 0x2a4   :  { %v888_v22 = vpack.c.bf16 %v876_v20, %v873_v19  ;;  %v889_v23 = vpack.c.bf16 %v884_v11, %v881_v21  ;;  %v4333_v19 = vld [vmem:[#allocation16 + $0xf4] sm:$0xf0]  ;;  %v3660_v20 = vor.u32 %v4315_v58, %v3659_v16  ;;  %v3723_v11 = vld [vmem:[#allocation16 + $0xe0] sm:$0xf]  ;;  %v3699_v14 = vld [vmem:[#allocation16 + $0xb0] sm:$0xf] }
 0x2a5   :  { %1389 = vmatpush.bf16.msrb.mxu2 %v4287_v6  ;;  %1862 = vmatpush.bf16.msra.mxu3 %v3668_v17  ;;  %v3732_v21 = vor.u32 %v4333_v19, %v3731_v18  ;;  %v4325_v59 = vld [vmem:[#allocation16 + $0xb4] sm:$0xf0]  ;;  %v3779_v18 = vld [vmem:[#allocation16 + $0x150] sm:$0xf] }
 0x2a6   :  { %1208 = vmatmul.bf16.vlgmr.msra.gmra.mxu1 %v888_v22  ;;  %1222 = vmatmul.bf16.vlgmr.msra.gmra.mxu2 %v889_v23  ;;  %v4345_v19 = vld [vmem:[#allocation16 + $0x154] sm:$0xf0] }
 0x2a7   :  { %1525 = vmatpush.bf16.msra.mxu0 %v4300_v28  ;;  %1876 = vmatpush.bf16.msra.mxu1 %v3732_v21  ;;  %v4316_v28 = vld [vmem:[#allocation16 + $0x74] sm:$0xf] }
 0x2a9   :  { %1390 = vmatpush.bf16.msrb.mxu2 %v4286_v2  ;;  %1863 = vmatpush.bf16.msra.mxu3 %v3660_v20  ;;  %v4310_v20 = vld [vmem:[#allocation16 + $0x44] sm:$0xf] }
 0x2ab   :  { %1526 = vmatpush.bf16.msra.mxu0 %v4299_v33  ;;  %v3669_v33 = vld [vmem:[#allocation16 + $0x78] sm:$0xf0] }
 0x2af   :  { %1527 = vmatpush.bf16.msra.mxu0 %v4298_v31 }
 0x2b2   :  { %1250 = vmatmul.bf16.vlgmr.msrb.gmra.mxu0 %v888_v22  ;;  %3575 = vmatmul.msk.f32.vlgmr.msrb.gmra.mxu3 %vm283_vm0, %v3573_v25  ;;  %v4331_v22 = vld [vmem:[#allocation16 + $0xe4] sm:$0xf0]  ;;  %v4313_v25 = vld [vmem:[#allocation16 + $0x54] sm:$0xf0] }
 0x2b3   :  { %1528 = vmatpush.bf16.msra.mxu0 %v4297_v32  ;;  %v3724_v27 = vor.u32 %v4331_v22, %v3723_v11  ;;  %v3715_v32 = vld [vmem:[#allocation16 + $0xd0] sm:$0xf]  ;;  %v3780_v22 = vor.u32 %v4345_v19, %v3779_v18  ;;  %v4306_v18 = vld [vmem:[#allocation16 + $0x24] sm:$0xf] }
 0x2b5   :  { %1877 = vmatpush.bf16.msra.mxu1 %v3724_v27  ;;  %v4307_v27 = vld [vmem:[#allocation16 + $0x24] sm:$0xf0] }
 0x2b6   :  { %1264 = vmatmul.bf16.vlgmr.msrb.gmra.mxu1 %v889_v23 }
 0x2b7   :  { %1529 = vmatpush.bf16.msra.mxu0 %v4296_v34  ;;  %v4329_v34 = vld [vmem:[#allocation16 + $0xd4] sm:$0xf0] }
 0x2ba   :  { %3576 = vmatmul.msk.f32.gmra.mxu3 %vm283_vm0, %v3574_v26 }
 0x2bb   :  { %1530 = vmatpush.bf16.msra.mxu0 %v4295_v35  ;;  %v3672_v35 = vor.u32 %v4316_v28, %v3669_v33 }
 0x2bf   :  { %1531 = vmatpush.bf16.msra.mxu0 %v4294_v13  ;;  %v3652_v13 = vor.u32 %v4313_v25, %v3651_v24 }
 0x2c1   :  { %1864 = vmatpush.bf16.msra.mxu3 %v3652_v13 }
 0x2c3   :  { %1904 = vmatpush.bf16.msrb.mxu0 %v3672_v35 }
 0x31f   :  { %v5203_v36 = vpop.f32.mrf.mxu0 }
 0x323   :  { %v5205_v37 = vpop.f32.mrf.mxu1 }
 0x325   :  { %v1237_v38 = vpop.f32.mrf.mxu3 }
 0x326   :  { %v1238_v48 = vadd.f32 %v1237_v38, %v943_v45  ;;  %v4311_v38 = vld [vmem:[#allocation16 + $0x44] sm:$0xf0] }
 0x327   :  { %v5207_v42 = vpop.f32.mrf.mxu0  ;;  %v3644_v6 = vor.u32 %v4311_v38, %v3643_v15  ;;  %v3691_v15 = vld [vmem:[#allocation16 + $0xa0] sm:$0xf] }
 0x329   :  { %v1223_v47 = vpop.f32.mrf.mxu2  ;;  %1865 = vmatpush.bf16.msra.mxu3 %v3644_v6 }
 0x32b   :  { %v5211_v44 = vpop.f32.mrf.mxu1 }
 0x32d   :  { %v1239_v46 = vpop.f32.mrf.mxu3 }
 0x32e   :  { %v1240_v61 = vadd.f32 %v1239_v46, %v943_v45  ;;  %v4349_v45 = vld [vmem:[#allocation16 + $0x174] sm:$0xf0]  ;;  %v942_v46 = vperm.slane %v5209_v41, 0  ;;  %v3635_v41 = vld [vmem:[#allocation16 + $0x30] sm:$0xf] }
 0x32f   :  { %v1251_v43 = vpop.f32.mrf.mxu0  ;;  %v3796_v49 = vor.u32 %v4349_v45, %v3795_v40 }
 0x330   :  { %v1252_v50 = vadd.f32 %v1251_v43, %v1238_v48  ;;  %v3716_v48 = vor.u32 %v4329_v34, %v3715_v32  ;;  %v1198_v33 = vadd.f32 %v5207_v42, %v942_v46  ;;  %v3700_v32 = vor.u32 %v4325_v59, %v3699_v14 }
 0x331   :  { %1890 = vmatpush.bf16.msra.mxu2 %v3796_v49  ;;  %v1225_v38 = vpop.f32.mrf.mxu2 }
 0x332   :  { %1878 = vmatpush.bf16.msra.mxu1 %v3716_v48  ;;  %v1212_v40 = vadd.f32 %v5211_v44, %v1198_v33  ;;  %v4304_v33 = vld [vmem:[#allocation16 + $0x14] sm:$0xf] }
 0x333   :  { %v1265_v51 = vpop.f32.mrf.mxu1 }
 0x334   :  { %v1266_v54 = vadd.f32 %v1265_v51, %v1252_v50  ;;  %v4314_v50 = vld [vmem:[#allocation16 + $0x64] sm:$0xf]  ;;  %v3661_v51 = vld [vmem:[#allocation16 + $0x68] sm:$0xf0]  ;;  %v1226_v49 = vadd.f32 %v1225_v38, %v1212_v40  ;;  %v4337_v40 = vld [vmem:[#allocation16 + $0x114] sm:$0xf0] }
 0x335   :  { %v1446_v56 = vpop.f32.mrf.mxu3 }
 0x336   :  { %v3539_v57 = vmul.f32 -1.442695, %v1266_v54  ;;  %v5214_v7 = vadd.f32 %v1452_v0, %v1446_v56  ;;  %v3707_v56 = vld [vmem:[#allocation16 + $0xc0] sm:$0xf] }
 0x337   :  { %v1253_v60 = vpop.f32.mrf.mxu0 }
 0x338   :  { %4478 = vpow2.f32 %v3539_v57  ;;  %v1254_v62 = vadd.f32 %v1253_v60, %v1240_v61  ;;  %v4327_v57 = vld [vmem:[#allocation16 + $0xc4] sm:$0xf0]  ;;  %v3664_v60 = vor.u32 %v4314_v50, %v3661_v51  ;;  %v3787_v61 = vld [vmem:[#allocation16 + $0x160] sm:$0xf]  ;;  %v3683_v51 = vld [vmem:[#allocation16 + $0x90] sm:$0xf] }
 0x33a   :  { %1905 = vmatpush.bf16.msrb.mxu0 %v3664_v60  ;;  %v4303_v60 = vld [vmem:[#allocation16 + $0x4] sm:$0xf0] }
 0x33b   :  { %v1267_v1 = vpop.f32.mrf.mxu1 }
 0x33c   :  { %v1268_v52 = vadd.f32 %v1267_v1, %v1254_v62  ;;  %v4347_v62 = vld [vmem:[#allocation16 + $0x164] sm:$0xf0]  ;;  %v4309_v1 = vld [vmem:[#allocation16 + $0x34] sm:$0xf0] }
 0x33d   :  { %v1449_v4 = vpop.f32.mrf.mxu3  ;;  %v3788_v2 = vor.u32 %v4347_v62, %v3787_v61  ;;  %v3636_v11 = vor.u32 %v4309_v1, %v3635_v41 }
 0x33e   :  { %v4479_v5 = vpop.eup %4478  ;;  %v3540_v8 = vmul.f32 -1.442695, %v1268_v52  ;;  %v5216_v9 = vadd.f32 %v1452_v0, %v1449_v4  ;;  %v4312_v52 = vld [vmem:[#allocation16 + $0x54] sm:$0xf]  ;;  %v3653_v4 = vld [vmem:[#allocation16 + $0x58] sm:$0xf0] }
 0x33f   :  { %v5218_v10 = vadd.f32 1.0, %v4479_v5  ;;  %v3656_v16 = vor.u32 %v4312_v52, %v3653_v4  ;;  %1891 = vmatpush.bf16.msra.mxu2 %v3788_v2  ;;  %1866 = vmatpush.bf16.msra.mxu3 %v3636_v11  ;;  %v3771_v2 = vld [vmem:[#allocation16 + $0x140] sm:$0xf]  ;;  %v4343_v52 = vld [vmem:[#allocation16 + $0x144] sm:$0xf0] }
 0x340   :  { %4480 = vpow2.f32 %v3540_v8  ;;  %v1455_v12 = vpack.c.bf16 %v5216_v9, %v5214_v7  ;;  %v4308_v4 = vld [vmem:[#allocation16 + $0x34] sm:$0xf]  ;;  %v3637_v8 = vld [vmem:[#allocation16 + $0x38] sm:$0xf0]  ;;  %v3725_v11 = vld [vmem:[#allocation16 + $0xe8] sm:$0xf0] }
 0x341   :  { %4482 = vrcp.f32 %v5218_v10  ;;  %v1289_v43 = vand.u32 2147483648, %v5218_v10  ;;  %v1287_v55 = vand.u32 2147483647, %v5218_v10  ;;  %vm1283_vm3 = vweird.f32 %v5218_v10  ;;  %1906 = vmatpush.bf16.msrb.mxu0 %v3656_v16  ;;  %v3675_v16 = vld [vmem:[#allocation16 + $0x80] sm:$0xf] }
 0x342   :  { %1532 = vmatmul.bf16.vlgmr.msra.gmra.mxu0 %v1455_v12  ;;  %v3708_v12 = vor.u32 %v4327_v57, %v3707_v56  ;;  %v3611_v57 = vld [vmem:[#allocation16] sm:$0xf]  ;;  %v3640_v14 = vor.u32 %v4308_v4, %v3637_v8  ;;  %v3685_v8 = vld [vmem:[#allocation16 + $0x98] sm:$0xf0] }
 0x343   :  { %v1290_v21 = vor.u32 1.1754944e-38, %v1289_v43  ;;  %vm1288_vm6 = vcmp.eq.f32.partialorder %v1287_v55, 8.507059e+37  ;;  %1892 = vmatpush.bf16.msra.mxu2 %v3780_v22  ;;  %v4305_v43 = vld [vmem:[#allocation16 + $0x14] sm:$0xf0]  ;;  %v3612_v61 = vor.u32 %v4303_v60, %v3611_v57  ;;  %v3701_v57 = vld [vmem:[#allocation16 + $0xb8] sm:$0xf0] }
 0x344   :  { %1879 = vmatpush.bf16.msra.mxu1 %v3708_v12  ;;  %v3733_v12 = vld [vmem:[#allocation16 + $0xf8] sm:$0xf0] }
 0x346   :  { %v4481_v23 = vpop.eup %4480 }
 0x347   :  { %v5223_v63 = vpop.eup %4482  ;;  %v5225_v26 = vadd.f32 1.0, %v4481_v23  ;;  %v3645_v23 = vld [vmem:[#allocation16 + $0x48] sm:$0xf0] }
 0x348   :  { %v1279_v31 = vmul.f32 %v5223_v63, %v5218_v10  ;;  %vm1284_vm0 = vweird.f32 %v5223_v63  ;;  %v1196_v10 = vadd.f32 %v5203_v36, %v942_v46  ;;  %v3627_v36 = vld [vmem:[#allocation16 + $0x20] sm:$0xf]  ;;  %v3648_v28 = vor.u32 %v4310_v20, %v3645_v23  ;;  %v3619_v46 = vld [vmem:[#allocation16 + $0x10] sm:$0xf]  ;;  %1880 = vmatpush.bf16.msra.mxu1 %v3700_v32  ;;  %v3629_v20 = vld [vmem:[#allocation16 + $0x28] sm:$0xf0] }
 0x349   :  { %4484 = vrcp.f32 %v5225_v26  ;;  %vm5239_vm4 = vmor %vm1283_vm3, %vm1284_vm0  ;;  %v1302_v13 = vand.u32 2147483647, %v5225_v26  ;;  %vm1298_vm9 = vweird.f32 %v5225_v26  ;;  %v3620_v44 = vor.u32 %v4305_v43, %v3619_v46  ;;  %v4328_v32 = vld [vmem:[#allocation16 + $0xd4] sm:$0xf]  ;;  %v3613_v46 = vld [vmem:[#allocation16 + $0x8] sm:$0xf0] }
 0x34a   :  { %v1280_v39 = vsub.f32 1.0, %v1279_v31  ;;  %v1210_v24 = vadd.f32 %v5205_v37, %v1196_v10  ;;  %v4323_v37 = vld [vmem:[#allocation16 + $0xa4] sm:$0xf0]  ;;  %1907 = vmatpush.bf16.msrb.mxu0 %v3648_v28  ;;  %v3632_v22 = vor.u32 %v4306_v18, %v3629_v20  ;;  %v4326_v43 = vld [vmem:[#allocation16 + $0xc4] sm:$0xf] }
 0x34b   :  { %v3692_v48 = vor.u32 %v4323_v37, %v3691_v15  ;;  %vm1303_vm11 = vcmp.eq.f32.partialorder %v1302_v13, 8.507059e+37  ;;  %v4339_v28 = vld [vmem:[#allocation16 + $0x124] sm:$0xf0]  ;;  %v4346_v15 = vld [vmem:[#allocation16 + $0x164] sm:$0xf] }
 0x34c   :  { %v1281_v54 = vmul.f32 %v5223_v63, %v1280_v39  ;;  %v1224_v34 = vadd.f32 %v1223_v47, %v1210_v24  ;;  %v3628_v39 = vor.u32 %v4307_v27, %v3627_v36  ;;  %v4348_v24 = vld [vmem:[#allocation16 + $0x174] sm:$0xf]  ;;  %v3755_v27 = vld [vmem:[#allocation16 + $0x120] sm:$0xf]  ;;  %v3789_v37 = vld [vmem:[#allocation16 + $0x168] sm:$0xf0] }
 0x34d   :  { %1881 = vmatpush.bf16.msra.mxu1 %v3692_v48  ;;  %v3792_v38 = vor.u32 %v4346_v15, %v3789_v37  ;;  %v4334_v20 = vld [vmem:[#allocation16 + $0x104] sm:$0xf] }
 0x34e   :  { %v1282_v0 = vadd.f32 %v5223_v63, %v1281_v54  ;;  %v4321_v54 = vld [vmem:[#allocation16 + $0x94] sm:$0xf0]  ;;  %1867 = vmatpush.bf16.msra.mxu3 %v3628_v39  ;;  %1908 = vmatpush.bf16.msrb.mxu0 %v3640_v14  ;;  %v3747_v39 = vld [vmem:[#allocation16 + $0x110] sm:$0xf] }
 0x34f   :  { %v4485_v5 = vpop.eup %4484  ;;  %v3684_v6 = vor.u32 %v4321_v54, %v3683_v51  ;;  %v3781_v51 = vld [vmem:[#allocation16 + $0x158] sm:$0xf0] }
 0x350   :  { %v1294_v17 = vmul.f32 %v4485_v5, %v5225_v26  ;;  %v1286_v58 = vsel %vm5239_vm4, %v5223_v63, %v1282_v0  ;;  %v1304_v63 = vand.u32 2147483648, %v5225_v26  ;;  %vm1299_vm8 = vweird.f32 %v4485_v5 }
 0x351   :  { %v1291_v31 = vsel %vm1288_vm6, %v1290_v21, %v1286_v58  ;;  %vm1300_vm10 = vmor %vm1298_vm9, %vm1299_vm8  ;;  %1882 = vmatpush.bf16.msra.mxu1 %v3684_v6  ;;  %v4341_v58 = vld [vmem:[#allocation16 + $0x134] sm:$0xf0]  ;;  %v4330_v21 = vld [vmem:[#allocation16 + $0xe4] sm:$0xf] }
 0x352   :  { %v1295_v25 = vsub.f32 1.0, %v1294_v17  ;;  %v1308_v45 = vmul.f32 %v1291_v31, %v1224_v34  ;;  %v1305_v47 = vor.u32 1.1754944e-38, %v1304_v63  ;;  %1868 = vmatpush.bf16.msra.mxu3 %v3620_v44  ;;  %v3763_v17 = vld [vmem:[#allocation16 + $0x130] sm:$0xf]  ;;  %v3728_v23 = vor.u32 %v4330_v21, %v3725_v11  ;;  %1909 = vmatpush.bf16.msrb.mxu0 %v3632_v22  ;;  %v3621_v31 = vld [vmem:[#allocation16 + $0x18] sm:$0xf0] }
 0x353   :  { %v3764_v19 = vor.u32 %v4341_v58, %v3763_v17  ;;  %v3756_v63 = vor.u32 %v4339_v28, %v3755_v27  ;;  %v3717_v34 = vld [vmem:[#allocation16 + $0xd8] sm:$0xf0]  ;;  %v4335_v44 = vld [vmem:[#allocation16 + $0x104] sm:$0xf0]  ;;  %v4342_v6 = vld [vmem:[#allocation16 + $0x144] sm:$0xf] }
 0x354   :  { %v1296_v35 = vmul.f32 %v4485_v5, %v1295_v25  ;;  %v1310_v26 = vadd.f32 %v1308_v45, %v5178_v53  ;;  %v4332_v53 = vld [vmem:[#allocation16 + $0xf4] sm:$0xf]  ;;  %v3797_v25 = vld [vmem:[#allocation16 + $0x178] sm:$0xf0]  ;;  %v3720_v13 = vor.u32 %v4328_v32, %v3717_v34  ;;  %v3748_v45 = vor.u32 %v4337_v40, %v3747_v39  ;;  %v3741_v21 = vld [vmem:[#allocation16 + $0x108] sm:$0xf0] }
 0x355   :  { %v3736_v59 = vor.u32 %v4332_v53, %v3733_v12  ;;  %v3800_v36 = vor.u32 %v4348_v24, %v3797_v25  ;;  %v4338_v53 = vld [vmem:[#allocation16 + $0x124] sm:$0xf]  ;;  %v3757_v12 = vld [vmem:[#allocation16 + $0x128] sm:$0xf0]  ;;  %v3749_v17 = vld [vmem:[#allocation16 + $0x118] sm:$0xf0]  ;;  %v3744_v11 = vor.u32 %v4334_v20, %v3741_v21 }
 0x356   :  { %v1297_v42 = vadd.f32 %v4485_v5, %v1296_v35  ;;  %v1312_v62 = vmul.f32 0.70710677, %v1310_v26  ;;  %1869 = vmatpush.bf16.msra.mxu3 %v3612_v61  ;;  %v3624_v35 = vor.u32 %v4304_v33, %v3621_v31  ;;  %v4324_v26 = vld [vmem:[#allocation16 + $0xb4] sm:$0xf]  ;;  %v4350_v21 = vld [vmem:[#allocation17] sm:$0xff] }
 0x357   :  { %v3704_v60 = vor.u32 %v4324_v26, %v3701_v57 }
 0x358   :  { %v1301_v50 = vsel %vm1300_vm10, %v4485_v5, %v1297_v42  ;;  %v3772_v5 = vor.u32 %v4343_v52, %v3771_v2  ;;  %1910 = vmatpush.bf16.msrb.mxu0 %v3624_v35  ;;  %v4302_v42 = vld [vmem:[#allocation16 + $0x4] sm:$0xf]  ;;  %v3765_v52 = vld [vmem:[#allocation16 + $0x138] sm:$0xf0]  ;;  %vm2101_vm10 = vcmask 64512  }
 0x359   :  { %v1306_v55 = vsel %vm1303_vm11, %v1305_v47, %v1301_v50  ;;  %v3709_v47 = vld [vmem:[#allocation16 + $0xc8] sm:$0xf0]  ;;  %v3616_v48 = vor.u32 %v4302_v42, %v3613_v46  ;;  %v4344_v50 = vld [vmem:[#allocation16 + $0x154] sm:$0xf] }
 0x35a   :  { %v1309_v56 = vmul.f32 %v1306_v55, %v1226_v49  ;;  %1893 = vmatpush.bf16.msra.mxu2 %v3772_v5  ;;  %1918 = vmatpush.bf16.msrb.mxu3 %v3736_v59  ;;  %v3712_v49 = vor.u32 %v4326_v43, %v3709_v47  ;;  %v3784_v54 = vor.u32 %v4344_v50, %v3781_v51  ;;  %v3739_v55 = vld [vmem:[#allocation16 + $0x100] sm:$0xf]  ;;  %v4320_v5 = vld [vmem:[#allocation16 + $0x94] sm:$0xf] }
 0x35b   :  { %v3688_v14 = vor.u32 %v4320_v5, %v3685_v8  ;;  %v3760_v59 = vor.u32 %v4338_v53, %v3757_v12  ;;  %v4354_v8 = vld [vmem:[#allocation17 + $0x20] sm:$0xff] }
 0x35c   :  { %v1311_v41 = vadd.f32 %v1309_v56, %v5182_v3  ;;  %v4319_v3 = vld [vmem:[#allocation16 + $0x84] sm:$0xf0]  ;;  %1911 = vmatpush.bf16.msrb.mxu0 %v3616_v48  ;;  %v3740_v56 = vor.u32 %v4335_v44, %v3739_v55  ;;  %v4464_v48 = vld [vmem:[%s5401_s9] ss:$0 sm:$0xff] }
 0x35d   :  { %v3676_v10 = vor.u32 %v4319_v3, %v3675_v16  ;;  %v4318_v16 = vld [vmem:[#allocation16 + $0x84] sm:$0xf]  ;;  %v3677_v3 = vld [vmem:[#allocation16 + $0x88] sm:$0xf0] }
 0x35e   :  { %v1313_v0 = vmul.f32 0.70710677, %v1311_v41  ;;  %1894 = vmatpush.bf16.msra.mxu2 %v3764_v19  ;;  %1919 = vmatpush.bf16.msrb.mxu3 %v3728_v23  ;;  %v3773_v41 = vld [vmem:[#allocation16 + $0x148] sm:$0xf0]  ;;  %v3680_v58 = vor.u32 %v4318_v16, %v3677_v3  ;;  %v4463_v19 = vld [vmem:[%s5405_s13] ss:$0 sm:$0xff] }
 0x35f   :  { %1883 = vmatpush.bf16.msra.mxu1 %v3676_v10  ;;  %v3776_v61 = vor.u32 %v4342_v6, %v3773_v41  ;;  %v4336_v10 = vld [vmem:[#allocation16 + $0x114] sm:$0xf] }
 0x360   :  { %v1314_v1 = vpack.c.bf16 %v1313_v0, %v1312_v62  ;;  %v4322_v62 = vld [vmem:[#allocation16 + $0xa4] sm:$0xf]  ;;  %v3693_v0 = vld [vmem:[#allocation16 + $0xa8] sm:$0xf0]  ;;  %v3752_v18 = vor.u32 %v4336_v10, %v3749_v17  ;;  %v4352_v10 = vld [vmem:[#allocation17 + $0x10] sm:$0xff] }
 0x361   :  { %v3696_v2 = vor.u32 %v4322_v62, %v3693_v0  ;;  %v4357_v62 = vld [vmem:[#allocation17 + $0x38] sm:$0xff] }
 0x362   :  { %1391 = vmatmul.bf16.vlgmr.msrb.gmra.mxu2 %v1314_v1  ;;  %1920 = vmatpush.bf16.msrb.mxu3 %v3720_v13  ;;  %v4340_v1 = vld [vmem:[#allocation16 + $0x134] sm:$0xf] }
 0x363   :  { %1932 = vmatpush.bf16.msrb.mxu1 %v3800_v36  ;;  %1895 = vmatpush.bf16.msra.mxu2 %v3756_v63  ;;  %v3768_v4 = vor.u32 %v4340_v1, %v3765_v52  ;;  %v4355_v52 = vld [vmem:[#allocation17 + $0x28] sm:$0xff] }
 0x366   :  { %1921 = vmatpush.bf16.msrb.mxu3 %v3712_v49 }
 0x367   :  { %1933 = vmatpush.bf16.msrb.mxu1 %v3792_v38  ;;  %1896 = vmatpush.bf16.msra.mxu2 %v3748_v45 }
 0x36a   :  { %1922 = vmatpush.bf16.msrb.mxu3 %v3704_v60 }
 0x36b   :  { %1934 = vmatpush.bf16.msrb.mxu1 %v3784_v54  ;;  %1897 = vmatpush.bf16.msra.mxu2 %v3740_v56 }
 0x36e   :  { %1923 = vmatpush.bf16.msrb.mxu3 %v3696_v2  ;;  %v4356_v2 = vld [vmem:[#allocation17 + $0x30] sm:$0xff] }
 0x36f   :  { %1935 = vmatpush.bf16.msrb.mxu1 %v3776_v61  ;;  %2055 = vmatpush.bf16.msrb.mxu2 %v4357_v62 }
 0x372   :  { %1924 = vmatpush.bf16.msrb.mxu3 %v3688_v14  ;;  %v4353_v14 = vld [vmem:[#allocation17 + $0x18] sm:$0xff] }
 0x373   :  { %1936 = vmatpush.bf16.msrb.mxu1 %v3768_v4  ;;  %2056 = vmatpush.bf16.msrb.mxu2 %v4356_v2 }
 0x376   :  { %1925 = vmatpush.bf16.msrb.mxu3 %v3680_v58  ;;  %v4351_v58 = vld [vmem:[#allocation17 + $0x8] sm:$0xff] }
 0x377   :  { %1937 = vmatpush.bf16.msrb.mxu1 %v3760_v59  ;;  %2057 = vmatpush.bf16.msrb.mxu2 %v4355_v52 }
 0x37b   :  { %1938 = vmatpush.bf16.msrb.mxu1 %v3752_v18  ;;  %2058 = vmatpush.bf16.msrb.mxu2 %v4354_v8 }
 0x37f   :  { %1939 = vmatpush.bf16.msrb.mxu1 %v3744_v11  ;;  %2059 = vmatpush.bf16.msrb.mxu2 %v4353_v14 }
 0x383   :  { %2060 = vmatpush.bf16.msrb.mxu2 %v4352_v10 }
 0x387   :  { %2061 = vmatpush.bf16.msrb.mxu2 %v4351_v58 }
 0x38b   :  { %2062 = vmatpush.bf16.msrb.mxu2 %v4350_v21 }
 0x3bf   :  { %v1533_v22 = vpop.f32.mrf.mxu0 }
 0x3c0   :  { %v5260_v23 = vadd.f32 %v4463_v19, %v1533_v22 }
 0x3c2   :  { %v1540_v24 = vrot.slane %v5260_v23, 6 }
 0x3c4   :  { %v1545_v36 = vsel %vm1544_vm12, 0.0, %v1540_v24  ;;  %v1550_v63 = vrot.slane %v1540_v24, 1  ;;  %v1558_v32 = vrot.slane %v1540_v24, 2 }
 0x3c5   :  { %v1549_v33 = vrot.slane %v1545_v36, 1  ;;  %v1557_v31 = vrot.slane %v1545_v36, 2 }
 0x3c7   :  { %v1535_v25 = vpop.f32.mrf.mxu0  ;;  %v1551_v40 = vsel %vm414_vm5, %v1549_v33, %v1550_v63  ;;  %v1559_v45 = vsel %vm423_vm7, %v1557_v31, %v1558_v32 }
 0x3c8   :  { %v5264_v27 = vadd.f32 %v4463_v19, %v1535_v25 }
 0x3ca   :  { %v1541_v28 = vrot.slane %v5264_v27, 6 }
 0x3cc   :  { %v1546_v35 = vsel %vm1544_vm12, 0.0, %v1541_v28  ;;  %v1553_v13 = vrot.slane %v1541_v28, 1  ;;  %v1561_v15 = vrot.slane %v1541_v28, 2  ;;  %v3804_v37 = vpack.c.bf16 %v1541_v28, %v1540_v24 }
 0x3cd   :  { %v1552_v38 = vrot.slane %v1546_v35, 1  ;;  %v1560_v39 = vrot.slane %v1546_v35, 2 }
 0x3ce   :  { %3805 = vmatmul.msk.bf16.vlgmr.msra.gmra.mxu3 %vm5268_vm14, %v3804_v37  ;;  %3810 = vmatmul.msk.bf16.vlgmr.msrb.gmra.mxu0 %vm5268_vm14, %v3804_v37 }
 0x3cf   :  { %v1554_v42 = vsel %vm414_vm5, %v1552_v38, %v1553_v13  ;;  %v1562_v46 = vsel %vm423_vm7, %v1560_v39, %v1561_v15 }
 0x3d0   :  { %v1566_v43 = vpack.c.bf16 %v1554_v42, %v1551_v40  ;;  %v1567_v47 = vpack.c.bf16 %v1562_v46, %v1559_v45 }
 0x3d2   :  { %1884 = vmatmul.bf16.vlgmr.msra.gmra.mxu1 %v1566_v43  ;;  %1898 = vmatmul.bf16.vlgmr.msra.gmra.mxu2 %v1567_v47 }
 0x3de   :  { %1926 = vmatmul.bf16.vlgmr.msrb.gmra.mxu3 %v1566_v43 }
 0x3e2   :  { %1940 = vmatmul.bf16.vlgmr.msrb.gmra.mxu1 %v1567_v47 }
 0x3e5   :  { %v1392_v49 = vpop.f32.mrf.mxu2 }
 0x3e6   :  { %v1393_v50 = vadd.f32 %v4464_v48, %v1392_v49 }
 0x3e8   :  { %v1397_v51 = vadd.f32 %v1393_v50, %v5109_v29  ;;  %v5285_v54 = vpack.c.bf16 %v1393_v50, %v1393_v50 }
 0x3ea   :  { %v1399_v55 = vmul.f32 0.70710677, %v1397_v51  ;;  %2082 = vmatpush.bf16.xpose.msra.mxu0 %v5285_v54 }
 0x3ec   :  { %v1403_v44 = vpack.c.bf16 %v1399_v55, %v1399_v55 }
 0x3ed   :  { %v1394_v56 = vpop.f32.mrf.mxu2 }
 0x3ee   :  { %v1395_v26 = vadd.f32 %v4464_v48, %v1394_v56  ;;  %v5288_v57 = vsel %vm2129_vm15, %v1403_v44, 0 }
 0x3f0   :  { %v1398_v60 = vadd.f32 %v1395_v26, %v5111_v30  ;;  %v5292_v6 = vpack.c.bf16 %v1395_v26, %v1395_v26  ;;  %v1616_v30 = vld [vmem:[%s5407_s15] sm:$0x3] }
 0x3f1   :  { %v1619_v12 = vperm.slane %v1616_v30, 1  ;;  %v1618_v37 = vperm.slane %v1616_v30, 0 }
 0x3f2   :  { %2140 = vmatpush.bf16.msrb.mxu0 %v5288_v57  ;;  %v1400_v41 = vmul.f32 0.70710677, %v1398_v60  ;;  %2095 = vmatpush.bf16.xpose.msra.mxu3 %v5292_v6 }
 0x3f4   :  { %v1404_v29 = vpack.c.bf16 %v1400_v41, %v1400_v41 }
 0x3f6   :  { %v5295_v61 = vsel %vm2129_vm15, %v1404_v29, 0 }
 0x3f7   :  { %2159 = vmatpush.bf16.msra.mxu1 %v5295_v61 }
 0x44b   :  { %v1913_v53 = vpop.f32.mrf.mxu0 }
 0x44c   :  { %v1914_v59 = vadd.f32 %v1913_v53, %v1619_v12  ;;  %v4465_v53 = vld [vmem:[%s5409_s17] ss:$0 sm:$0xff] }
 0x44f   :  { %v1885_v0 = vpop.f32.mrf.mxu1 }
 0x451   :  { %v1871_v1 = vpop.f32.mrf.mxu3 }
 0x452   :  { %v1872_v42 = vadd.f32 %v1871_v1, %v1618_v37 }
 0x453   :  { %v1915_v19 = vpop.f32.mrf.mxu0 }
 0x454   :  { %v1916_v11 = vadd.f32 %v1915_v19, %v1619_v12  ;;  %v1886_v50 = vadd.f32 %v1885_v0, %v1872_v42  ;;  %v4363_v42 = vld [vmem:[#allocation19 + $0x28] sm:$0xff] }
 0x455   :  { %v1899_v38 = vpop.f32.mrf.mxu2 }
 0x456   :  { %v1900_v2 = vadd.f32 %v1899_v38, %v1886_v50  ;;  %v4365_v38 = vld [vmem:[#allocation19 + $0x38] sm:$0xff] }
 0x457   :  { %v1887_v4 = vpop.f32.mrf.mxu1  ;;  %2234 = vmatpush.bf16.msra.mxu2 %v4365_v38 }
 0x459   :  { %v1873_v5 = vpop.f32.mrf.mxu3 }
 0x45a   :  { %v1874_v45 = vadd.f32 %v1873_v5, %v1618_v37 }
 0x45c   :  { %v1888_v51 = vadd.f32 %v1887_v4, %v1874_v45  ;;  %v4362_v45 = vld [vmem:[#allocation19 + $0x20] sm:$0xff] }
 0x45d   :  { %v1901_v60 = vpop.f32.mrf.mxu2 }
 0x45e   :  { %v1902_v52 = vadd.f32 %v1901_v60, %v1888_v51  ;;  %v3938_v60 = vld [vmem:[#allocation16 + $0x1f0] sm:$0xf] }
 0x45f   :  { %v1941_v16 = vpop.f32.mrf.mxu1 }
 0x461   :  { %v1927_v3 = vpop.f32.mrf.mxu3 }
 0x462   :  { %v1928_v17 = vadd.f32 %v1927_v3, %v1914_v59 }
 0x464   :  { %v1942_v18 = vadd.f32 %v1941_v16, %v1928_v17 }
 0x466   :  { %v3811_v20 = vmul.f32 -1.442695, %v1942_v18 }
 0x467   :  { %v1943_v25 = vpop.f32.mrf.mxu1 }
 0x468   :  { %4486 = vpow2.f32 %v3811_v20 }
 0x469   :  { %v1929_v22 = vpop.f32.mrf.mxu3 }
 0x46a   :  { %v1930_v24 = vadd.f32 %v1929_v22, %v1916_v11 }
 0x46c   :  { %v1944_v36 = vadd.f32 %v1943_v25, %v1930_v24 }
 0x46e   :  { %v4487_v28 = vpop.eup %4486  ;;  %v3812_v33 = vmul.f32 -1.442695, %v1944_v36 }
 0x46f   :  { %v1952_v63 = vadd.f32 1.0, %v4487_v28 }
 0x470   :  { %4488 = vpow2.f32 %v3812_v33 }
 0x471   :  { %4490 = vrcp.f32 %v1952_v63  ;;  %v1965_v47 = vand.u32 2147483648, %v1952_v63  ;;  %vm1959_vm2 = vweird.f32 %v1952_v63  ;;  %v1963_v49 = vand.u32 2147483647, %v1952_v63 }
 0x473   :  { %v1966_v41 = vor.u32 1.1754944e-38, %v1965_v47  ;;  %vm1964_vm4 = vcmp.eq.f32.partialorder %v1963_v49, 8.507059e+37 }
 0x476   :  { %v4489_v31 = vpop.eup %4488 }
 0x477   :  { %v4491_v32 = vpop.eup %4490  ;;  %v1953_v35 = vadd.f32 1.0, %v4489_v31 }
 0x478   :  { %v1955_v13 = vmul.f32 %v4491_v32, %v1952_v63  ;;  %vm1960_vm1 = vweird.f32 %v4491_v32 }
 0x479   :  { %4492 = vrcp.f32 %v1953_v35  ;;  %vm1961_vm0 = vmor %vm1959_vm2, %vm1960_vm1  ;;  %v1980_v55 = vand.u32 2147483648, %v1953_v35  ;;  %v1978_v26 = vand.u32 2147483647, %v1953_v35  ;;  %vm1974_vm6 = vweird.f32 %v1953_v35 }
 0x47a   :  { %v1956_v15 = vsub.f32 1.0, %v1955_v13 }
 0x47b   :  { %v1981_v1 = vor.u32 1.1754944e-38, %v1980_v55  ;;  %vm1979_vm9 = vcmp.eq.f32.partialorder %v1978_v26, 8.507059e+37  ;;  %v4361_v55 = vld [vmem:[#allocation19 + $0x18] sm:$0xff]  ;;  %v4358_v26 = vld [vmem:[#allocation19] sm:$0xff] }
 0x47c   :  { %v1957_v39 = vmul.f32 %v4491_v32, %v1956_v15 }
 0x47e   :  { %v1958_v43 = vadd.f32 %v4491_v32, %v1957_v39  ;;  %v4364_v39 = vld [vmem:[#allocation19 + $0x30] sm:$0xff] }
 0x47f   :  { %v4493_v40 = vpop.eup %4492  ;;  %2235 = vmatpush.bf16.msra.mxu2 %v4364_v39  ;;  %v4380_v39 = vld [vmem:[#allocation16 + $0x1f4] sm:$0xf] }
 0x480   :  { %v1970_v46 = vmul.f32 %v4493_v40, %v1953_v35  ;;  %v1962_v44 = vsel %vm1961_vm0, %v4491_v32, %v1958_v43  ;;  %vm1975_vm3 = vweird.f32 %v4493_v40 }
 0x481   :  { %v1967_v62 = vsel %vm1964_vm4, %v1966_v41, %v1962_v44  ;;  %vm1976_vm8 = vmor %vm1974_vm6, %vm1975_vm3  ;;  %v4360_v44 = vld [vmem:[#allocation19 + $0x10] sm:$0xff]  ;;  %v4381_v41 = vld [vmem:[#allocation16 + $0x1f4] sm:$0xf0] }
 0x482   :  { %v1971_v48 = vsub.f32 1.0, %v1970_v46  ;;  %v5301_v4 = vmul.f32 %v1967_v62, %v1900_v2  ;;  %v3939_v62 = vor.u32 %v4381_v41, %v3938_v60  ;;  %v4002_v2 = vld [vmem:[#allocation16 + $0x270] sm:$0xf]  ;;  %v3962_v60 = vld [vmem:[#allocation16 + $0x220] sm:$0xf] }
 0x483   :  { %2236 = vmatpush.bf16.msra.mxu2 %v4363_v42  ;;  %v3970_v42 = vld [vmem:[#allocation16 + $0x230] sm:$0xf]  ;;  %v4387_v41 = vld [vmem:[#allocation16 + $0x224] sm:$0xf0] }
 0x484   :  { %v1972_v56 = vmul.f32 %v4493_v40, %v1971_v48  ;;  %2581 = vmatpush.bf16.msrb.mxu3 %v3939_v62 }
 0x486   :  { %v1973_v29 = vadd.f32 %v4493_v40, %v1972_v56  ;;  %v4359_v56 = vld [vmem:[#allocation19 + $0x8] sm:$0xff] }
 0x487   :  { %2237 = vmatpush.bf16.msra.mxu2 %v4362_v45  ;;  %v4389_v45 = vld [vmem:[#allocation16 + $0x234] sm:$0xf0] }
 0x488   :  { %v1977_v30 = vsel %vm1976_vm8, %v4493_v40, %v1973_v29  ;;  %v3930_v29 = vld [vmem:[#allocation16 + $0x1e0] sm:$0xf] }
 0x489   :  { %v1982_v0 = vsel %vm1979_vm9, %v1981_v1, %v1977_v30  ;;  %v4379_v1 = vld [vmem:[#allocation16 + $0x1e4] sm:$0xf0] }
 0x48a   :  { %v5303_v5 = vmul.f32 %v1982_v0, %v1902_v52  ;;  %v4397_v52 = vld [vmem:[#allocation16 + $0x274] sm:$0xf0]  ;;  %v4066_v0 = vld [vmem:[#allocation16 + $0x2f0] sm:$0xf] }
 0x48b   :  { %2238 = vmatpush.bf16.msra.mxu2 %v4361_v55  ;;  %v4003_v30 = vor.u32 %v4397_v52, %v4002_v2  ;;  %v3971_v55 = vor.u32 %v4389_v45, %v3970_v42  ;;  %v4403_v2 = vld [vmem:[#allocation16 + $0x2a4] sm:$0xf0]  ;;  %v4376_v42 = vld [vmem:[#allocation16 + $0x1d4] sm:$0xf]  ;;  %v3924_v45 = vld [vmem:[#allocation16 + $0x1d8] sm:$0xf0] }
 0x48c   :  { %v1986_v8 = vpack.c.bf16 %v5303_v5, %v5301_v4 }
 0x48e   :  { %2063 = vmatmul.bf16.vlgmr.msrb.gmra.mxu2 %v1986_v8  ;;  %v4413_v8 = vld [vmem:[#allocation16 + $0x2f4] sm:$0xf0] }
 0x48f   :  { %2239 = vmatpush.bf16.msra.mxu2 %v4360_v44  ;;  %v4378_v44 = vld [vmem:[#allocation16 + $0x1e4] sm:$0xf] }
 0x493   :  { %2240 = vmatpush.bf16.msra.mxu2 %v4359_v56  ;;  %v3932_v56 = vld [vmem:[#allocation16 + $0x1e8] sm:$0xf0] }
 0x497   :  { %2241 = vmatpush.bf16.msra.mxu2 %v4358_v26 }
 0x511   :  { %v2064_v12 = vpop.f32.mrf.mxu2 }
 0x512   :  { %v2065_v14 = vadd.f32 %v4465_v53, %v2064_v12  ;;  %v4067_v12 = vor.u32 %v4413_v8, %v4066_v0  ;;  %v4369_v0 = vld [vmem:[#allocation16 + $0x194] sm:$0xf0]  ;;  %v3963_v8 = vor.u32 %v4387_v41, %v3962_v60  ;;  %v4390_v60 = vld [vmem:[#allocation16 + $0x244] sm:$0xf]  ;;  %v3980_v41 = vld [vmem:[#allocation16 + $0x248] sm:$0xf0] }
 0x514   :  { %v2069_v59 = vadd.f32 %v2065_v14, %v5214_v7  ;;  %v3922_v14 = vld [vmem:[#allocation16 + $0x1d0] sm:$0xf]  ;;  %2609 = vmatpush.bf16.msrb.mxu1 %v4067_v12 }
 0x515   :  { %v3954_v12 = vld [vmem:[#allocation16 + $0x210] sm:$0xf] }
 0x516   :  { %v2071_v16 = vmul.f32 0.70710677, %v2069_v59  ;;  %v3994_v59 = vld [vmem:[#allocation16 + $0x260] sm:$0xf] }
 0x518   :  { %v2073_v3 = vpack.c.bf16 %v2071_v16, %v2071_v16  ;;  %v4395_v16 = vld [vmem:[#allocation16 + $0x264] sm:$0xf0] }
 0x519   :  { %v2066_v10 = vpop.f32.mrf.mxu2 }
 0x51a   :  { %v2067_v17 = vadd.f32 %v4465_v53, %v2066_v10  ;;  %2083 = vmatmul.bf16.vlgmr.msra.gmra.mxu0 %v2073_v3  ;;  %v3931_v53 = vor.u32 %v4379_v1, %v3930_v29  ;;  %v4377_v3 = vld [vmem:[#allocation16 + $0x1d4] sm:$0xf0]  ;;  %v3995_v10 = vor.u32 %v4395_v16, %v3994_v59  ;;  %v3935_v29 = vor.u32 %v4378_v44, %v3932_v56  ;;  %v4026_v1 = vld [vmem:[#allocation16 + $0x2a0] sm:$0xf]  ;;  %v4018_v59 = vld [vmem:[#allocation16 + $0x290] sm:$0xf] }
 0x51b   :  { %2595 = vmatpush.bf16.msra.mxu0 %v4003_v30  ;;  %v3890_v30 = vld [vmem:[#allocation16 + $0x190] sm:$0xf]  ;;  %v4401_v16 = vld [vmem:[#allocation16 + $0x294] sm:$0xf0]  ;;  %v4374_v44 = vld [vmem:[#allocation16 + $0x1c4] sm:$0xf] }
 0x51c   :  { %v2070_v58 = vadd.f32 %v2067_v17, %v5216_v9  ;;  %v4058_v17 = vld [vmem:[#allocation16 + $0x2e0] sm:$0xf]  ;;  %2582 = vmatpush.bf16.msrb.mxu3 %v3931_v53  ;;  %v4027_v53 = vor.u32 %v4403_v2, %v4026_v1  ;;  %v3916_v56 = vld [vmem:[#allocation16 + $0x1c8] sm:$0xf0]  ;;  %v4052_v1 = vld [vmem:[#allocation16 + $0x2d8] sm:$0xf0] }
 0x51d   :  { %v4419_v2 = vld [vmem:[#allocation17 + $0x28] sm:$0xff] }
 0x51e   :  { %v2072_v18 = vmul.f32 0.70710677, %v2070_v58  ;;  %v4411_v58 = vld [vmem:[#allocation16 + $0x2e4] sm:$0xf0] }
 0x51f   :  { %2596 = vmatpush.bf16.msra.mxu0 %v3995_v10  ;;  %v3882_v10 = vld [vmem:[#allocation16 + $0x180] sm:$0xf] }
 0x520   :  { %v2074_v19 = vpack.c.bf16 %v2072_v18, %v2072_v18  ;;  %v4059_v18 = vor.u32 %v4411_v58, %v4058_v17  ;;  %v4367_v58 = vld [vmem:[#allocation16 + $0x184] sm:$0xf0] }
 0x522   :  { %2096 = vmatmul.bf16.vlgmr.msra.gmra.mxu3 %v2074_v19  ;;  %v3986_v19 = vld [vmem:[#allocation16 + $0x250] sm:$0xf]  ;;  %2610 = vmatpush.bf16.msrb.mxu1 %v4059_v18 }
 0x597   :  { %v2084_v20 = vpop.f32.mrf.mxu0 }
 0x598   :  { %v2102_v21 = vsel %vm2101_vm10, %v2084_v20, -inf }
 0x599   :  { %2103 = vmax.xlane.f32.xlu2 %v2102_v21  ;;  %v4050_v21 = vld [vmem:[#allocation16 + $0x2d0] sm:$0xf] }
 0x59f   :  { %v2086_v11 = vpop.f32.mrf.mxu0 }
 0x5a0   :  { %v4409_v11 = vld [vmem:[#allocation16 + $0x2d4] sm:$0xf0] }
 0x5a5   :  { %v2097_v22 = vpop.f32.mrf.mxu3 }
 0x5a6   :  { %v2105_v24 = vsel %vm2101_vm10, %v2097_v22, -inf }
 0x5a7   :  { %2106 = vmax.xlane.f32.xlu2 %v2105_v24  ;;  %v3914_v24 = vld [vmem:[#allocation16 + $0x1c0] sm:$0xf] }
 0x5ad   :  { %v2099_v25 = vpop.f32.mrf.mxu3 }
 0x5ae   :  { %v4375_v25 = vld [vmem:[#allocation16 + $0x1c4] sm:$0xf0] }
 0x60c   :  { %v2104_v36 = vpop.xlane.xlu2 %2103 }
 0x60d   :  { %v2108_v28 = vsub.f32 %v2084_v20, %v2104_v36  ;;  %v4393_v20 = vld [vmem:[#allocation16 + $0x254] sm:$0xf0] }
 0x60e   :  { %v3987_v36 = vor.u32 %v4393_v20, %v3986_v19  ;;  %v4396_v19 = vld [vmem:[#allocation16 + $0x274] sm:$0xf]  ;;  %v4004_v20 = vld [vmem:[#allocation16 + $0x278] sm:$0xf0] }
 0x60f   :  { %v2110_v33 = vmul.f32 1.442695, %v2108_v28  ;;  %v4051_v28 = vor.u32 %v4409_v11, %v4050_v21  ;;  %v4019_v11 = vor.u32 %v4401_v16, %v4018_v59  ;;  %v4044_v16 = vld [vmem:[#allocation16 + $0x2c8] sm:$0xf0] }
 0x610   :  { %2597 = vmatpush.bf16.msra.mxu0 %v3987_v36  ;;  %v4399_v36 = vld [vmem:[#allocation16 + $0x284] sm:$0xf0] }
 0x611   :  { %4494 = vpow2.f32 %v2110_v33  ;;  %v3978_v33 = vld [vmem:[#allocation16 + $0x240] sm:$0xf]  ;;  %2611 = vmatpush.bf16.msrb.mxu1 %v4051_v28  ;;  %v4412_v28 = vld [vmem:[#allocation16 + $0x2f4] sm:$0xf] }
 0x617   :  { %v4495_v63 = vpop.eup %4494 }
 0x618   :  { %v2114_v31 = vsel %vm2101_vm10, %v4495_v63, 0.0 }
 0x619   :  { %2115 = vadd.xlane.f32.xlu0 %v2114_v31 }
 0x61a   :  { %v2107_v32 = vpop.xlane.xlu2 %2106 }
 0x61b   :  { %v2109_v35 = vsub.f32 %v2097_v22, %v2107_v32  ;;  %v3923_v22 = vor.u32 %v4377_v3, %v3922_v14  ;;  %v4042_v32 = vld [vmem:[#allocation16 + $0x2c0] sm:$0xf]  ;;  %v4385_v14 = vld [vmem:[#allocation16 + $0x214] sm:$0xf0]  ;;  %v3891_v3 = vor.u32 %v4369_v0, %v3890_v30  ;;  %v4372_v30 = vld [vmem:[#allocation16 + $0x1b4] sm:$0xf] }
 0x61c   :  { %v3955_v18 = vor.u32 %v4385_v14, %v3954_v12  ;;  %v3908_v0 = vld [vmem:[#allocation16 + $0x1b8] sm:$0xf0]  ;;  %v4406_v14 = vld [vmem:[#allocation16 + $0x2c4] sm:$0xf] }
 0x61d   :  { %v2112_v13 = vmul.f32 1.442695, %v2109_v35  ;;  %v4407_v35 = vld [vmem:[#allocation16 + $0x2c4] sm:$0xf0]  ;;  %2583 = vmatpush.bf16.msrb.mxu3 %v3923_v22  ;;  %v3946_v22 = vld [vmem:[#allocation16 + $0x200] sm:$0xf] }
 0x61e   :  { %v3972_v12 = vld [vmem:[#allocation16 + $0x238] sm:$0xf0] }
 0x61f   :  { %4496 = vpow2.f32 %v2112_v13  ;;  %v3915_v13 = vor.u32 %v4375_v25, %v3914_v24  ;;  %v4383_v24 = vld [vmem:[#allocation16 + $0x204] sm:$0xf0]  ;;  %v4010_v25 = vld [vmem:[#allocation16 + $0x280] sm:$0xf] }
 0x621   :  { %2584 = vmatpush.bf16.msrb.mxu3 %v3915_v13  ;;  %v4011_v13 = vor.u32 %v4399_v36, %v4010_v25  ;;  %v4368_v36 = vld [vmem:[#allocation16 + $0x194] sm:$0xf] }
 0x625   :  { %v4497_v15 = vpop.eup %4496 }
 0x626   :  { %v2117_v37 = vsel %vm2101_vm10, %v4497_v15, 0.0 }
 0x627   :  { %2118 = vadd.xlane.f32.xlu1 %v2117_v37  ;;  %v4373_v37 = vld [vmem:[#allocation16 + $0x1b4] sm:$0xf0] }
 0x68c   :  { %v2116_v40 = vpop.xlane.xlu0 %2115 }
 0x68d   :  { %4498 = vrcp.f32 %v2116_v40  ;;  %v4043_v40 = vor.u32 %v4407_v35, %v4042_v32  ;;  %v4007_v32 = vor.u32 %v4396_v19, %v4004_v20  ;;  %v3947_v35 = vor.u32 %v4383_v24, %v3946_v22  ;;  %v4386_v19 = vld [vmem:[#allocation16 + $0x224] sm:$0xf]  ;;  %v3964_v20 = vld [vmem:[#allocation16 + $0x228] sm:$0xf0]  ;;  %v4036_v22 = vld [vmem:[#allocation16 + $0x2b8] sm:$0xf0] }
 0x68e   :  { %v4417_v24 = vld [vmem:[#allocation17 + $0x18] sm:$0xff] }
 0x68f   :  { %2612 = vmatpush.bf16.msrb.mxu1 %v4043_v40 }
 0x693   :  { %v4499_v46 = vpop.eup %4498 }
 0x694   :  { %v2122_v43 = vmul.f32 %v4499_v46, %v4495_v63  ;;  %v4391_v63 = vld [vmem:[#allocation16 + $0x244] sm:$0xf0]  ;;  %v3940_v46 = vld [vmem:[#allocation16 + $0x1f8] sm:$0xf0] }
 0x695   :  { %v3979_v38 = vor.u32 %v4391_v63, %v3978_v33  ;;  %v4068_v33 = vld [vmem:[#allocation16 + $0x2f8] sm:$0xf0]  ;;  %v3883_v63 = vor.u32 %v4367_v58, %v3882_v10  ;;  %v4047_v10 = vor.u32 %v4406_v14, %v4044_v16  ;;  %v3900_v58 = vld [vmem:[#allocation16 + $0x1a8] sm:$0xf0] }
 0x696   :  { %v2124_v47 = vpack.c.bf16 %v2122_v43, %v2122_v43  ;;  %v4034_v43 = vld [vmem:[#allocation16 + $0x2b0] sm:$0xf] }
 0x697   :  { %2598 = vmatpush.bf16.msra.mxu0 %v3979_v38  ;;  %v4071_v38 = vor.u32 %v4412_v28, %v4068_v33  ;;  %v3892_v28 = vld [vmem:[#allocation16 + $0x198] sm:$0xf0] }
 0x698   :  { %3845 = vmatmul.msk.bf16.vlgmr.msrb.gmra.mxu0 %vm2101_vm10, %v2124_v47  ;;  %v4405_v47 = vld [vmem:[#allocation16 + $0x2b4] sm:$0xf0]  ;;  %v3895_v33 = vor.u32 %v4368_v36, %v3892_v28  ;;  %v3879_v36 = vld [vmem:[%s5407_s15 + $0x2] sm:$0x3] }
 0x699   :  { %v4035_v26 = vor.u32 %v4405_v47, %v4034_v43  ;;  %v4392_v43 = vld [vmem:[#allocation16 + $0x254] sm:$0xf]  ;;  %v3988_v47 = vld [vmem:[#allocation16 + $0x258] sm:$0xf0] }
 0x69a   :  { %v2119_v48 = vpop.xlane.xlu1 %2118 }
 0x69b   :  { %4500 = vrcp.f32 %v2119_v48  ;;  %v3943_v48 = vor.u32 %v4380_v39, %v3940_v46  ;;  %2599 = vmatpush.bf16.msra.mxu0 %v3971_v55  ;;  %2613 = vmatpush.bf16.msrb.mxu1 %v4035_v26  ;;  %v3927_v46 = vor.u32 %v4376_v42, %v3924_v45  ;;  %v3919_v26 = vor.u32 %v4374_v44, %v3916_v56  ;;  %v4382_v42 = vld [vmem:[#allocation16 + $0x204] sm:$0xf]  ;;  %v3948_v45 = vld [vmem:[#allocation16 + $0x208] sm:$0xf0]  ;;  %v4466_v56 = vld [vmem:[%s5411_s19] ss:$0 sm:$0xff] }
 0x69d   :  { %2623 = vmatpush.bf16.msrb.mxu2 %v3943_v48  ;;  %v4410_v48 = vld [vmem:[#allocation16 + $0x2e4] sm:$0xf] }
 0x69f   :  { %2600 = vmatpush.bf16.msra.mxu0 %v3963_v8  ;;  %2614 = vmatpush.bf16.msrb.mxu1 %v4027_v53  ;;  %v3911_v8 = vor.u32 %v4372_v30, %v3908_v0  ;;  %v4388_v53 = vld [vmem:[#allocation16 + $0x234] sm:$0xf] }
 0x6a0   :  { %v3975_v59 = vor.u32 %v4388_v53, %v3972_v12 }
 0x6a1   :  { %v4501_v49 = vpop.eup %4500  ;;  %2624 = vmatpush.bf16.msrb.mxu2 %v3935_v29  ;;  %v4408_v29 = vld [vmem:[#allocation16 + $0x2d4] sm:$0xf] }
 0x6a2   :  { %v2123_v50 = vmul.f32 %v4501_v49, %v4497_v15  ;;  %v3906_v15 = vld [vmem:[#allocation16 + $0x1b0] sm:$0xf] }
 0x6a3   :  { %v3907_v49 = vor.u32 %v4373_v37, %v3906_v15  ;;  %2601 = vmatpush.bf16.msra.mxu0 %v3955_v18  ;;  %2615 = vmatpush.bf16.msrb.mxu1 %v4019_v11  ;;  %v4394_v15 = vld [vmem:[#allocation16 + $0x264] sm:$0xf]  ;;  %v3996_v37 = vld [vmem:[#allocation16 + $0x268] sm:$0xf0]  ;;  %v3967_v11 = vor.u32 %v4386_v19, %v3964_v20 }
 0x6a4   :  { %v2125_v51 = vpack.c.bf16 %v2123_v50, %v2123_v50  ;;  %v3898_v50 = vld [vmem:[#allocation16 + $0x1a0] sm:$0xf]  ;;  %v3999_v40 = vor.u32 %v4394_v15, %v3996_v37  ;;  %v4028_v15 = vld [vmem:[#allocation16 + $0x2a8] sm:$0xf0]  ;;  %v4416_v37 = vld [vmem:[#allocation17 + $0x10] sm:$0xff] }
 0x6a5   :  { %2585 = vmatpush.bf16.msrb.mxu3 %v3907_v49  ;;  %2625 = vmatpush.bf16.msrb.mxu2 %v3927_v46  ;;  %v3991_v49 = vor.u32 %v4392_v43, %v3988_v47  ;;  %v4400_v46 = vld [vmem:[#allocation16 + $0x294] sm:$0xf]  ;;  %v3951_v43 = vor.u32 %v4382_v42, %v3948_v45  ;;  %v4020_v47 = vld [vmem:[#allocation16 + $0x298] sm:$0xf0] }
 0x6a6   :  { %3846 = vmatmul.msk.bf16.vlgmr.msra.gmra.mxu1 %vm2101_vm10, %v2125_v51  ;;  %v4371_v51 = vld [vmem:[#allocation16 + $0x1a4] sm:$0xf0] }
 0x6a7   :  { %v3899_v52 = vor.u32 %v4371_v51, %v3898_v50  ;;  %2602 = vmatpush.bf16.msra.mxu0 %v3947_v35  ;;  %2616 = vmatpush.bf16.msrb.mxu1 %v4011_v13  ;;  %v4060_v50 = vld [vmem:[#allocation16 + $0x2e8] sm:$0xf0]  ;;  %v4420_v51 = vld [vmem:[#allocation17 + $0x30] sm:$0xff]  ;;  %v4402_v35 = vld [vmem:[#allocation16 + $0x2a4] sm:$0xf] }
 0x6a8   :  { %v4063_v55 = vor.u32 %v4410_v48, %v4060_v50  ;;  %v4415_v48 = vld [vmem:[#allocation17 + $0x8] sm:$0xff]  ;;  %v4398_v50 = vld [vmem:[#allocation16 + $0x284] sm:$0xf] }
 0x6a9   :  { %2586 = vmatpush.bf16.msrb.mxu3 %v3899_v52  ;;  %2626 = vmatpush.bf16.msrb.mxu2 %v3919_v26  ;;  %v4055_v52 = vor.u32 %v4408_v29, %v4052_v1 }
 0x6ab   :  { %2651 = vmatpush.bf16.msrb.mxu0 %v4071_v38  ;;  %v4031_v38 = vor.u32 %v4402_v35, %v4028_v15 }
 0x6ad   :  { %2587 = vmatpush.bf16.msrb.mxu3 %v3891_v3  ;;  %2627 = vmatpush.bf16.msrb.mxu2 %v3911_v8  ;;  %v4418_v3 = vld [vmem:[#allocation17 + $0x20] sm:$0xff] }
 0x6af   :  { %2652 = vmatpush.bf16.msrb.mxu0 %v4063_v55  ;;  %v4414_v55 = vld [vmem:[#allocation17] sm:$0xff] }
 0x6b1   :  { %2588 = vmatpush.bf16.msrb.mxu3 %v3883_v63  ;;  %v4384_v63 = vld [vmem:[#allocation16 + $0x214] sm:$0xf] }
 0x6b3   :  { %2653 = vmatpush.bf16.msrb.mxu0 %v4055_v52 }
 0x6b5   :  { %2637 = vmatpush.bf16.msra.mxu3 %v4007_v32  ;;  %v3956_v32 = vld [vmem:[#allocation16 + $0x218] sm:$0xf0] }
 0x6b6   :  { %v3959_v13 = vor.u32 %v4384_v63, %v3956_v32  ;;  %v2338_v63 = vperm.slane %v3879_v36, 1 }
 0x6b7   :  { %2654 = vmatpush.bf16.msrb.mxu0 %v4047_v10 }
 0x6b9   :  { %2638 = vmatpush.bf16.msra.mxu3 %v3999_v40 }
 0x6bd   :  { %2639 = vmatpush.bf16.msra.mxu3 %v3991_v49  ;;  %v4023_v49 = vor.u32 %v4400_v46, %v4020_v47 }
 0x715   :  { %v5318_v31 = vpop.f32.mrf.mxu0 }
 0x71d   :  { %v2144_v62 = vpop.f32.mrf.mxu0 }
 0x71e   :  { %v3983_v62 = vor.u32 %v4390_v60, %v3980_v41 }
 0x720   :  { %2640 = vmatpush.bf16.msra.mxu3 %v3983_v62 }
 0x723   :  { %v2161_v17 = vpop.f32.mrf.mxu1 }
 0x724   :  { %v2165_v21 = vpack.c.bf16 %v2161_v17, %v5318_v31  ;;  %v4421_v31 = vld [vmem:[#allocation17 + $0x38] sm:$0xff]  ;;  %v4370_v17 = vld [vmem:[#allocation16 + $0x1a4] sm:$0xf]  ;;  %2641 = vmatpush.bf16.msra.mxu3 %v3975_v59 }
 0x725   :  { %2774 = vmatpush.bf16.msra.mxu1 %v4421_v31  ;;  %v3903_v18 = vor.u32 %v4370_v17, %v3900_v58  ;;  %v4366_v31 = vld [vmem:[#allocation16 + $0x184] sm:$0xf] }
 0x726   :  { %2242 = vmatmul.bf16.vlgmr.msra.gmra.mxu2 %v2165_v21  ;;  %v4404_v21 = vld [vmem:[#allocation16 + $0x2b4] sm:$0xf] }
 0x727   :  { %2628 = vmatpush.bf16.msrb.mxu2 %v3903_v18  ;;  %v4039_v25 = vor.u32 %v4404_v21, %v4036_v22 }
 0x728   :  { %2642 = vmatpush.bf16.msra.mxu3 %v3967_v11 }
 0x729   :  { %2775 = vmatpush.bf16.msra.mxu1 %v4420_v51  ;;  %2655 = vmatpush.bf16.msrb.mxu0 %v4039_v25  ;;  %v4012_v51 = vld [vmem:[#allocation16 + $0x288] sm:$0xf0] }
 0x72a   :  { %v4015_v44 = vor.u32 %v4398_v50, %v4012_v51  ;;  %v2337_v51 = vperm.slane %v3879_v36, 0 }
 0x72b   :  { %v2163_v39 = vpop.f32.mrf.mxu1  ;;  %2629 = vmatpush.bf16.msrb.mxu2 %v3895_v33 }
 0x72c   :  { %v3884_v39 = vld [vmem:[#allocation16 + $0x188] sm:$0xf0]  ;;  %2643 = vmatpush.bf16.msra.mxu3 %v3959_v13 }
 0x72d   :  { %2776 = vmatpush.bf16.msra.mxu1 %v4419_v2  ;;  %v3887_v40 = vor.u32 %v4366_v31, %v3884_v39  ;;  %2656 = vmatpush.bf16.msrb.mxu0 %v4031_v38 }
 0x72f   :  { %2630 = vmatpush.bf16.msrb.mxu2 %v3887_v40 }
 0x730   :  { %2644 = vmatpush.bf16.msra.mxu3 %v3951_v43 }
 0x731   :  { %2777 = vmatpush.bf16.msra.mxu1 %v4418_v3  ;;  %2657 = vmatpush.bf16.msrb.mxu0 %v4023_v49 }
 0x735   :  { %2778 = vmatpush.bf16.msra.mxu1 %v4417_v24  ;;  %2658 = vmatpush.bf16.msrb.mxu0 %v4015_v44 }
 0x739   :  { %2779 = vmatpush.bf16.msra.mxu1 %v4416_v37 }
 0x73d   :  { %2780 = vmatpush.bf16.msra.mxu1 %v4415_v48 }
 0x741   :  { %2781 = vmatpush.bf16.msra.mxu1 %v4414_v55 }
 0x7a9   :  { %v2243_v26 = vpop.f32.mrf.mxu2 }
 0x7aa   :  { %v2244_v60 = vadd.f32 %v4466_v56, %v2243_v26 }
 0x7ac   :  { %v2248_v41 = vadd.f32 %v2244_v60, %v5301_v4 }
 0x7ae   :  { %v2250_v29 = vmul.f32 0.70710677, %v2248_v41 }
 0x7b0   :  { %v2252_v62 = vadd.f32 %v2250_v29, %v5260_v23 }
 0x7b1   :  { %v2245_v1 = vpop.f32.mrf.mxu2 }
 0x7b2   :  { %v5326_v2 = vmul.f32 0.70710677, %v2252_v62  ;;  %v2246_v52 = vadd.f32 %v4466_v56, %v2245_v1 }
 0x7b4   :  { %v2249_v30 = vadd.f32 %v2246_v52, %v5303_v5  ;;  %v2258_v0 = vrot.slane %v5326_v2, 6 }
 0x7b6   :  { %v2251_v8 = vmul.f32 0.70710677, %v2249_v30  ;;  %v2262_v14 = vsel %vm1544_vm12, 0.0, %v2258_v0  ;;  %v2267_v16 = vrot.slane %v2258_v0, 1  ;;  %v2275_v3 = vrot.slane %v2258_v0, 2 }
 0x7b7   :  { %v2266_v59 = vrot.slane %v2262_v14, 1  ;;  %v2274_v23 = vrot.slane %v2262_v14, 2 }
 0x7b8   :  { %v2253_v53 = vadd.f32 %v2251_v8, %v5264_v27 }
 0x7b9   :  { %v2268_v27 = vsel %vm414_vm5, %v2266_v59, %v2267_v16  ;;  %v2276_v21 = vsel %vm423_vm7, %v2274_v23, %v2275_v3 }
 0x7ba   :  { %v5331_v12 = vmul.f32 0.70710677, %v2253_v53 }
 0x7bc   :  { %v2259_v4 = vrot.slane %v5331_v12, 6 }
 0x7be   :  { %v4075_v10 = vpack.c.bf16 %v2259_v4, %v2258_v0  ;;  %v2263_v17 = vsel %vm1544_vm12, 0.0, %v2259_v4  ;;  %v2270_v58 = vrot.slane %v2259_v4, 1  ;;  %v2278_v5 = vrot.slane %v2259_v4, 2 }
 0x7bf   :  { %v2269_v18 = vrot.slane %v2263_v17, 1  ;;  %v2277_v19 = vrot.slane %v2263_v17, 2 }
 0x7c0   :  { %4076 = vmatmul.msk.bf16.vlgmr.msrb.gmra.mxu3 %vm5268_vm14, %v4075_v10  ;;  %4081 = vmatmul.msk.bf16.vlgmr.msrb.gmra.mxu2 %vm5268_vm14, %v4075_v10 }
 0x7c1   :  { %2814 = vmatpush.bf16.xpose.msrb.mxu3 %v5292_v6  ;;  %v2271_v20 = vsel %vm414_vm5, %v2269_v18, %v2270_v58  ;;  %v2279_v11 = vsel %vm423_vm7, %v2277_v19, %v2278_v5 }
 0x7c2   :  { %v2283_v22 = vpack.c.bf16 %v2271_v20, %v2268_v27  ;;  %v2284_v24 = vpack.c.bf16 %v2279_v11, %v2276_v21  ;;  %v4467_v21 = vld [vmem:[%s5409_s17] ss:$0 sm:$0xff] }
 0x7c4   :  { %2603 = vmatmul.bf16.vlgmr.msra.gmra.mxu0 %v2283_v22  ;;  %2617 = vmatmul.bf16.vlgmr.msrb.gmra.mxu1 %v2284_v24 }
 0x7c5   :  { %2801 = vmatpush.bf16.xpose.msra.mxu0 %v5285_v54  ;;  %2870 = vmatpush.bf16.msrb.mxu1 %v5295_v61 }
 0x7d0   :  { %2645 = vmatmul.bf16.vlgmr.msra.gmra.mxu3 %v2283_v22 }
 0x7d4   :  { %2659 = vmatmul.bf16.vlgmr.msrb.gmra.mxu0 %v2284_v24 }
 0x7d5   :  { %2854 = vmatpush.bf16.msrb.mxu0 %v5288_v57 }
 0x841   :  { %v2604_v34 = vpop.f32.mrf.mxu0  ;;  %v2618_v44 = vpop.f32.mrf.mxu1 }
 0x843   :  { %v2590_v6 = vpop.f32.mrf.mxu3  ;;  %v2632_v33 = vpop.f32.mrf.mxu2 }
 0x844   :  { %v2633_v32 = vadd.f32 %v2632_v33, %v2338_v63  ;;  %v2591_v26 = vadd.f32 %v2590_v6, %v2337_v51 }
 0x846   :  { %v2605_v30 = vadd.f32 %v2604_v34, %v2591_v26 }
 0x848   :  { %v2619_v17 = vadd.f32 %v2618_v44, %v2605_v30  ;;  %v4436_v30 = vld [vmem:[#allocation20 + $0x30] sm:$0xff] }
 0x849   :  { %v2606_v25 = vpop.f32.mrf.mxu0  ;;  %v2620_v23 = vpop.f32.mrf.mxu1 }
 0x84b   :  { %v2592_v28 = vpop.f32.mrf.mxu3  ;;  %v2634_v61 = vpop.f32.mrf.mxu2 }
 0x84c   :  { %v2635_v38 = vadd.f32 %v2634_v61, %v2338_v63  ;;  %v2593_v60 = vadd.f32 %v2592_v28, %v2337_v51 }
 0x84e   :  { %v2607_v0 = vadd.f32 %v2606_v25, %v2593_v60 }
 0x850   :  { %v2621_v58 = vadd.f32 %v2620_v23, %v2607_v0  ;;  %v4435_v0 = vld [vmem:[#allocation20 + $0x28] sm:$0xff]  ;;  %v4433_v23 = vld [vmem:[#allocation20 + $0x18] sm:$0xff] }
 0x851   :  { %v2660_v35 = vpop.f32.mrf.mxu0 }
 0x853   :  { %v2646_v13 = vpop.f32.mrf.mxu3 }
 0x854   :  { %v2647_v54 = vadd.f32 %v2646_v13, %v2633_v32 }
 0x856   :  { %v2661_v15 = vadd.f32 %v2660_v35, %v2647_v54 }
 0x858   :  { %v4082_v37 = vmul.f32 -1.442695, %v2661_v15 }
 0x859   :  { %v2662_v39 = vpop.f32.mrf.mxu0 }
 0x85a   :  { %4502 = vpow2.f32 %v4082_v37 }
 0x85b   :  { %v2648_v57 = vpop.f32.mrf.mxu3 }
 0x85c   :  { %v2649_v31 = vadd.f32 %v2648_v57, %v2635_v38 }
 0x85e   :  { %v2663_v40 = vadd.f32 %v2662_v39, %v2649_v31 }
 0x860   :  { %v4503_v42 = vpop.eup %4502  ;;  %v4083_v45 = vmul.f32 -1.442695, %v2663_v40 }
 0x861   :  { %v2671_v46 = vadd.f32 1.0, %v4503_v42 }
 0x862   :  { %4504 = vpow2.f32 %v4083_v45 }
 0x863   :  { %4506 = vrcp.f32 %v2671_v46  ;;  %v2684_v62 = vand.u32 2147483648, %v2671_v46  ;;  %vm2678_vm7 = vweird.f32 %v2671_v46  ;;  %v2682_v52 = vand.u32 2147483647, %v2671_v46 }
 0x865   :  { %v2685_v59 = vor.u32 1.1754944e-38, %v2684_v62  ;;  %vm2683_vm13 = vcmp.eq.f32.partialorder %v2682_v52, 8.507059e+37  ;;  %v4423_v62 = vld [vmem:[#allocation19 + $0x8] sm:$0xff]  ;;  %v4437_v52 = vld [vmem:[#allocation20 + $0x38] sm:$0xff] }
 0x866   :  { %3036 = vmatpush.bf16.msra.mxu3 %v4437_v52 }
 0x868   :  { %v4505_v43 = vpop.eup %4504 }
 0x869   :  { %v4507_v47 = vpop.eup %4506  ;;  %v2672_v48 = vadd.f32 1.0, %v4505_v43  ;;  %v4428_v43 = vld [vmem:[#allocation19 + $0x30] sm:$0xff] }
 0x86a   :  { %v2674_v49 = vmul.f32 %v4507_v47, %v2671_v46  ;;  %vm2679_vm5 = vweird.f32 %v4507_v47  ;;  %v4429_v46 = vld [vmem:[#allocation19 + $0x38] sm:$0xff]  ;;  %3037 = vmatpush.bf16.msra.mxu3 %v4436_v30 }
 0x86b   :  { %4508 = vrcp.f32 %v2672_v48  ;;  %vm2680_vm11 = vmor %vm2678_vm7, %vm2679_vm5  ;;  %v2699_v8 = vand.u32 2147483648, %v2672_v48  ;;  %v2697_v4 = vand.u32 2147483647, %v2672_v48  ;;  %vm2693_vm14 = vweird.f32 %v2672_v48  ;;  %2945 = vmatpush.bf16.msra.mxu2 %v4429_v46 }
 0x86c   :  { %v2675_v50 = vsub.f32 1.0, %v2674_v49  ;;  %v4426_v49 = vld [vmem:[#allocation19 + $0x20] sm:$0xff] }
 0x86d   :  { %v2700_v10 = vor.u32 1.1754944e-38, %v2699_v8  ;;  %vm2698_vm1 = vcmp.eq.f32.partialorder %v2697_v4, 8.507059e+37 }
 0x86e   :  { %v2676_v55 = vmul.f32 %v4507_v47, %v2675_v50  ;;  %3038 = vmatpush.bf16.msra.mxu3 %v4435_v0 }
 0x86f   :  { %2946 = vmatpush.bf16.msra.mxu2 %v4428_v43 }
 0x870   :  { %v2677_v29 = vadd.f32 %v4507_v47, %v2676_v55 }
 0x871   :  { %v4509_v56 = vpop.eup %4508 }
 0x872   :  { %v2689_v41 = vmul.f32 %v4509_v56, %v2672_v48  ;;  %v2681_v53 = vsel %vm2680_vm11, %v4507_v47, %v2677_v29  ;;  %vm2694_vm12 = vweird.f32 %v4509_v56  ;;  %v4427_v48 = vld [vmem:[#allocation19 + $0x28] sm:$0xff]  ;;  %v4424_v29 = vld [vmem:[#allocation19 + $0x10] sm:$0xff] }
 0x873   :  { %v2686_v3 = vsel %vm2683_vm13, %v2685_v59, %v2681_v53  ;;  %vm2695_vm15 = vmor %vm2693_vm14, %vm2694_vm12  ;;  %2947 = vmatpush.bf16.msra.mxu2 %v4427_v48 }
 0x874   :  { %v2690_v1 = vsub.f32 1.0, %v2689_v41  ;;  %v5351_v19 = vmul.f32 %v2686_v3, %v2619_v17  ;;  %v4425_v41 = vld [vmem:[#allocation19 + $0x18] sm:$0xff]  ;;  %v4432_v3 = vld [vmem:[#allocation20 + $0x10] sm:$0xff]  ;;  %v4430_v17 = vld [vmem:[#allocation20] sm:$0xff] }
 0x876   :  { %v2691_v14 = vmul.f32 %v4509_v56, %v2690_v1  ;;  %v4422_v1 = vld [vmem:[#allocation19] sm:$0xff] }
 0x877   :  { %2948 = vmatpush.bf16.msra.mxu2 %v4426_v49 }
 0x878   :  { %v2692_v16 = vadd.f32 %v4509_v56, %v2691_v14 }
 0x87a   :  { %v2696_v5 = vsel %vm2695_vm15, %v4509_v56, %v2692_v16  ;;  %v4434_v16 = vld [vmem:[#allocation20 + $0x20] sm:$0xff] }
 0x87b   :  { %v2701_v18 = vsel %vm2698_vm1, %v2700_v10, %v2696_v5  ;;  %2949 = vmatpush.bf16.msra.mxu2 %v4425_v41  ;;  %3039 = vmatpush.bf16.msra.mxu3 %v4434_v16  ;;  %v4431_v10 = vld [vmem:[#allocation20 + $0x8] sm:$0xff] }
 0x87c   :  { %v5353_v27 = vmul.f32 %v2701_v18, %v2621_v58  ;;  %v4468_v58 = vld [vmem:[%s5411_s19] ss:$0 sm:$0xff]  ;;  %s3071_s19 = sshll.u32 %s4892_s27, 4  ;;  %s3072_s19 = int_to_ptr.vmem [resolvable:$true] %s3071_s19 }
 0x87e   :  { %v2705_v20 = vpack.c.bf16 %v5353_v27, %v5351_v19 }
 0x87f   :  { %2950 = vmatpush.bf16.msra.mxu2 %v4424_v29  ;;  %3040 = vmatpush.bf16.msra.mxu3 %v4433_v23 }
 0x880   :  { %2782 = vmatmul.bf16.vlgmr.msra.gmra.mxu1 %v2705_v20 }
 0x883   :  { %2951 = vmatpush.bf16.msra.mxu2 %v4423_v62  ;;  %3041 = vmatpush.bf16.msra.mxu3 %v4432_v3 }
 0x887   :  { %2952 = vmatpush.bf16.msra.mxu2 %v4422_v1  ;;  %3042 = vmatpush.bf16.msra.mxu3 %v4431_v10 }
 0x88b   :  { %3043 = vmatpush.bf16.msra.mxu3 %v4430_v17 }
 0x8fd   :  { %v2783_v11 = vpop.f32.mrf.mxu1 }
 0x8fe   :  { %v2784_v22 = vadd.f32 %v4467_v21, %v2783_v11 }
 0x900   :  { %v2788_v24 = vadd.f32 %v2784_v22, %v5214_v7 }
 0x902   :  { %v2790_v34 = vmul.f32 0.70710677, %v2788_v24 }
 0x904   :  { %v2792_v6 = vpack.c.bf16 %v2790_v34, %v2790_v34 }
 0x905   :  { %v2785_v25 = vpop.f32.mrf.mxu1 }
 0x906   :  { %v2786_v36 = vadd.f32 %v4467_v21, %v2785_v25  ;;  %2802 = vmatmul.bf16.vlgmr.msra.gmra.mxu0 %v2792_v6 }
 0x908   :  { %v2789_v28 = vadd.f32 %v2786_v36, %v5216_v9 }
 0x90a   :  { %v2791_v33 = vmul.f32 0.70710677, %v2789_v28 }
 0x90c   :  { %v2793_v63 = vpack.c.bf16 %v2791_v33, %v2791_v33 }
 0x90e   :  { %2815 = vmatmul.bf16.vlgmr.msrb.gmra.mxu3 %v2793_v63 }
 0x983   :  { %v2803_v32 = vpop.f32.mrf.mxu0 }
 0x984   :  { %v2820_v35 = vsel %vm2101_vm10, %v2803_v32, -inf }
 0x985   :  { %2821 = vmax.xlane.f32.xlu2 %v2820_v35 }
 0x98b   :  { %v2805_v13 = vpop.f32.mrf.mxu0 }
 0x991   :  { %v2816_v54 = vpop.f32.mrf.mxu3 }
 0x992   :  { %v2823_v15 = vsel %vm2101_vm10, %v2816_v54, -inf }
 0x993   :  { %2824 = vmax.xlane.f32.xlu2 %v2823_v15 }
 0x999   :  { %v2818_v7 = vpop.f32.mrf.mxu3 }
 0x9f8   :  { %v2822_v61 = vpop.xlane.xlu2 %2821 }
 0x9f9   :  { %v2826_v37 = vsub.f32 %v2803_v32, %v2822_v61 }
 0x9fb   :  { %v2828_v38 = vmul.f32 1.442695, %v2826_v37 }
 0x9fd   :  { %4510 = vpow2.f32 %v2828_v38 }
 0xa03   :  { %v4511_v57 = vpop.eup %4510 }
 0xa04   :  { %v2832_v9 = vsel %vm2101_vm10, %v4511_v57, 0.0 }
 0xa05   :  { %2833 = vadd.xlane.f32.xlu2 %v2832_v9 }
 0xa06   :  { %v2825_v31 = vpop.xlane.xlu2 %2824 }
 0xa07   :  { %v2827_v39 = vsub.f32 %v2816_v54, %v2825_v31 }
 0xa09   :  { %v2830_v40 = vmul.f32 1.442695, %v2827_v39 }
 0xa0b   :  { %4512 = vpow2.f32 %v2830_v40 }
 0xa11   :  { %v4513_v42 = vpop.eup %4512 }
 0xa12   :  { %v2835_v45 = vsel %vm2101_vm10, %v4513_v42, 0.0 }
 0xa13   :  { %2836 = vadd.xlane.f32.xlu2 %v2835_v45 }
 0xa78   :  { %v2834_v47 = vpop.xlane.xlu2 %2833 }
 0xa79   :  { %4514 = vrcp.f32 %v2834_v47 }
 0xa7f   :  { %v4515_v50 = vpop.eup %4514 }
 0xa80   :  { %v2840_v51 = vmul.f32 %v4515_v50, %v4511_v57 }
 0xa82   :  { %v2842_v55 = vpack.c.bf16 %v2840_v51, %v2840_v51  ;;  %3052 = vst.msk [vmem:[#allocation23] sm:$0xff] %vm2101_vm10, %v2840_v51 }
 0xa84   :  { %4116 = vmatmul.msk.bf16.vlgmr.msrb.gmra.mxu0 %vm2101_vm10, %v2842_v55 }
 0xa86   :  { %v2837_v44 = vpop.xlane.xlu2 %2836 }
 0xa87   :  { %4516 = vrcp.f32 %v2837_v44 }
 0xa8d   :  { %v4517_v56 = vpop.eup %4516 }
 0xa8e   :  { %v2841_v26 = vmul.f32 %v4517_v56, %v4513_v42 }
 0xa90   :  { %v2843_v60 = vpack.c.bf16 %v2841_v26, %v2841_v26  ;;  %3053 = vst.msk [vmem:[#allocation23 + $0x8] sm:$0xff] %vm2101_vm10, %v2841_v26 }
 0xa91   :  { %3079 = dma.vmem_to_hbm [thread:$0]  %s3072_s19, 256, %s3074_s21, [#allocation24], %s4879_s25, %s4879_s25, %s4880_s1  }
 0xa92   :  { %4117 = vmatmul.msk.bf16.vlgmr.msrb.gmra.mxu1 %vm2101_vm10, %v2843_v60 }
 0xb01   :  { %v2856_v8 = vpop.f32.mrf.mxu0 }
 0xb09   :  { %v2858_v53 = vpop.f32.mrf.mxu0 }
 0xb0f   :  { %v2872_v14 = vpop.f32.mrf.mxu1 }
 0xb10   :  { %v2876_v4 = vpack.c.bf16 %v2872_v14, %v2856_v8 }
 0xb12   :  { %2953 = vmatmul.bf16.vlgmr.msra.gmra.mxu2 %v2876_v4 }
 0xb17   :  { %v2874_v59 = vpop.f32.mrf.mxu1 }
 0xb95   :  { %v2954_v5 = vpop.f32.mrf.mxu2 }
 0xb96   :  { %v2955_v18 = vadd.f32 %v4468_v58, %v2954_v5 }
 0xb98   :  { %v2959_v20 = vadd.f32 %v2955_v18, %v5351_v19 }
 0xb9a   :  { %v2961_v11 = vmul.f32 0.70710677, %v2959_v20 }
 0xb9c   :  { %v2963_v34 = vadd.f32 %v2961_v11, %v5326_v2  ;;  %v4469_v2 = vld [vmem:[%s5443_s0] ss:$0 sm:$0xff] }
 0xb9d   :  { %v2956_v21 = vpop.f32.mrf.mxu2 }
 0xb9e   :  { %v2957_v22 = vadd.f32 %v4468_v58, %v2956_v21  ;;  %v2965_v36 = vmul.f32 0.70710677, %v2963_v34 }
 0xba0   :  { %v2960_v24 = vadd.f32 %v2957_v22, %v5353_v27 }
 0xba2   :  { %v2962_v6 = vmul.f32 0.70710677, %v2960_v24 }
 0xba4   :  { %v2964_v25 = vadd.f32 %v2962_v6, %v5331_v12 }
 0xba6   :  { %v2966_v28 = vmul.f32 0.70710677, %v2964_v25 }
 0xba8   :  { %v2967_v33 = vpack.c.bf16 %v2966_v28, %v2965_v36 }
 0xbaa   :  { %3044 = vmatmul.bf16.vlgmr.msra.gmra.mxu3 %v2967_v33 }
 0xc2d   :  { %v3045_v12 = vpop.f32.mrf.mxu3 }
 0xc2e   :  { %v3046_v19 = vadd.f32 %v4469_v2, %v3045_v12 }
 0xc30   :  { %3050 = vst [vmem:[#allocation22] sm:$0xff] %v3046_v19 }
 0xc35   :  { %v3047_v27 = vpop.f32.mrf.mxu3 }
 0xc36   :  { %v3048_v63 = vadd.f32 %v4469_v2, %v3047_v27 }
 0xc38   :  { %3051 = vst [vmem:[#allocation22 + $0x8] sm:$0xff] %v3048_v63 }
 0xc39   :  { %3066 = dma.vmem_to_hbm [thread:$0]  %s3059_s22, 256, %s3061_s20, [#allocation4], %s4879_s25, %s4879_s25, %s4880_s1  }
 0xc3a   :  { %4868 = dma.done.wait [#allocation4], 256  }
 0xc3b   :  { %4869 = vsyncadd [#allocation4], 4294967040 }
 0xc3c   :  { %4870 = dma.done.wait [#allocation24], 256  }
 0xc3d   :  { %4871 = vsyncadd [#allocation24], 4294967040 }
 0xc3e   :  { %3088 = vsyncpa [#allocation3], 1 }
 0xc3f   :  { %3089 = vsyncpa [#allocation6], 1 }
 0xc40   :  { %3090 = vsyncpa [#allocation9], 1 }
 0xc41   :  { %3091 = vsyncpa [#allocation12], 1 }
 0xc42   :  { %3092 = vsyncpa [#allocation15], 1 }
 0xc43   :  { %3093 = vsyncpa [#allocation18], 1 }
 0xc44   :  { %3094 = vsyncpa [#allocation21], 1 }
 0xc45   :  { %3095 = vsyncpa [#allocation4], 1 }
 0xc46   :  { %3096 = vsyncpa [#allocation24], 1 }

</bundles_post_ra>
